<compile_context>
chip_gen: v7x
topology: tpu7x:2x2x1
jax: 0.10.0
libtpu: 0.0.40
codegen_flags: <defaults>
</compile_context>

<pallas_src>
import numpy as np
import jax
import jax.numpy as jnp
from jax import lax
from jax.experimental import pallas as pl
from jax.experimental.pallas import tpu as pltpu

# ---- small, module-consistent hyper-parameters -------------------------------------
B = 2            # batch
A = 2            # num agents  (= preference_emb.size(1))
C = 6            # num customers
S = A + C        # num_agents + num_clients
D = 32           # embed_dim
H = 4            # num_heads
DH = D // H      # head_dim (divisible by 8, <= 128, per module assert)
FF = 64          # feedforward_hidden of the layer-level MLP
NUM_LAYERS = 2
LANE = 128       # each packed weight/bias occupies its own 128-lane-aligned band
INV_SQRT_DH = 1.0 / (DH ** 0.5)
NEG_INF = -1e9   # block-diagonal attention mask value (exp(-1e9) == 0.0 in f32)

# ---------------- slab band layout (static, shared by packer and kernel) ------------
# weights with input dim D (one MXU operand slab), column band per op.
# "wvq" = [Wv_part1 | Wq_part2] fused (same input: post-FF1 customer_out);
# "wkv2" = [Wk_part2 | Wv_part2] fused (same input: post-FF2 agent_out).
WD_BANDS = ["wqkv", "out_navi", "f1w1", "wvq", "wop1", "f2w1", "wkv2", "wop2", "f3w1", "mw1"]
WD_WIDTH = {"wqkv": 3 * D, "out_navi": D, "f1w1": 3 * D, "wvq": 2 * D, "wop1": D,
            "f2w1": 3 * D, "wkv2": 2 * D, "wop2": D, "f3w1": 3 * D, "mw1": FF}
# weights with input dim 3*D (the three feed-forward W2's):
WF_BANDS = ["f1w2", "f2w2", "f3w2"]
WF_WIDTH = {n: D for n in WF_BANDS}
# biases (one band per linear actually used by the kernel):
B_BANDS = WD_BANDS + WF_BANDS + ["mw2"]
B_WIDTH = {**WD_WIDTH, **WF_WIDTH, "mw2": D}

WD_OFF = {n: i * LANE for i, n in enumerate(WD_BANDS)}
WF_OFF = {n: i * LANE for i, n in enumerate(WF_BANDS)}
B_OFF = {n: i * LANE for i, n in enumerate(B_BANDS)}


# ===================================== kernel =======================================
def _make_kernel(nb):
    """Build the kernel for `nb` batch elements folded into one grid step."""
    NAb, NCb, NSb = nb * A, nb * C, nb * S

    def kernel(alphas_ref, node_ref, ind_ref, mcc_ref, mca_ref,
               wd_ref, wf_ref, wm_ref, bias_ref, out_ref, head_buf, comb_buf):

        def _bf(x):                                              # MXU operands in bf16
            return x.astype(jnp.bfloat16)

        def bias(l, name):
            off = B_OFF[name]
            return bias_ref[l, :, off:off + B_WIDTH[name]]       # (1, w) f32

        def lin_d(x, l, name):                                   # Din = D
            off = WD_OFF[name]
            w = wd_ref[l, :, off:off + WD_WIDTH[name]]
            return jnp.dot(_bf(x), w, preferred_element_type=jnp.float32) + bias(l, name)

        def lin_f(x, l, name):                                   # Din = 3*D
            off = WF_OFF[name]
            w = wf_ref[l, :, off:off + WF_WIDTH[name]]
            return jnp.dot(_bf(x), w, preferred_element_type=jnp.float32) + bias(l, name)

        def lin_m(x, l):                                         # mw2: Din = FF
            return (jnp.dot(_bf(x), wm_ref[l], preferred_element_type=jnp.float32)
                    + bias(l, "mw2"))

        def ff(x, l, w1n, w2n, alpha):                           # Feed_Forward_Module
            return x + lin_f(jnp.maximum(lin_d(x, l, w1n), 0.0), l, w2n) * alpha

        def mha(q_scaled, k, v, mask, l, proj):
            """concat_h(softmax(q_h k_h^T + mask) v_h) @ W_proj + b_proj.

            Heads are merged by lane-slice stores into `head_buf` (no value-level
            concat), then ONE projection dot runs over the merged (nq, D) block.
            q is pre-scaled by 1/sqrt(DH); max-subtraction is dropped (scores O(1)).
            """
            for h in range(H):
                sl = slice(h * DH, (h + 1) * DH)
                s = lax.dot_general(_bf(q_scaled[:, sl]), _bf(k[:, sl]),
                                    (((1,), (1,)), ((), ())),
                                    preferred_element_type=jnp.float32)
                s = s + mask                                     # block-diag batch mask
                e = jnp.exp(s)
                p = e * pl.reciprocal(jnp.sum(e, axis=-1, keepdims=True), approx=True)
                head_buf[:, sl] = jnp.dot(_bf(p), _bf(v[:, sl]),
                                          preferred_element_type=jnp.float32)
            return lin_d(head_buf[...], l, proj)

        node = node_ref[0]                     # (NSb, D): [agents(all batches); customers]
        agent_h = node[:NAb, :]                # (NAb, D)
        cust_h = node[NAb:, :]                 # (NCb, D)
        ind = ind_ref[...]                     # (NAb, NCb) per-batch 0/1 indicator (bf16)
        mask_cc = mcc_ref[...]                 # (NCb, NCb) block-diag mask
        mask_ca = mca_ref[...]                 # (NCb, NAb) block-diag mask

        for l in range(NUM_LAYERS):
            a1, aff1 = alphas_ref[l, 0], alphas_ref[l, 1]
            a2, aff2 = alphas_ref[l, 2], alphas_ref[l, 3]
            a3, aff3 = alphas_ref[l, 4], alphas_ref[l, 5]
            w1, w2 = alphas_ref[l, 6], alphas_ref[l, 7]

            # -------- stage 1: customer self-attention (Wqkv_navi / out_proj_navi) --
            qkv = lin_d(cust_h, l, "wqkv")                       # (NCb, 3D)
            attn1 = mha(qkv[:, :D] * INV_SQRT_DH, qkv[:, D:2 * D], qkv[:, 2 * D:],
                        mask_cc, l, "out_navi")
            cust_out = cust_h + attn1 * a1                       # Add&Norm 1 (rezero)
            cust_out = ff(cust_out, l, "f1w1", "f1w2", aff1)     # FeedForward 1

            # -------- stage 2: agent update + Wq_part2 (shared-input fused dot) -----
            # softmax(dim=3).sum(dim=3) == 1 exactly, so attention weights are all ones
            # and the Q/K/preference projections cancel: each agent gets the per-batch
            # sum of Wv_part1(cust_out), realised as an indicator matmul.
            vq = lin_d(cust_out, l, "wvq")                       # (NCb, 2D): [v1 | q2]
            v1 = vq[:, :D]
            q2 = vq[:, D:] * INV_SQRT_DH                         # pre-scaled for stage 3
            sums = jnp.dot(ind, _bf(v1), preferred_element_type=jnp.float32)  # (NAb, D)
            agent_out = agent_h + lin_d(sums, l, "wop1") * a2    # Add&Norm 2
            agent_out = ff(agent_out, l, "f2w1", "f2w2", aff2)   # FeedForward 2

            # -------- stage 3: customers attend to agents ----------------------------
            kv2 = lin_d(agent_out, l, "wkv2")                    # (NAb, 2D) fused K|V
            attn2 = mha(q2, kv2[:, :D], kv2[:, D:], mask_ca, l, "wop2")
            cust_out2 = cust_out + attn2 * a3                    # Add&Norm 3
            cust_out2 = ff(cust_out2, l, "f3w1", "f3w2", aff3)   # FeedForward 3

            # -------- layer-level rezero residual + shared MLP on combined block -----
            comb_buf[:NAb, :] = agent_out * w1 + agent_h         # masked sublane stores,
            comb_buf[NAb:, :] = cust_out2 * w1 + cust_h          # not a value-level concat
            attn = comb_buf[...]                                 # (NSb, D)
            y = lin_m(jnp.maximum(lin_d(attn, l, "mw1"), 0.0), l) * w2 + attn

            if l == NUM_LAYERS - 1:
                out_ref[0] = y                                   # single full-block store
            else:
                agent_h = y[:NAb, :]
                cust_h = y[NAb:, :]

    return kernel, NAb, NCb, NSb


# ===================================== wrapper =======================================
def _default_fold_batch():
    """Fold the batch into one grid step on single-TC chips (v5e/v6e); keep grid=(B,)
    on v7x so its two TensorCores each take one batch element."""
    try:
        kind = jax.devices()[0].device_kind.lower()
    except Exception:
        return True
    return not ("v7" in kind or "7x" in kind)


def gat_forward(x, preference_emb, packed, fold_batch=None):
    """GraphAttentionNetwork.forward: all layers fused into one pallas_call."""
    # preference_emb is accepted for API fidelity but has no effect on the output
    # (softmax(dim=3).sum(dim=3) == 1 cancels the whole preference branch).
    del preference_emb
    alphas, wd, wf, wm, bias = packed
    if fold_batch is None:
        fold_batch = _default_fold_batch()
    nb = B if fold_batch else 1                 # batch elems folded per grid step
    nsteps = B // nb
    kernel, NAb, NCb, NSb = _make_kernel(nb)

    # fold node embeddings: agents of the step's nb batch elems first, then customers
    xa = x[:, :A, :].reshape(nsteps, NAb, D)
    xc = x[:, A:, :].reshape(nsteps, NCb, D)
    node = jnp.concatenate([xa, xc], axis=1)    # (nsteps, NSb, D)

    # per-batch bookkeeping constants (tiny, built host-side; zeros / all-ones for nb=1)
    ba = np.arange(NAb) // A                    # batch id per agent row
    bc = np.arange(NCb) // C                    # batch id per customer row
    ind = jnp.asarray((ba[:, None] == bc[None, :]).astype(np.float32), dtype=jnp.bfloat16)
    mask_cc = jnp.asarray(np.where(bc[:, None] == bc[None, :], 0.0, NEG_INF).astype(np.float32))
    mask_ca = jnp.asarray(np.where(bc[:, None] == ba[None, :], 0.0, NEG_INF).astype(np.float32))

    in_specs = [
        pl.BlockSpec(memory_space=pltpu.MemorySpace.SMEM),       # alphas (scalars)
        pl.BlockSpec((1, NSb, D), lambda i: (i, 0, 0)),          # folded node embeddings
        pl.BlockSpec(ind.shape, lambda i: (0, 0)),               # per-batch indicator
        pl.BlockSpec(mask_cc.shape, lambda i: (0, 0)),           # block-diag mask (c x c)
        pl.BlockSpec(mask_ca.shape, lambda i: (0, 0)),           # block-diag mask (c x a)
        pl.BlockSpec(wd.shape, lambda i: (0, 0, 0)),             # bf16 weight slab, Din=D
        pl.BlockSpec(wf.shape, lambda i: (0, 0, 0)),             # bf16 weight slab, Din=3D
        pl.BlockSpec(wm.shape, lambda i: (0, 0, 0)),             # bf16 mw2 slab, Din=FF
        pl.BlockSpec(bias.shape, lambda i: (0, 0, 0)),           # f32 bias slab
    ]
    out = pl.pallas_call(
        kernel,
        out_shape=jax.ShapeDtypeStruct((nsteps, NSb, D), jnp.float32),
        grid_spec=pltpu.PrefetchScalarGridSpec(
            num_scalar_prefetch=0,
            grid=(nsteps,),
            in_specs=in_specs,
            out_specs=pl.BlockSpec((1, NSb, D), lambda i: (i, 0, 0)),
            scratch_shapes=[pltpu.VMEM((NCb, D), jnp.float32),   # merged-head buffer
                            pltpu.VMEM((NSb, D), jnp.float32)],  # combined layer block
        ),
        compiler_params=pltpu.CompilerParams(dimension_semantics=("parallel",)),
    )(alphas, node, ind, mask_cc, mask_ca, wd, wf, wm, bias)

    # unfold back to (B, S, D) with per-batch [agents; customers] ordering
    out_a = out[:, :NAb, :].reshape(B, A, D)
    out_c = out[:, NAb:, :].reshape(B, C, D)
    return jnp.concatenate([out_a, out_c], axis=1)


# ================================ parameter init =====================================
SHAPES = {
    "wqkv": (D, 3 * D), "out_navi": (D, D),
    "f1w1": (D, 3 * D), "f1w2": (3 * D, D),
    "wq1": (D, D), "wk1": (D, D), "wv1": (D, D),
    "wqp": (D, D), "wkp": (D, D), "wop1": (D, D),
    "f2w1": (D, 3 * D), "f2w2": (3 * D, D),
    "wq2": (D, D), "wk2": (D, D), "wv2": (D, D), "wop2": (D, D),
    "f3w1": (D, 3 * D), "f3w2": (3 * D, D),
    "mw1": (D, FF), "mw2": (FF, D),     # layer-level MLP(embed_dim -> FF -> embed_dim)
}


def init_linear(key, din, dout):
    k1, k2 = jax.random.split(key)
    bound = 1.0 / (din ** 0.5)
    w = jax.random.uniform(k1, (din, dout), jnp.float32, -bound, bound)  # (Din, Dout)
    b = jax.random.uniform(k2, (1, dout), jnp.float32, -bound, bound)
    return w, b


def init_layer(key):
    names = list(SHAPES)
    keys = jax.random.split(key, len(names))
    wdict = {n: init_linear(k, *SHAPES[n]) for n, k in zip(names, keys)}
    # alphas: [addnorm1, ff1, addnorm2, ff2, addnorm3, ff3, w1, w2]
    # (torch initializes these to 0; nonzero values exercise the full compute path)
    alphas = jnp.array([0.3, 0.2, 0.3, 0.2, 0.3, 0.2, 0.5, 0.5], dtype=jnp.float32)
    return alphas, wdict


def _pad_band(x):
    return jnp.pad(x, ((0, 0), (0, LANE - x.shape[1])))


def pack_layer(wdict):
    """Pack one layer's weights into lane-aligned bf16 slabs (host-side, regular JAX)."""
    fused = dict(wdict)
    fused["wvq"] = (jnp.concatenate([wdict["wv1"][0], wdict["wq2"][0]], axis=1),
                    jnp.concatenate([wdict["wv1"][1], wdict["wq2"][1]], axis=1))
    fused["wkv2"] = (jnp.concatenate([wdict["wk2"][0], wdict["wv2"][0]], axis=1),
                     jnp.concatenate([wdict["wk2"][1], wdict["wv2"][1]], axis=1))
    wd_slab = jnp.concatenate([_pad_band(fused[n][0]) for n in WD_BANDS],
                              axis=1).astype(jnp.bfloat16)
    wf_slab = jnp.concatenate([_pad_band(fused[n][0]) for n in WF_BANDS],
                              axis=1).astype(jnp.bfloat16)
    wm_slab = fused["mw2"][0].astype(jnp.bfloat16)
    b_slab = jnp.concatenate([_pad_band(fused[n][1]) for n in B_BANDS], axis=1)  # f32
    return wd_slab, wf_slab, wm_slab, b_slab


def pack_params(layers):
    alphas = jnp.stack([a for a, _ in layers], axis=0)              # (L, 8)
    slabs = [pack_layer(wdict) for _, wdict in layers]
    wd = jnp.stack([s[0] for s in slabs], axis=0)                   # (L, D, 10*128) bf16
    wf = jnp.stack([s[1] for s in slabs], axis=0)                   # (L, 3D, 3*128) bf16
    wm = jnp.stack([s[2] for s in slabs], axis=0)                   # (L, FF, D)     bf16
    bias = jnp.stack([s[3] for s in slabs], axis=0)                 # (L, 1, 14*128) f32
    return alphas, wd, wf, wm, bias


# ============================= pure-JAX reference (check) ============================
def ref_layer(alphas, node, prefer, wd):
    a1, aff1, a2, aff2, a3, aff3, w1, w2 = [alphas[i] for i in range(8)]

    def lin(x, name):
        w, b = wd[name]
        return x @ w + b

    def split_heads(t):   # (B, N, D) -> (B, H, N, DH)
        b, n, _ = t.shape
        return t.reshape(b, n, H, DH).transpose(0, 2, 1, 3)

    def merge_heads(t):
        b, h, n, dh = t.shape
        return t.transpose(0, 2, 1, 3).reshape(b, n, h * dh)

    def sdpa(q, k, v):
        s = jnp.einsum('bhqd,bhkd->bhqk', q, k) / (DH ** 0.5)
        p = jax.nn.softmax(s, axis=-1)
        return jnp.einsum('bhqk,bhkd->bhqd', p, v)

    agent = node[:, :A, :]
    cust = node[:, A:, :]

    qkv = lin(cust, "wqkv")
    q, k, v = qkv[..., :D], qkv[..., D:2 * D], qkv[..., 2 * D:]
    c_attn = merge_heads(sdpa(split_heads(q), split_heads(k), split_heads(v)))
    c_attn = lin(c_attn, "out_navi")
    cust_out = cust + c_attn * a1
    cust_out = cust_out + lin(jax.nn.relu(lin(cust_out, "f1w1")), "f1w2") * aff1

    aq = lin(agent, "wq1")
    ck = lin(cust_out, "wk1")
    cv = lin(cust_out, "wv1")
    pq = lin(prefer, "wqp")
    pk = lin(prefer, "wkp")
    agent_q = aq[:, :, None, :] + pq[:, :, A:, :]                    # (B, A, C, D)
    cust_k = ck[:, None, :, :] + pk[:, :, A:, :]                     # (B, A, C, D)
    agent_q = agent_q.reshape(B, A, C, H, DH).transpose(0, 3, 1, 2, 4)
    cust_k = cust_k.reshape(B, A, C, H, DH).transpose(0, 3, 1, 2, 4)
    cust_v = cv.reshape(B, C, H, DH).transpose(0, 2, 1, 3)
    scores = jnp.einsum('bhaid,bhajd->bhaij', agent_q, cust_k) / (DH ** 0.5)
    attn_w = jax.nn.softmax(scores, axis=3).sum(axis=3)              # (B, H, A, C)
    agent_attn = merge_heads(jnp.einsum('bhac,bhcd->bhad', attn_w, cust_v))
    agent_attn = lin(agent_attn, "wop1")
    agent_out = agent + agent_attn * a2
    agent_out = agent_out + lin(jax.nn.relu(lin(agent_out, "f2w1")), "f2w2") * aff2

    q2 = split_heads(lin(cust_out, "wq2"))
    ak = split_heads(lin(agent_out, "wk2"))
    av = split_heads(lin(agent_out, "wv2"))
    c2 = merge_heads(sdpa(q2, ak, av))
    c2 = lin(c2, "wop2")
    cust_out2 = cust_out + c2 * a3
    cust_out2 = cust_out2 + lin(jax.nn.relu(lin(cust_out2, "f3w1")), "f3w2") * aff3

    embed = jnp.concatenate([agent_out, cust_out2], axis=1)
    attn = embed * w1 + node
    mlp = lin(jax.nn.relu(lin(attn, "mw1")), "mw2")
    return mlp * w2 + attn


def ref_forward(x, prefer, layers):
    h = x
    for alphas, wdict in layers:
        h = ref_layer(alphas, h, prefer, wdict)
    return h


# ====================================== main =========================================
if __name__ == "__main__":
    key = jax.random.PRNGKey(0)
    kx, kp, *lkeys = jax.random.split(key, 2 + NUM_LAYERS)

    x = 0.5 * jax.random.normal(kx, (B, S, D), dtype=jnp.float32)
    preference_emb = 0.5 * jax.random.normal(kp, (B, A, S, D), dtype=jnp.float32)

    layers = [init_layer(k) for k in lkeys]          # [(alphas, weight_dict), ...]
    packed = pack_params(layers)

    out = jax.block_until_ready(gat_forward(x, preference_emb, packed))

    ref = jax.block_until_ready(ref_forward(x, preference_emb, layers))
    assert out.shape == (B, S, D)
    # kernel matmuls use bf16 MXU operands (f32 accumulate); tolerance reflects that.
    np.testing.assert_allclose(np.asarray(out), np.asarray(ref), rtol=5e-2, atol=5e-2)

    print("KERNEL_OK")
</pallas_src>

<mosaic_0001>
module attributes {stable_mosaic.version = 11 : i64} {
  func.func @kernel(%arg0: i32, %arg1: memref<2x8xf32, #tpu.memory_space<smem>>, %arg2: memref<1x16x32xf32, #tpu.memory_space<vmem>>, %arg3: memref<4x12xbf16, #tpu.memory_space<vmem>>, %arg4: memref<12x12xf32, #tpu.memory_space<vmem>>, %arg5: memref<12x4xf32, #tpu.memory_space<vmem>>, %arg6: memref<2x32x1280xbf16, #tpu.memory_space<vmem>>, %arg7: memref<2x96x384xbf16, #tpu.memory_space<vmem>>, %arg8: memref<2x64x32xbf16, #tpu.memory_space<vmem>>, %arg9: memref<2x1x1792xf32, #tpu.memory_space<vmem>>, %arg10: memref<1x16x32xf32, #tpu.memory_space<vmem>>, %arg11: memref<12x32xf32, #tpu.memory_space<vmem>>, %arg12: memref<16x32xf32, #tpu.memory_space<vmem>>) attributes {dimension_semantics = [#tpu.dimension_semantics<parallel>], iteration_bounds = array<i64: 1>, scalar_prefetch = 0 : i64, scratch_operands = 2 : i64, tpu.core_type = #tpu.core_type<tc>, window_params = [{transform_indices = @transform_0, window_bounds = array<i64: 2, 8>}, {transform_indices = @transform_1, window_bounds = array<i64: 1, 16, 32>}, {pipeline_mode = #tpu.pipeline_mode<synchronous>, transform_indices = @transform_2, window_bounds = array<i64: 4, 12>}, {pipeline_mode = #tpu.pipeline_mode<synchronous>, transform_indices = @transform_3, window_bounds = array<i64: 12, 12>}, {pipeline_mode = #tpu.pipeline_mode<synchronous>, transform_indices = @transform_4, window_bounds = array<i64: 12, 4>}, {pipeline_mode = #tpu.pipeline_mode<synchronous>, transform_indices = @transform_5, window_bounds = array<i64: 2, 32, 1280>}, {pipeline_mode = #tpu.pipeline_mode<synchronous>, transform_indices = @transform_6, window_bounds = array<i64: 2, 96, 384>}, {pipeline_mode = #tpu.pipeline_mode<synchronous>, transform_indices = @transform_7, window_bounds = array<i64: 2, 64, 32>}, {pipeline_mode = #tpu.pipeline_mode<synchronous>, transform_indices = @transform_8, window_bounds = array<i64: 2, 1, 1792>}, {transform_indices = @transform_9, window_bounds = array<i64: 1, 16, 32>}]} {
    %c0 = arith.constant 0 : index
    %c0_0 = arith.constant 0 : index
    %c0_1 = arith.constant 0 : index
    %0 = vector.load %arg2[%c0, %c0_0, %c0_1] : memref<1x16x32xf32, #tpu.memory_space<vmem>>, vector<1x16x32xf32>
    %1 = vector.shape_cast %0 : vector<1x16x32xf32> to vector<16x32xf32>
    %2 = vector.extract_strided_slice %1 {offsets = [0, 0], sizes = [4, 32], strides = [1, 1]} : vector<16x32xf32> to vector<4x32xf32>
    %3 = vector.extract_strided_slice %1 {offsets = [4, 0], sizes = [12, 32], strides = [1, 1]} : vector<16x32xf32> to vector<12x32xf32>
    %c0_2 = arith.constant 0 : index
    %c0_3 = arith.constant 0 : index
    %4 = vector.load %arg3[%c0_2, %c0_3] : memref<4x12xbf16, #tpu.memory_space<vmem>>, vector<4x12xbf16>
    %c0_4 = arith.constant 0 : index
    %c0_5 = arith.constant 0 : index
    %5 = vector.load %arg4[%c0_4, %c0_5] : memref<12x12xf32, #tpu.memory_space<vmem>>, vector<12x12xf32>
    %c0_6 = arith.constant 0 : index
    %c0_7 = arith.constant 0 : index
    %6 = vector.load %arg5[%c0_6, %c0_7] : memref<12x4xf32, #tpu.memory_space<vmem>>, vector<12x4xf32>
    %c0_8 = arith.constant 0 : index
    %c0_9 = arith.constant 0 : index
    %7 = memref.load %arg1[%c0_8, %c0_9] : memref<2x8xf32, #tpu.memory_space<smem>>
    %c0_10 = arith.constant 0 : index
    %c1 = arith.constant 1 : index
    %8 = memref.load %arg1[%c0_10, %c1] : memref<2x8xf32, #tpu.memory_space<smem>>
    %c0_11 = arith.constant 0 : index
    %c2 = arith.constant 2 : index
    %9 = memref.load %arg1[%c0_11, %c2] : memref<2x8xf32, #tpu.memory_space<smem>>
    %c0_12 = arith.constant 0 : index
    %c3 = arith.constant 3 : index
    %10 = memref.load %arg1[%c0_12, %c3] : memref<2x8xf32, #tpu.memory_space<smem>>
    %c0_13 = arith.constant 0 : index
    %c4 = arith.constant 4 : index
    %11 = memref.load %arg1[%c0_13, %c4] : memref<2x8xf32, #tpu.memory_space<smem>>
    %c0_14 = arith.constant 0 : index
    %c5 = arith.constant 5 : index
    %12 = memref.load %arg1[%c0_14, %c5] : memref<2x8xf32, #tpu.memory_space<smem>>
    %c0_15 = arith.constant 0 : index
    %c6 = arith.constant 6 : index
    %13 = memref.load %arg1[%c0_15, %c6] : memref<2x8xf32, #tpu.memory_space<smem>>
    %c0_16 = arith.constant 0 : index
    %c7 = arith.constant 7 : index
    %14 = memref.load %arg1[%c0_16, %c7] : memref<2x8xf32, #tpu.memory_space<smem>>
    %c0_17 = arith.constant 0 : index
    %c0_18 = arith.constant 0 : index
    %c0_19 = arith.constant 0 : index
    %15 = vector.load %arg6[%c0_17, %c0_18, %c0_19] : memref<2x32x1280xbf16, #tpu.memory_space<vmem>>, vector<1x32x96xbf16>
    %16 = vector.shape_cast %15 : vector<1x32x96xbf16> to vector<32x96xbf16>
    %17 = arith.truncf %3 : vector<12x32xf32> to vector<12x32xbf16>
    %cst = arith.constant dense<0.000000e+00> : vector<12x96xf32>
    %18 = tpu.matmul %17, %16, %cst {dimension_numbers = #tpu.dot_dimension_numbers<[1], [0], [0], [1], [0, 0, 1, 1], [], []>} : vector<12x32xbf16>, vector<32x96xbf16>, vector<12x96xf32> -> vector<12x96xf32>
    %c0_20 = arith.constant 0 : index
    %c0_21 = arith.constant 0 : index
    %c0_22 = arith.constant 0 : index
    %19 = vector.load %arg9[%c0_20, %c0_21, %c0_22] : memref<2x1x1792xf32, #tpu.memory_space<vmem>>, vector<1x1x96xf32>
    %20 = vector.shape_cast %19 : vector<1x1x96xf32> to vector<1x96xf32>
    %21 = vector.broadcast %20 : vector<1x96xf32> to vector<12x96xf32>
    %22 = arith.addf %18, %21 : vector<12x96xf32>
    %23 = vector.extract_strided_slice %22 {offsets = [0, 0], sizes = [12, 32], strides = [1, 1]} : vector<12x96xf32> to vector<12x32xf32>
    %cst_23 = arith.constant 0.353553385 : f32
    %24 = vector.broadcast %cst_23 : f32 to vector<12x32xf32>
    %25 = arith.mulf %23, %24 : vector<12x32xf32>
    %26 = vector.extract_strided_slice %22 {offsets = [0, 32], sizes = [12, 32], strides = [1, 1]} : vector<12x96xf32> to vector<12x32xf32>
    %27 = vector.extract_strided_slice %22 {offsets = [0, 64], sizes = [12, 32], strides = [1, 1]} : vector<12x96xf32> to vector<12x32xf32>
    %28 = vector.extract_strided_slice %25 {offsets = [0, 0], sizes = [12, 8], strides = [1, 1]} : vector<12x32xf32> to vector<12x8xf32>
    %29 = arith.truncf %28 : vector<12x8xf32> to vector<12x8xbf16>
    %30 = vector.extract_strided_slice %26 {offsets = [0, 0], sizes = [12, 8], strides = [1, 1]} : vector<12x32xf32> to vector<12x8xf32>
    %31 = arith.truncf %30 : vector<12x8xf32> to vector<12x8xbf16>
    %cst_24 = arith.constant dense<0.000000e+00> : vector<12x12xf32>
    %32 = tpu.matmul %29, %31, %cst_24 {dimension_numbers = #tpu.dot_dimension_numbers<[1], [1], [0], [0], [0, 0, 1, 0], [], []>} : vector<12x8xbf16>, vector<12x8xbf16>, vector<12x12xf32> -> vector<12x12xf32>
    %33 = arith.addf %32, %5 : vector<12x12xf32>
    %34 = math.exp %33 : vector<12x12xf32>
    %cst_25 = arith.constant dense<0.000000e+00> : vector<12xf32>
    %35 = vector.multi_reduction <add>, %34, %cst_25 [1] : vector<12x12xf32> to vector<12xf32>
    %36 = vector.shape_cast %35 : vector<12xf32> to vector<12x1xf32>
    %37 = tpu.reciprocal %36 {approx = true} : vector<12x1xf32> -> vector<12x1xf32>
    %38 = vector.broadcast %37 : vector<12x1xf32> to vector<12x12xf32>
    %39 = arith.mulf %34, %38 : vector<12x12xf32>
    %40 = arith.truncf %39 : vector<12x12xf32> to vector<12x12xbf16>
    %41 = vector.extract_strided_slice %27 {offsets = [0, 0], sizes = [12, 8], strides = [1, 1]} : vector<12x32xf32> to vector<12x8xf32>
    %42 = arith.truncf %41 : vector<12x8xf32> to vector<12x8xbf16>
    %cst_26 = arith.constant dense<0.000000e+00> : vector<12x8xf32>
    %43 = tpu.matmul %40, %42, %cst_26 {dimension_numbers = #tpu.dot_dimension_numbers<[1], [0], [0], [1], [0, 0, 1, 1], [], []>} : vector<12x12xbf16>, vector<12x8xbf16>, vector<12x8xf32> -> vector<12x8xf32>
    %c0_27 = arith.constant 0 : index
    %c0_28 = arith.constant 0 : index
    %44 = vector.load %arg11[%c0_27, %c0_28] : memref<12x32xf32, #tpu.memory_space<vmem>>, vector<12x8xf32>
    tpu.vector_store %arg11[%c0_27, %c0_28], %43 {strides = array<i32>} : memref<12x32xf32, #tpu.memory_space<vmem>>, vector<12x8xf32>,
    %45 = vector.extract_strided_slice %25 {offsets = [0, 8], sizes = [12, 8], strides = [1, 1]} : vector<12x32xf32> to vector<12x8xf32>
    %46 = arith.truncf %45 : vector<12x8xf32> to vector<12x8xbf16>
    %47 = vector.extract_strided_slice %26 {offsets = [0, 8], sizes = [12, 8], strides = [1, 1]} : vector<12x32xf32> to vector<12x8xf32>
    %48 = arith.truncf %47 : vector<12x8xf32> to vector<12x8xbf16>
    %cst_29 = arith.constant dense<0.000000e+00> : vector<12x12xf32>
    %49 = tpu.matmul %46, %48, %cst_29 {dimension_numbers = #tpu.dot_dimension_numbers<[1], [1], [0], [0], [0, 0, 1, 0], [], []>} : vector<12x8xbf16>, vector<12x8xbf16>, vector<12x12xf32> -> vector<12x12xf32>
    %50 = arith.addf %49, %5 : vector<12x12xf32>
    %51 = math.exp %50 : vector<12x12xf32>
    %cst_30 = arith.constant dense<0.000000e+00> : vector<12xf32>
    %52 = vector.multi_reduction <add>, %51, %cst_30 [1] : vector<12x12xf32> to vector<12xf32>
    %53 = vector.shape_cast %52 : vector<12xf32> to vector<12x1xf32>
    %54 = tpu.reciprocal %53 {approx = true} : vector<12x1xf32> -> vector<12x1xf32>
    %55 = vector.broadcast %54 : vector<12x1xf32> to vector<12x12xf32>
    %56 = arith.mulf %51, %55 : vector<12x12xf32>
    %57 = arith.truncf %56 : vector<12x12xf32> to vector<12x12xbf16>
    %58 = vector.extract_strided_slice %27 {offsets = [0, 8], sizes = [12, 8], strides = [1, 1]} : vector<12x32xf32> to vector<12x8xf32>
    %59 = arith.truncf %58 : vector<12x8xf32> to vector<12x8xbf16>
    %cst_31 = arith.constant dense<0.000000e+00> : vector<12x8xf32>
    %60 = tpu.matmul %57, %59, %cst_31 {dimension_numbers = #tpu.dot_dimension_numbers<[1], [0], [0], [1], [0, 0, 1, 1], [], []>} : vector<12x12xbf16>, vector<12x8xbf16>, vector<12x8xf32> -> vector<12x8xf32>
    %c0_32 = arith.constant 0 : index
    %c8 = arith.constant 8 : index
    %61 = vector.load %arg11[%c0_32, %c8] : memref<12x32xf32, #tpu.memory_space<vmem>>, vector<12x8xf32>
    tpu.vector_store %arg11[%c0_32, %c8], %60 {strides = array<i32>} : memref<12x32xf32, #tpu.memory_space<vmem>>, vector<12x8xf32>,
    %62 = vector.extract_strided_slice %25 {offsets = [0, 16], sizes = [12, 8], strides = [1, 1]} : vector<12x32xf32> to vector<12x8xf32>
    %63 = arith.truncf %62 : vector<12x8xf32> to vector<12x8xbf16>
    %64 = vector.extract_strided_slice %26 {offsets = [0, 16], sizes = [12, 8], strides = [1, 1]} : vector<12x32xf32> to vector<12x8xf32>
    %65 = arith.truncf %64 : vector<12x8xf32> to vector<12x8xbf16>
    %cst_33 = arith.constant dense<0.000000e+00> : vector<12x12xf32>
    %66 = tpu.matmul %63, %65, %cst_33 {dimension_numbers = #tpu.dot_dimension_numbers<[1], [1], [0], [0], [0, 0, 1, 0], [], []>} : vector<12x8xbf16>, vector<12x8xbf16>, vector<12x12xf32> -> vector<12x12xf32>
    %67 = arith.addf %66, %5 : vector<12x12xf32>
    %68 = math.exp %67 : vector<12x12xf32>
    %cst_34 = arith.constant dense<0.000000e+00> : vector<12xf32>
    %69 = vector.multi_reduction <add>, %68, %cst_34 [1] : vector<12x12xf32> to vector<12xf32>
    %70 = vector.shape_cast %69 : vector<12xf32> to vector<12x1xf32>
    %71 = tpu.reciprocal %70 {approx = true} : vector<12x1xf32> -> vector<12x1xf32>
    %72 = vector.broadcast %71 : vector<12x1xf32> to vector<12x12xf32>
    %73 = arith.mulf %68, %72 : vector<12x12xf32>
    %74 = arith.truncf %73 : vector<12x12xf32> to vector<12x12xbf16>
    %75 = vector.extract_strided_slice %27 {offsets = [0, 16], sizes = [12, 8], strides = [1, 1]} : vector<12x32xf32> to vector<12x8xf32>
    %76 = arith.truncf %75 : vector<12x8xf32> to vector<12x8xbf16>
    %cst_35 = arith.constant dense<0.000000e+00> : vector<12x8xf32>
    %77 = tpu.matmul %74, %76, %cst_35 {dimension_numbers = #tpu.dot_dimension_numbers<[1], [0], [0], [1], [0, 0, 1, 1], [], []>} : vector<12x12xbf16>, vector<12x8xbf16>, vector<12x8xf32> -> vector<12x8xf32>
    %c0_36 = arith.constant 0 : index
    %c16 = arith.constant 16 : index
    %78 = vector.load %arg11[%c0_36, %c16] : memref<12x32xf32, #tpu.memory_space<vmem>>, vector<12x8xf32>
    tpu.vector_store %arg11[%c0_36, %c16], %77 {strides = array<i32>} : memref<12x32xf32, #tpu.memory_space<vmem>>, vector<12x8xf32>,
    %79 = vector.extract_strided_slice %25 {offsets = [0, 24], sizes = [12, 8], strides = [1, 1]} : vector<12x32xf32> to vector<12x8xf32>
    %80 = arith.truncf %79 : vector<12x8xf32> to vector<12x8xbf16>
    %81 = vector.extract_strided_slice %26 {offsets = [0, 24], sizes = [12, 8], strides = [1, 1]} : vector<12x32xf32> to vector<12x8xf32>
    %82 = arith.truncf %81 : vector<12x8xf32> to vector<12x8xbf16>
    %cst_37 = arith.constant dense<0.000000e+00> : vector<12x12xf32>
    %83 = tpu.matmul %80, %82, %cst_37 {dimension_numbers = #tpu.dot_dimension_numbers<[1], [1], [0], [0], [0, 0, 1, 0], [], []>} : vector<12x8xbf16>, vector<12x8xbf16>, vector<12x12xf32> -> vector<12x12xf32>
    %84 = arith.addf %83, %5 : vector<12x12xf32>
    %85 = math.exp %84 : vector<12x12xf32>
    %cst_38 = arith.constant dense<0.000000e+00> : vector<12xf32>
    %86 = vector.multi_reduction <add>, %85, %cst_38 [1] : vector<12x12xf32> to vector<12xf32>
    %87 = vector.shape_cast %86 : vector<12xf32> to vector<12x1xf32>
    %88 = tpu.reciprocal %87 {approx = true} : vector<12x1xf32> -> vector<12x1xf32>
    %89 = vector.broadcast %88 : vector<12x1xf32> to vector<12x12xf32>
    %90 = arith.mulf %85, %89 : vector<12x12xf32>
    %91 = arith.truncf %90 : vector<12x12xf32> to vector<12x12xbf16>
    %92 = vector.extract_strided_slice %27 {offsets = [0, 24], sizes = [12, 8], strides = [1, 1]} : vector<12x32xf32> to vector<12x8xf32>
    %93 = arith.truncf %92 : vector<12x8xf32> to vector<12x8xbf16>
    %cst_39 = arith.constant dense<0.000000e+00> : vector<12x8xf32>
    %94 = tpu.matmul %91, %93, %cst_39 {dimension_numbers = #tpu.dot_dimension_numbers<[1], [0], [0], [1], [0, 0, 1, 1], [], []>} : vector<12x12xbf16>, vector<12x8xbf16>, vector<12x8xf32> -> vector<12x8xf32>
    %c0_40 = arith.constant 0 : index
    %c24 = arith.constant 24 : index
    %95 = vector.load %arg11[%c0_40, %c24] : memref<12x32xf32, #tpu.memory_space<vmem>>, vector<12x8xf32>
    tpu.vector_store %arg11[%c0_40, %c24], %94 {strides = array<i32>} : memref<12x32xf32, #tpu.memory_space<vmem>>, vector<12x8xf32>,
    %c0_41 = arith.constant 0 : index
    %c0_42 = arith.constant 0 : index
    %96 = vector.load %arg11[%c0_41, %c0_42] : memref<12x32xf32, #tpu.memory_space<vmem>>, vector<12x32xf32>
    %c0_43 = arith.constant 0 : index
    %c0_44 = arith.constant 0 : index
    %c128 = arith.constant 128 : index
    %97 = vector.load %arg6[%c0_43, %c0_44, %c128] : memref<2x32x1280xbf16, #tpu.memory_space<vmem>>, vector<1x32x32xbf16>
    %98 = vector.shape_cast %97 : vector<1x32x32xbf16> to vector<32x32xbf16>
    %99 = arith.truncf %96 : vector<12x32xf32> to vector<12x32xbf16>
    %cst_45 = arith.constant dense<0.000000e+00> : vector<12x32xf32>
    %100 = tpu.matmul %99, %98, %cst_45 {dimension_numbers = #tpu.dot_dimension_numbers<[1], [0], [0], [1], [0, 0, 1, 1], [], []>} : vector<12x32xbf16>, vector<32x32xbf16>, vector<12x32xf32> -> vector<12x32xf32>
    %c0_46 = arith.constant 0 : index
    %c0_47 = arith.constant 0 : index
    %c128_48 = arith.constant 128 : index
    %101 = vector.load %arg9[%c0_46, %c0_47, %c128_48] : memref<2x1x1792xf32, #tpu.memory_space<vmem>>, vector<1x1x32xf32>
    %102 = vector.shape_cast %101 : vector<1x1x32xf32> to vector<1x32xf32>
    %103 = vector.broadcast %102 : vector<1x32xf32> to vector<12x32xf32>
    %104 = arith.addf %100, %103 : vector<12x32xf32>
    %105 = vector.broadcast %7 : f32 to vector<12x32xf32>
    %106 = arith.mulf %104, %105 : vector<12x32xf32>
    %107 = arith.addf %3, %106 : vector<12x32xf32>
    %c0_49 = arith.constant 0 : index
    %c0_50 = arith.constant 0 : index
    %c256 = arith.constant 256 : index
    %108 = vector.load %arg6[%c0_49, %c0_50, %c256] : memref<2x32x1280xbf16, #tpu.memory_space<vmem>>, vector<1x32x96xbf16>
    %109 = vector.shape_cast %108 : vector<1x32x96xbf16> to vector<32x96xbf16>
    %110 = arith.truncf %107 : vector<12x32xf32> to vector<12x32xbf16>
    %cst_51 = arith.constant dense<0.000000e+00> : vector<12x96xf32>
    %111 = tpu.matmul %110, %109, %cst_51 {dimension_numbers = #tpu.dot_dimension_numbers<[1], [0], [0], [1], [0, 0, 1, 1], [], []>} : vector<12x32xbf16>, vector<32x96xbf16>, vector<12x96xf32> -> vector<12x96xf32>
    %c0_52 = arith.constant 0 : index
    %c0_53 = arith.constant 0 : index
    %c256_54 = arith.constant 256 : index
    %112 = vector.load %arg9[%c0_52, %c0_53, %c256_54] : memref<2x1x1792xf32, #tpu.memory_space<vmem>>, vector<1x1x96xf32>
    %113 = vector.shape_cast %112 : vector<1x1x96xf32> to vector<1x96xf32>
    %114 = vector.broadcast %113 : vector<1x96xf32> to vector<12x96xf32>
    %115 = arith.addf %111, %114 : vector<12x96xf32>
    %cst_55 = arith.constant 0.000000e+00 : f32
    %116 = vector.broadcast %cst_55 : f32 to vector<12x96xf32>
    %117 = arith.maximumf %115, %116 : vector<12x96xf32>
    %c0_56 = arith.constant 0 : index
    %c0_57 = arith.constant 0 : index
    %c0_58 = arith.constant 0 : index
    %118 = vector.load %arg7[%c0_56, %c0_57, %c0_58] : memref<2x96x384xbf16, #tpu.memory_space<vmem>>, vector<1x96x32xbf16>
    %119 = vector.shape_cast %118 : vector<1x96x32xbf16> to vector<96x32xbf16>
    %120 = arith.truncf %117 : vector<12x96xf32> to vector<12x96xbf16>
    %cst_59 = arith.constant dense<0.000000e+00> : vector<12x32xf32>
    %121 = tpu.matmul %120, %119, %cst_59 {dimension_numbers = #tpu.dot_dimension_numbers<[1], [0], [0], [1], [0, 0, 1, 1], [], []>} : vector<12x96xbf16>, vector<96x32xbf16>, vector<12x32xf32> -> vector<12x32xf32>
    %c0_60 = arith.constant 0 : index
    %c0_61 = arith.constant 0 : index
    %c1280 = arith.constant 1280 : index
    %122 = vector.load %arg9[%c0_60, %c0_61, %c1280] : memref<2x1x1792xf32, #tpu.memory_space<vmem>>, vector<1x1x32xf32>
    %123 = vector.shape_cast %122 : vector<1x1x32xf32> to vector<1x32xf32>
    %124 = vector.broadcast %123 : vector<1x32xf32> to vector<12x32xf32>
    %125 = arith.addf %121, %124 : vector<12x32xf32>
    %126 = vector.broadcast %8 : f32 to vector<12x32xf32>
    %127 = arith.mulf %125, %126 : vector<12x32xf32>
    %128 = arith.addf %107, %127 : vector<12x32xf32>
    %c0_62 = arith.constant 0 : index
    %c0_63 = arith.constant 0 : index
    %c384 = arith.constant 384 : index
    %129 = vector.load %arg6[%c0_62, %c0_63, %c384] : memref<2x32x1280xbf16, #tpu.memory_space<vmem>>, vector<1x32x64xbf16>
    %130 = vector.shape_cast %129 : vector<1x32x64xbf16> to vector<32x64xbf16>
    %131 = arith.truncf %128 : vector<12x32xf32> to vector<12x32xbf16>
    %cst_64 = arith.constant dense<0.000000e+00> : vector<12x64xf32>
    %132 = tpu.matmul %131, %130, %cst_64 {dimension_numbers = #tpu.dot_dimension_numbers<[1], [0], [0], [1], [0, 0, 1, 1], [], []>} : vector<12x32xbf16>, vector<32x64xbf16>, vector<12x64xf32> -> vector<12x64xf32>
    %c0_65 = arith.constant 0 : index
    %c0_66 = arith.constant 0 : index
    %c384_67 = arith.constant 384 : index
    %133 = vector.load %arg9[%c0_65, %c0_66, %c384_67] : memref<2x1x1792xf32, #tpu.memory_space<vmem>>, vector<1x1x64xf32>
    %134 = vector.shape_cast %133 : vector<1x1x64xf32> to vector<1x64xf32>
    %135 = vector.broadcast %134 : vector<1x64xf32> to vector<12x64xf32>
    %136 = arith.addf %132, %135 : vector<12x64xf32>
    %137 = vector.extract_strided_slice %136 {offsets = [0, 0], sizes = [12, 32], strides = [1, 1]} : vector<12x64xf32> to vector<12x32xf32>
    %138 = vector.extract_strided_slice %136 {offsets = [0, 32], sizes = [12, 32], strides = [1, 1]} : vector<12x64xf32> to vector<12x32xf32>
    %cst_68 = arith.constant 0.353553385 : f32
    %139 = vector.broadcast %cst_68 : f32 to vector<12x32xf32>
    %140 = arith.mulf %138, %139 : vector<12x32xf32>
    %141 = arith.truncf %137 : vector<12x32xf32> to vector<12x32xbf16>
    %cst_69 = arith.constant dense<0.000000e+00> : vector<4x32xf32>
    %142 = tpu.matmul %4, %141, %cst_69 {dimension_numbers = #tpu.dot_dimension_numbers<[1], [0], [0], [1], [0, 0, 1, 1], [], []>} : vector<4x12xbf16>, vector<12x32xbf16>, vector<4x32xf32> -> vector<4x32xf32>
    %c0_70 = arith.constant 0 : index
    %c0_71 = arith.constant 0 : index
    %c512 = arith.constant 512 : index
    %143 = vector.load %arg6[%c0_70, %c0_71, %c512] : memref<2x32x1280xbf16, #tpu.memory_space<vmem>>, vector<1x32x32xbf16>
    %144 = vector.shape_cast %143 : vector<1x32x32xbf16> to vector<32x32xbf16>
    %145 = arith.truncf %142 : vector<4x32xf32> to vector<4x32xbf16>
    %cst_72 = arith.constant dense<0.000000e+00> : vector<4x32xf32>
    %146 = tpu.matmul %145, %144, %cst_72 {dimension_numbers = #tpu.dot_dimension_numbers<[1], [0], [0], [1], [0, 0, 1, 1], [], []>} : vector<4x32xbf16>, vector<32x32xbf16>, vector<4x32xf32> -> vector<4x32xf32>
    %c0_73 = arith.constant 0 : index
    %c0_74 = arith.constant 0 : index
    %c512_75 = arith.constant 512 : index
    %147 = vector.load %arg9[%c0_73, %c0_74, %c512_75] : memref<2x1x1792xf32, #tpu.memory_space<vmem>>, vector<1x1x32xf32>
    %148 = vector.shape_cast %147 : vector<1x1x32xf32> to vector<1x32xf32>
    %149 = vector.broadcast %148 : vector<1x32xf32> to vector<4x32xf32>
    %150 = arith.addf %146, %149 : vector<4x32xf32>
    %151 = vector.broadcast %9 : f32 to vector<4x32xf32>
    %152 = arith.mulf %150, %151 : vector<4x32xf32>
    %153 = arith.addf %2, %152 : vector<4x32xf32>
    %c0_76 = arith.constant 0 : index
    %c0_77 = arith.constant 0 : index
    %c640 = arith.constant 640 : index
    %154 = vector.load %arg6[%c0_76, %c0_77, %c640] : memref<2x32x1280xbf16, #tpu.memory_space<vmem>>, vector<1x32x96xbf16>
    %155 = vector.shape_cast %154 : vector<1x32x96xbf16> to vector<32x96xbf16>
    %156 = arith.truncf %153 : vector<4x32xf32> to vector<4x32xbf16>
    %cst_78 = arith.constant dense<0.000000e+00> : vector<4x96xf32>
    %157 = tpu.matmul %156, %155, %cst_78 {dimension_numbers = #tpu.dot_dimension_numbers<[1], [0], [0], [1], [0, 0, 1, 1], [], []>} : vector<4x32xbf16>, vector<32x96xbf16>, vector<4x96xf32> -> vector<4x96xf32>
    %c0_79 = arith.constant 0 : index
    %c0_80 = arith.constant 0 : index
    %c640_81 = arith.constant 640 : index
    %158 = vector.load %arg9[%c0_79, %c0_80, %c640_81] : memref<2x1x1792xf32, #tpu.memory_space<vmem>>, vector<1x1x96xf32>
    %159 = vector.shape_cast %158 : vector<1x1x96xf32> to vector<1x96xf32>
    %160 = vector.broadcast %159 : vector<1x96xf32> to vector<4x96xf32>
    %161 = arith.addf %157, %160 : vector<4x96xf32>
    %cst_82 = arith.constant 0.000000e+00 : f32
    %162 = vector.broadcast %cst_82 : f32 to vector<4x96xf32>
    %163 = arith.maximumf %161, %162 : vector<4x96xf32>
    %c0_83 = arith.constant 0 : index
    %c0_84 = arith.constant 0 : index
    %c128_85 = arith.constant 128 : index
    %164 = vector.load %arg7[%c0_83, %c0_84, %c128_85] : memref<2x96x384xbf16, #tpu.memory_space<vmem>>, vector<1x96x32xbf16>
    %165 = vector.shape_cast %164 : vector<1x96x32xbf16> to vector<96x32xbf16>
    %166 = arith.truncf %163 : vector<4x96xf32> to vector<4x96xbf16>
    %cst_86 = arith.constant dense<0.000000e+00> : vector<4x32xf32>
    %167 = tpu.matmul %166, %165, %cst_86 {dimension_numbers = #tpu.dot_dimension_numbers<[1], [0], [0], [1], [0, 0, 1, 1], [], []>} : vector<4x96xbf16>, vector<96x32xbf16>, vector<4x32xf32> -> vector<4x32xf32>
    %c0_87 = arith.constant 0 : index
    %c0_88 = arith.constant 0 : index
    %c1408 = arith.constant 1408 : index
    %168 = vector.load %arg9[%c0_87, %c0_88, %c1408] : memref<2x1x1792xf32, #tpu.memory_space<vmem>>, vector<1x1x32xf32>
    %169 = vector.shape_cast %168 : vector<1x1x32xf32> to vector<1x32xf32>
    %170 = vector.broadcast %169 : vector<1x32xf32> to vector<4x32xf32>
    %171 = arith.addf %167, %170 : vector<4x32xf32>
    %172 = vector.broadcast %10 : f32 to vector<4x32xf32>
    %173 = arith.mulf %171, %172 : vector<4x32xf32>
    %174 = arith.addf %153, %173 : vector<4x32xf32>
    %c0_89 = arith.constant 0 : index
    %c0_90 = arith.constant 0 : index
    %c768 = arith.constant 768 : index
    %175 = vector.load %arg6[%c0_89, %c0_90, %c768] : memref<2x32x1280xbf16, #tpu.memory_space<vmem>>, vector<1x32x64xbf16>
    %176 = vector.shape_cast %175 : vector<1x32x64xbf16> to vector<32x64xbf16>
    %177 = arith.truncf %174 : vector<4x32xf32> to vector<4x32xbf16>
    %cst_91 = arith.constant dense<0.000000e+00> : vector<4x64xf32>
    %178 = tpu.matmul %177, %176, %cst_91 {dimension_numbers = #tpu.dot_dimension_numbers<[1], [0], [0], [1], [0, 0, 1, 1], [], []>} : vector<4x32xbf16>, vector<32x64xbf16>, vector<4x64xf32> -> vector<4x64xf32>
    %c0_92 = arith.constant 0 : index
    %c0_93 = arith.constant 0 : index
    %c768_94 = arith.constant 768 : index
    %179 = vector.load %arg9[%c0_92, %c0_93, %c768_94] : memref<2x1x1792xf32, #tpu.memory_space<vmem>>, vector<1x1x64xf32>
    %180 = vector.shape_cast %179 : vector<1x1x64xf32> to vector<1x64xf32>
    %181 = vector.broadcast %180 : vector<1x64xf32> to vector<4x64xf32>
    %182 = arith.addf %178, %181 : vector<4x64xf32>
    %183 = vector.extract_strided_slice %182 {offsets = [0, 0], sizes = [4, 32], strides = [1, 1]} : vector<4x64xf32> to vector<4x32xf32>
    %184 = vector.extract_strided_slice %182 {offsets = [0, 32], sizes = [4, 32], strides = [1, 1]} : vector<4x64xf32> to vector<4x32xf32>
    %185 = vector.extract_strided_slice %140 {offsets = [0, 0], sizes = [12, 8], strides = [1, 1]} : vector<12x32xf32> to vector<12x8xf32>
    %186 = arith.truncf %185 : vector<12x8xf32> to vector<12x8xbf16>
    %187 = vector.extract_strided_slice %183 {offsets = [0, 0], sizes = [4, 8], strides = [1, 1]} : vector<4x32xf32> to vector<4x8xf32>
    %188 = arith.truncf %187 : vector<4x8xf32> to vector<4x8xbf16>
    %cst_95 = arith.constant dense<0.000000e+00> : vector<12x4xf32>
    %189 = tpu.matmul %186, %188, %cst_95 {dimension_numbers = #tpu.dot_dimension_numbers<[1], [1], [0], [0], [0, 0, 1, 0], [], []>} : vector<12x8xbf16>, vector<4x8xbf16>, vector<12x4xf32> -> vector<12x4xf32>
    %190 = arith.addf %189, %6 : vector<12x4xf32>
    %191 = math.exp %190 : vector<12x4xf32>
    %cst_96 = arith.constant dense<0.000000e+00> : vector<12xf32>
    %192 = vector.multi_reduction <add>, %191, %cst_96 [1] : vector<12x4xf32> to vector<12xf32>
    %193 = vector.shape_cast %192 : vector<12xf32> to vector<12x1xf32>
    %194 = tpu.reciprocal %193 {approx = true} : vector<12x1xf32> -> vector<12x1xf32>
    %195 = vector.broadcast %194 : vector<12x1xf32> to vector<12x4xf32>
    %196 = arith.mulf %191, %195 : vector<12x4xf32>
    %197 = arith.truncf %196 : vector<12x4xf32> to vector<12x4xbf16>
    %198 = vector.extract_strided_slice %184 {offsets = [0, 0], sizes = [4, 8], strides = [1, 1]} : vector<4x32xf32> to vector<4x8xf32>
    %199 = arith.truncf %198 : vector<4x8xf32> to vector<4x8xbf16>
    %cst_97 = arith.constant dense<0.000000e+00> : vector<12x8xf32>
    %200 = tpu.matmul %197, %199, %cst_97 {dimension_numbers = #tpu.dot_dimension_numbers<[1], [0], [0], [1], [0, 0, 1, 1], [], []>} : vector<12x4xbf16>, vector<4x8xbf16>, vector<12x8xf32> -> vector<12x8xf32>
    %c0_98 = arith.constant 0 : index
    %c0_99 = arith.constant 0 : index
    %201 = vector.load %arg11[%c0_98, %c0_99] : memref<12x32xf32, #tpu.memory_space<vmem>>, vector<12x8xf32>
    tpu.vector_store %arg11[%c0_98, %c0_99], %200 {strides = array<i32>} : memref<12x32xf32, #tpu.memory_space<vmem>>, vector<12x8xf32>,
    %202 = vector.extract_strided_slice %140 {offsets = [0, 8], sizes = [12, 8], strides = [1, 1]} : vector<12x32xf32> to vector<12x8xf32>
    %203 = arith.truncf %202 : vector<12x8xf32> to vector<12x8xbf16>
    %204 = vector.extract_strided_slice %183 {offsets = [0, 8], sizes = [4, 8], strides = [1, 1]} : vector<4x32xf32> to vector<4x8xf32>
    %205 = arith.truncf %204 : vector<4x8xf32> to vector<4x8xbf16>
    %cst_100 = arith.constant dense<0.000000e+00> : vector<12x4xf32>
    %206 = tpu.matmul %203, %205, %cst_100 {dimension_numbers = #tpu.dot_dimension_numbers<[1], [1], [0], [0], [0, 0, 1, 0], [], []>} : vector<12x8xbf16>, vector<4x8xbf16>, vector<12x4xf32> -> vector<12x4xf32>
    %207 = arith.addf %206, %6 : vector<12x4xf32>
    %208 = math.exp %207 : vector<12x4xf32>
    %cst_101 = arith.constant dense<0.000000e+00> : vector<12xf32>
    %209 = vector.multi_reduction <add>, %208, %cst_101 [1] : vector<12x4xf32> to vector<12xf32>
    %210 = vector.shape_cast %209 : vector<12xf32> to vector<12x1xf32>
    %211 = tpu.reciprocal %210 {approx = true} : vector<12x1xf32> -> vector<12x1xf32>
    %212 = vector.broadcast %211 : vector<12x1xf32> to vector<12x4xf32>
    %213 = arith.mulf %208, %212 : vector<12x4xf32>
    %214 = arith.truncf %213 : vector<12x4xf32> to vector<12x4xbf16>
    %215 = vector.extract_strided_slice %184 {offsets = [0, 8], sizes = [4, 8], strides = [1, 1]} : vector<4x32xf32> to vector<4x8xf32>
    %216 = arith.truncf %215 : vector<4x8xf32> to vector<4x8xbf16>
    %cst_102 = arith.constant dense<0.000000e+00> : vector<12x8xf32>
    %217 = tpu.matmul %214, %216, %cst_102 {dimension_numbers = #tpu.dot_dimension_numbers<[1], [0], [0], [1], [0, 0, 1, 1], [], []>} : vector<12x4xbf16>, vector<4x8xbf16>, vector<12x8xf32> -> vector<12x8xf32>
    %c0_103 = arith.constant 0 : index
    %c8_104 = arith.constant 8 : index
    %218 = vector.load %arg11[%c0_103, %c8_104] : memref<12x32xf32, #tpu.memory_space<vmem>>, vector<12x8xf32>
    tpu.vector_store %arg11[%c0_103, %c8_104], %217 {strides = array<i32>} : memref<12x32xf32, #tpu.memory_space<vmem>>, vector<12x8xf32>,
    %219 = vector.extract_strided_slice %140 {offsets = [0, 16], sizes = [12, 8], strides = [1, 1]} : vector<12x32xf32> to vector<12x8xf32>
    %220 = arith.truncf %219 : vector<12x8xf32> to vector<12x8xbf16>
    %221 = vector.extract_strided_slice %183 {offsets = [0, 16], sizes = [4, 8], strides = [1, 1]} : vector<4x32xf32> to vector<4x8xf32>
    %222 = arith.truncf %221 : vector<4x8xf32> to vector<4x8xbf16>
    %cst_105 = arith.constant dense<0.000000e+00> : vector<12x4xf32>
    %223 = tpu.matmul %220, %222, %cst_105 {dimension_numbers = #tpu.dot_dimension_numbers<[1], [1], [0], [0], [0, 0, 1, 0], [], []>} : vector<12x8xbf16>, vector<4x8xbf16>, vector<12x4xf32> -> vector<12x4xf32>
    %224 = arith.addf %223, %6 : vector<12x4xf32>
    %225 = math.exp %224 : vector<12x4xf32>
    %cst_106 = arith.constant dense<0.000000e+00> : vector<12xf32>
    %226 = vector.multi_reduction <add>, %225, %cst_106 [1] : vector<12x4xf32> to vector<12xf32>
    %227 = vector.shape_cast %226 : vector<12xf32> to vector<12x1xf32>
    %228 = tpu.reciprocal %227 {approx = true} : vector<12x1xf32> -> vector<12x1xf32>
    %229 = vector.broadcast %228 : vector<12x1xf32> to vector<12x4xf32>
    %230 = arith.mulf %225, %229 : vector<12x4xf32>
    %231 = arith.truncf %230 : vector<12x4xf32> to vector<12x4xbf16>
    %232 = vector.extract_strided_slice %184 {offsets = [0, 16], sizes = [4, 8], strides = [1, 1]} : vector<4x32xf32> to vector<4x8xf32>
    %233 = arith.truncf %232 : vector<4x8xf32> to vector<4x8xbf16>
    %cst_107 = arith.constant dense<0.000000e+00> : vector<12x8xf32>
    %234 = tpu.matmul %231, %233, %cst_107 {dimension_numbers = #tpu.dot_dimension_numbers<[1], [0], [0], [1], [0, 0, 1, 1], [], []>} : vector<12x4xbf16>, vector<4x8xbf16>, vector<12x8xf32> -> vector<12x8xf32>
    %c0_108 = arith.constant 0 : index
    %c16_109 = arith.constant 16 : index
    %235 = vector.load %arg11[%c0_108, %c16_109] : memref<12x32xf32, #tpu.memory_space<vmem>>, vector<12x8xf32>
    tpu.vector_store %arg11[%c0_108, %c16_109], %234 {strides = array<i32>} : memref<12x32xf32, #tpu.memory_space<vmem>>, vector<12x8xf32>,
    %236 = vector.extract_strided_slice %140 {offsets = [0, 24], sizes = [12, 8], strides = [1, 1]} : vector<12x32xf32> to vector<12x8xf32>
    %237 = arith.truncf %236 : vector<12x8xf32> to vector<12x8xbf16>
    %238 = vector.extract_strided_slice %183 {offsets = [0, 24], sizes = [4, 8], strides = [1, 1]} : vector<4x32xf32> to vector<4x8xf32>
    %239 = arith.truncf %238 : vector<4x8xf32> to vector<4x8xbf16>
    %cst_110 = arith.constant dense<0.000000e+00> : vector<12x4xf32>
    %240 = tpu.matmul %237, %239, %cst_110 {dimension_numbers = #tpu.dot_dimension_numbers<[1], [1], [0], [0], [0, 0, 1, 0], [], []>} : vector<12x8xbf16>, vector<4x8xbf16>, vector<12x4xf32> -> vector<12x4xf32>
    %241 = arith.addf %240, %6 : vector<12x4xf32>
    %242 = math.exp %241 : vector<12x4xf32>
    %cst_111 = arith.constant dense<0.000000e+00> : vector<12xf32>
    %243 = vector.multi_reduction <add>, %242, %cst_111 [1] : vector<12x4xf32> to vector<12xf32>
    %244 = vector.shape_cast %243 : vector<12xf32> to vector<12x1xf32>
    %245 = tpu.reciprocal %244 {approx = true} : vector<12x1xf32> -> vector<12x1xf32>
    %246 = vector.broadcast %245 : vector<12x1xf32> to vector<12x4xf32>
    %247 = arith.mulf %242, %246 : vector<12x4xf32>
    %248 = arith.truncf %247 : vector<12x4xf32> to vector<12x4xbf16>
    %249 = vector.extract_strided_slice %184 {offsets = [0, 24], sizes = [4, 8], strides = [1, 1]} : vector<4x32xf32> to vector<4x8xf32>
    %250 = arith.truncf %249 : vector<4x8xf32> to vector<4x8xbf16>
    %cst_112 = arith.constant dense<0.000000e+00> : vector<12x8xf32>
    %251 = tpu.matmul %248, %250, %cst_112 {dimension_numbers = #tpu.dot_dimension_numbers<[1], [0], [0], [1], [0, 0, 1, 1], [], []>} : vector<12x4xbf16>, vector<4x8xbf16>, vector<12x8xf32> -> vector<12x8xf32>
    %c0_113 = arith.constant 0 : index
    %c24_114 = arith.constant 24 : index
    %252 = vector.load %arg11[%c0_113, %c24_114] : memref<12x32xf32, #tpu.memory_space<vmem>>, vector<12x8xf32>
    tpu.vector_store %arg11[%c0_113, %c24_114], %251 {strides = array<i32>} : memref<12x32xf32, #tpu.memory_space<vmem>>, vector<12x8xf32>,
    %c0_115 = arith.constant 0 : index
    %c0_116 = arith.constant 0 : index
    %253 = vector.load %arg11[%c0_115, %c0_116] : memref<12x32xf32, #tpu.memory_space<vmem>>, vector<12x32xf32>
    %c0_117 = arith.constant 0 : index
    %c0_118 = arith.constant 0 : index
    %c896 = arith.constant 896 : index
    %254 = vector.load %arg6[%c0_117, %c0_118, %c896] : memref<2x32x1280xbf16, #tpu.memory_space<vmem>>, vector<1x32x32xbf16>
    %255 = vector.shape_cast %254 : vector<1x32x32xbf16> to vector<32x32xbf16>
    %256 = arith.truncf %253 : vector<12x32xf32> to vector<12x32xbf16>
    %cst_119 = arith.constant dense<0.000000e+00> : vector<12x32xf32>
    %257 = tpu.matmul %256, %255, %cst_119 {dimension_numbers = #tpu.dot_dimension_numbers<[1], [0], [0], [1], [0, 0, 1, 1], [], []>} : vector<12x32xbf16>, vector<32x32xbf16>, vector<12x32xf32> -> vector<12x32xf32>
    %c0_120 = arith.constant 0 : index
    %c0_121 = arith.constant 0 : index
    %c896_122 = arith.constant 896 : index
    %258 = vector.load %arg9[%c0_120, %c0_121, %c896_122] : memref<2x1x1792xf32, #tpu.memory_space<vmem>>, vector<1x1x32xf32>
    %259 = vector.shape_cast %258 : vector<1x1x32xf32> to vector<1x32xf32>
    %260 = vector.broadcast %259 : vector<1x32xf32> to vector<12x32xf32>
    %261 = arith.addf %257, %260 : vector<12x32xf32>
    %262 = vector.broadcast %11 : f32 to vector<12x32xf32>
    %263 = arith.mulf %261, %262 : vector<12x32xf32>
    %264 = arith.addf %128, %263 : vector<12x32xf32>
    %c0_123 = arith.constant 0 : index
    %c0_124 = arith.constant 0 : index
    %c1024 = arith.constant 1024 : index
    %265 = vector.load %arg6[%c0_123, %c0_124, %c1024] : memref<2x32x1280xbf16, #tpu.memory_space<vmem>>, vector<1x32x96xbf16>
    %266 = vector.shape_cast %265 : vector<1x32x96xbf16> to vector<32x96xbf16>
    %267 = arith.truncf %264 : vector<12x32xf32> to vector<12x32xbf16>
    %cst_125 = arith.constant dense<0.000000e+00> : vector<12x96xf32>
    %268 = tpu.matmul %267, %266, %cst_125 {dimension_numbers = #tpu.dot_dimension_numbers<[1], [0], [0], [1], [0, 0, 1, 1], [], []>} : vector<12x32xbf16>, vector<32x96xbf16>, vector<12x96xf32> -> vector<12x96xf32>
    %c0_126 = arith.constant 0 : index
    %c0_127 = arith.constant 0 : index
    %c1024_128 = arith.constant 1024 : index
    %269 = vector.load %arg9[%c0_126, %c0_127, %c1024_128] : memref<2x1x1792xf32, #tpu.memory_space<vmem>>, vector<1x1x96xf32>
    %270 = vector.shape_cast %269 : vector<1x1x96xf32> to vector<1x96xf32>
    %271 = vector.broadcast %270 : vector<1x96xf32> to vector<12x96xf32>
    %272 = arith.addf %268, %271 : vector<12x96xf32>
    %cst_129 = arith.constant 0.000000e+00 : f32
    %273 = vector.broadcast %cst_129 : f32 to vector<12x96xf32>
    %274 = arith.maximumf %272, %273 : vector<12x96xf32>
    %c0_130 = arith.constant 0 : index
    %c0_131 = arith.constant 0 : index
    %c256_132 = arith.constant 256 : index
    %275 = vector.load %arg7[%c0_130, %c0_131, %c256_132] : memref<2x96x384xbf16, #tpu.memory_space<vmem>>, vector<1x96x32xbf16>
    %276 = vector.shape_cast %275 : vector<1x96x32xbf16> to vector<96x32xbf16>
    %277 = arith.truncf %274 : vector<12x96xf32> to vector<12x96xbf16>
    %cst_133 = arith.constant dense<0.000000e+00> : vector<12x32xf32>
    %278 = tpu.matmul %277, %276, %cst_133 {dimension_numbers = #tpu.dot_dimension_numbers<[1], [0], [0], [1], [0, 0, 1, 1], [], []>} : vector<12x96xbf16>, vector<96x32xbf16>, vector<12x32xf32> -> vector<12x32xf32>
    %c0_134 = arith.constant 0 : index
    %c0_135 = arith.constant 0 : index
    %c1536 = arith.constant 1536 : index
    %279 = vector.load %arg9[%c0_134, %c0_135, %c1536] : memref<2x1x1792xf32, #tpu.memory_space<vmem>>, vector<1x1x32xf32>
    %280 = vector.shape_cast %279 : vector<1x1x32xf32> to vector<1x32xf32>
    %281 = vector.broadcast %280 : vector<1x32xf32> to vector<12x32xf32>
    %282 = arith.addf %278, %281 : vector<12x32xf32>
    %283 = vector.broadcast %12 : f32 to vector<12x32xf32>
    %284 = arith.mulf %282, %283 : vector<12x32xf32>
    %285 = arith.addf %264, %284 : vector<12x32xf32>
    %286 = vector.broadcast %13 : f32 to vector<4x32xf32>
    %287 = arith.mulf %174, %286 : vector<4x32xf32>
    %288 = arith.addf %287, %2 : vector<4x32xf32>
    %c0_136 = arith.constant 0 : index
    %c0_137 = arith.constant 0 : index
    %289 = vector.load %arg12[%c0_136, %c0_137] : memref<16x32xf32, #tpu.memory_space<vmem>>, vector<4x32xf32>
    tpu.vector_store %arg12[%c0_136, %c0_137], %288 {strides = array<i32>} : memref<16x32xf32, #tpu.memory_space<vmem>>, vector<4x32xf32>,
    %290 = vector.broadcast %13 : f32 to vector<12x32xf32>
    %291 = arith.mulf %285, %290 : vector<12x32xf32>
    %292 = arith.addf %291, %3 : vector<12x32xf32>
    %c4_138 = arith.constant 4 : index
    %c0_139 = arith.constant 0 : index
    %293 = vector.load %arg12[%c4_138, %c0_139] : memref<16x32xf32, #tpu.memory_space<vmem>>, vector<12x32xf32>
    tpu.vector_store %arg12[%c4_138, %c0_139], %292 {strides = array<i32>} : memref<16x32xf32, #tpu.memory_space<vmem>>, vector<12x32xf32>,
    %c0_140 = arith.constant 0 : index
    %c0_141 = arith.constant 0 : index
    %294 = vector.load %arg12[%c0_140, %c0_141] : memref<16x32xf32, #tpu.memory_space<vmem>>, vector<16x32xf32>
    %c0_142 = arith.constant 0 : index
    %c0_143 = arith.constant 0 : index
    %c1152 = arith.constant 1152 : index
    %295 = vector.load %arg6[%c0_142, %c0_143, %c1152] : memref<2x32x1280xbf16, #tpu.memory_space<vmem>>, vector<1x32x64xbf16>
    %296 = vector.shape_cast %295 : vector<1x32x64xbf16> to vector<32x64xbf16>
    %297 = arith.truncf %294 : vector<16x32xf32> to vector<16x32xbf16>
    %cst_144 = arith.constant dense<0.000000e+00> : vector<16x64xf32>
    %298 = tpu.matmul %297, %296, %cst_144 {dimension_numbers = #tpu.dot_dimension_numbers<[1], [0], [0], [1], [0, 0, 1, 1], [], []>} : vector<16x32xbf16>, vector<32x64xbf16>, vector<16x64xf32> -> vector<16x64xf32>
    %c0_145 = arith.constant 0 : index
    %c0_146 = arith.constant 0 : index
    %c1152_147 = arith.constant 1152 : index
    %299 = vector.load %arg9[%c0_145, %c0_146, %c1152_147] : memref<2x1x1792xf32, #tpu.memory_space<vmem>>, vector<1x1x64xf32>
    %300 = vector.shape_cast %299 : vector<1x1x64xf32> to vector<1x64xf32>
    %301 = vector.broadcast %300 : vector<1x64xf32> to vector<16x64xf32>
    %302 = arith.addf %298, %301 : vector<16x64xf32>
    %cst_148 = arith.constant 0.000000e+00 : f32
    %303 = vector.broadcast %cst_148 : f32 to vector<16x64xf32>
    %304 = arith.maximumf %302, %303 : vector<16x64xf32>
    %305 = arith.truncf %304 : vector<16x64xf32> to vector<16x64xbf16>
    %c0_149 = arith.constant 0 : index
    %c0_150 = arith.constant 0 : index
    %c0_151 = arith.constant 0 : index
    %306 = vector.load %arg8[%c0_149, %c0_150, %c0_151] : memref<2x64x32xbf16, #tpu.memory_space<vmem>>, vector<1x64x32xbf16>
    %307 = vector.shape_cast %306 : vector<1x64x32xbf16> to vector<64x32xbf16>
    %cst_152 = arith.constant dense<0.000000e+00> : vector<16x32xf32>
    %308 = tpu.matmul %305, %307, %cst_152 {dimension_numbers = #tpu.dot_dimension_numbers<[1], [0], [0], [1], [0, 0, 1, 1], [], []>} : vector<16x64xbf16>, vector<64x32xbf16>, vector<16x32xf32> -> vector<16x32xf32>
    %c0_153 = arith.constant 0 : index
    %c0_154 = arith.constant 0 : index
    %c1664 = arith.constant 1664 : index
    %309 = vector.load %arg9[%c0_153, %c0_154, %c1664] : memref<2x1x1792xf32, #tpu.memory_space<vmem>>, vector<1x1x32xf32>
    %310 = vector.shape_cast %309 : vector<1x1x32xf32> to vector<1x32xf32>
    %311 = vector.broadcast %310 : vector<1x32xf32> to vector<16x32xf32>
    %312 = arith.addf %308, %311 : vector<16x32xf32>
    %313 = vector.broadcast %14 : f32 to vector<16x32xf32>
    %314 = arith.mulf %312, %313 : vector<16x32xf32>
    %315 = arith.addf %314, %294 : vector<16x32xf32>
    %316 = vector.extract_strided_slice %315 {offsets = [0, 0], sizes = [4, 32], strides = [1, 1]} : vector<16x32xf32> to vector<4x32xf32>
    %317 = vector.extract_strided_slice %315 {offsets = [4, 0], sizes = [12, 32], strides = [1, 1]} : vector<16x32xf32> to vector<12x32xf32>
    %c1_155 = arith.constant 1 : index
    %c0_156 = arith.constant 0 : index
    %318 = memref.load %arg1[%c1_155, %c0_156] : memref<2x8xf32, #tpu.memory_space<smem>>
    %c1_157 = arith.constant 1 : index
    %c1_158 = arith.constant 1 : index
    %319 = memref.load %arg1[%c1_157, %c1_158] : memref<2x8xf32, #tpu.memory_space<smem>>
    %c1_159 = arith.constant 1 : index
    %c2_160 = arith.constant 2 : index
    %320 = memref.load %arg1[%c1_159, %c2_160] : memref<2x8xf32, #tpu.memory_space<smem>>
    %c1_161 = arith.constant 1 : index
    %c3_162 = arith.constant 3 : index
    %321 = memref.load %arg1[%c1_161, %c3_162] : memref<2x8xf32, #tpu.memory_space<smem>>
    %c1_163 = arith.constant 1 : index
    %c4_164 = arith.constant 4 : index
    %322 = memref.load %arg1[%c1_163, %c4_164] : memref<2x8xf32, #tpu.memory_space<smem>>
    %c1_165 = arith.constant 1 : index
    %c5_166 = arith.constant 5 : index
    %323 = memref.load %arg1[%c1_165, %c5_166] : memref<2x8xf32, #tpu.memory_space<smem>>
    %c1_167 = arith.constant 1 : index
    %c6_168 = arith.constant 6 : index
    %324 = memref.load %arg1[%c1_167, %c6_168] : memref<2x8xf32, #tpu.memory_space<smem>>
    %c1_169 = arith.constant 1 : index
    %c7_170 = arith.constant 7 : index
    %325 = memref.load %arg1[%c1_169, %c7_170] : memref<2x8xf32, #tpu.memory_space<smem>>
    %c1_171 = arith.constant 1 : index
    %c0_172 = arith.constant 0 : index
    %c0_173 = arith.constant 0 : index
    %326 = vector.load %arg6[%c1_171, %c0_172, %c0_173] : memref<2x32x1280xbf16, #tpu.memory_space<vmem>>, vector<1x32x96xbf16>
    %327 = vector.shape_cast %326 : vector<1x32x96xbf16> to vector<32x96xbf16>
    %328 = arith.truncf %317 : vector<12x32xf32> to vector<12x32xbf16>
    %cst_174 = arith.constant dense<0.000000e+00> : vector<12x96xf32>
    %329 = tpu.matmul %328, %327, %cst_174 {dimension_numbers = #tpu.dot_dimension_numbers<[1], [0], [0], [1], [0, 0, 1, 1], [], []>} : vector<12x32xbf16>, vector<32x96xbf16>, vector<12x96xf32> -> vector<12x96xf32>
    %c1_175 = arith.constant 1 : index
    %c0_176 = arith.constant 0 : index
    %c0_177 = arith.constant 0 : index
    %330 = vector.load %arg9[%c1_175, %c0_176, %c0_177] : memref<2x1x1792xf32, #tpu.memory_space<vmem>>, vector<1x1x96xf32>
    %331 = vector.shape_cast %330 : vector<1x1x96xf32> to vector<1x96xf32>
    %332 = vector.broadcast %331 : vector<1x96xf32> to vector<12x96xf32>
    %333 = arith.addf %329, %332 : vector<12x96xf32>
    %334 = vector.extract_strided_slice %333 {offsets = [0, 0], sizes = [12, 32], strides = [1, 1]} : vector<12x96xf32> to vector<12x32xf32>
    %cst_178 = arith.constant 0.353553385 : f32
    %335 = vector.broadcast %cst_178 : f32 to vector<12x32xf32>
    %336 = arith.mulf %334, %335 : vector<12x32xf32>
    %337 = vector.extract_strided_slice %333 {offsets = [0, 32], sizes = [12, 32], strides = [1, 1]} : vector<12x96xf32> to vector<12x32xf32>
    %338 = vector.extract_strided_slice %333 {offsets = [0, 64], sizes = [12, 32], strides = [1, 1]} : vector<12x96xf32> to vector<12x32xf32>
    %339 = vector.extract_strided_slice %336 {offsets = [0, 0], sizes = [12, 8], strides = [1, 1]} : vector<12x32xf32> to vector<12x8xf32>
    %340 = arith.truncf %339 : vector<12x8xf32> to vector<12x8xbf16>
    %341 = vector.extract_strided_slice %337 {offsets = [0, 0], sizes = [12, 8], strides = [1, 1]} : vector<12x32xf32> to vector<12x8xf32>
    %342 = arith.truncf %341 : vector<12x8xf32> to vector<12x8xbf16>
    %cst_179 = arith.constant dense<0.000000e+00> : vector<12x12xf32>
    %343 = tpu.matmul %340, %342, %cst_179 {dimension_numbers = #tpu.dot_dimension_numbers<[1], [1], [0], [0], [0, 0, 1, 0], [], []>} : vector<12x8xbf16>, vector<12x8xbf16>, vector<12x12xf32> -> vector<12x12xf32>
    %344 = arith.addf %343, %5 : vector<12x12xf32>
    %345 = math.exp %344 : vector<12x12xf32>
    %cst_180 = arith.constant dense<0.000000e+00> : vector<12xf32>
    %346 = vector.multi_reduction <add>, %345, %cst_180 [1] : vector<12x12xf32> to vector<12xf32>
    %347 = vector.shape_cast %346 : vector<12xf32> to vector<12x1xf32>
    %348 = tpu.reciprocal %347 {approx = true} : vector<12x1xf32> -> vector<12x1xf32>
    %349 = vector.broadcast %348 : vector<12x1xf32> to vector<12x12xf32>
    %350 = arith.mulf %345, %349 : vector<12x12xf32>
    %351 = arith.truncf %350 : vector<12x12xf32> to vector<12x12xbf16>
    %352 = vector.extract_strided_slice %338 {offsets = [0, 0], sizes = [12, 8], strides = [1, 1]} : vector<12x32xf32> to vector<12x8xf32>
    %353 = arith.truncf %352 : vector<12x8xf32> to vector<12x8xbf16>
    %cst_181 = arith.constant dense<0.000000e+00> : vector<12x8xf32>
    %354 = tpu.matmul %351, %353, %cst_181 {dimension_numbers = #tpu.dot_dimension_numbers<[1], [0], [0], [1], [0, 0, 1, 1], [], []>} : vector<12x12xbf16>, vector<12x8xbf16>, vector<12x8xf32> -> vector<12x8xf32>
    %c0_182 = arith.constant 0 : index
    %c0_183 = arith.constant 0 : index
    %355 = vector.load %arg11[%c0_182, %c0_183] : memref<12x32xf32, #tpu.memory_space<vmem>>, vector<12x8xf32>
    tpu.vector_store %arg11[%c0_182, %c0_183], %354 {strides = array<i32>} : memref<12x32xf32, #tpu.memory_space<vmem>>, vector<12x8xf32>,
    %356 = vector.extract_strided_slice %336 {offsets = [0, 8], sizes = [12, 8], strides = [1, 1]} : vector<12x32xf32> to vector<12x8xf32>
    %357 = arith.truncf %356 : vector<12x8xf32> to vector<12x8xbf16>
    %358 = vector.extract_strided_slice %337 {offsets = [0, 8], sizes = [12, 8], strides = [1, 1]} : vector<12x32xf32> to vector<12x8xf32>
    %359 = arith.truncf %358 : vector<12x8xf32> to vector<12x8xbf16>
    %cst_184 = arith.constant dense<0.000000e+00> : vector<12x12xf32>
    %360 = tpu.matmul %357, %359, %cst_184 {dimension_numbers = #tpu.dot_dimension_numbers<[1], [1], [0], [0], [0, 0, 1, 0], [], []>} : vector<12x8xbf16>, vector<12x8xbf16>, vector<12x12xf32> -> vector<12x12xf32>
    %361 = arith.addf %360, %5 : vector<12x12xf32>
    %362 = math.exp %361 : vector<12x12xf32>
    %cst_185 = arith.constant dense<0.000000e+00> : vector<12xf32>
    %363 = vector.multi_reduction <add>, %362, %cst_185 [1] : vector<12x12xf32> to vector<12xf32>
    %364 = vector.shape_cast %363 : vector<12xf32> to vector<12x1xf32>
    %365 = tpu.reciprocal %364 {approx = true} : vector<12x1xf32> -> vector<12x1xf32>
    %366 = vector.broadcast %365 : vector<12x1xf32> to vector<12x12xf32>
    %367 = arith.mulf %362, %366 : vector<12x12xf32>
    %368 = arith.truncf %367 : vector<12x12xf32> to vector<12x12xbf16>
    %369 = vector.extract_strided_slice %338 {offsets = [0, 8], sizes = [12, 8], strides = [1, 1]} : vector<12x32xf32> to vector<12x8xf32>
    %370 = arith.truncf %369 : vector<12x8xf32> to vector<12x8xbf16>
    %cst_186 = arith.constant dense<0.000000e+00> : vector<12x8xf32>
    %371 = tpu.matmul %368, %370, %cst_186 {dimension_numbers = #tpu.dot_dimension_numbers<[1], [0], [0], [1], [0, 0, 1, 1], [], []>} : vector<12x12xbf16>, vector<12x8xbf16>, vector<12x8xf32> -> vector<12x8xf32>
    %c0_187 = arith.constant 0 : index
    %c8_188 = arith.constant 8 : index
    %372 = vector.load %arg11[%c0_187, %c8_188] : memref<12x32xf32, #tpu.memory_space<vmem>>, vector<12x8xf32>
    tpu.vector_store %arg11[%c0_187, %c8_188], %371 {strides = array<i32>} : memref<12x32xf32, #tpu.memory_space<vmem>>, vector<12x8xf32>,
    %373 = vector.extract_strided_slice %336 {offsets = [0, 16], sizes = [12, 8], strides = [1, 1]} : vector<12x32xf32> to vector<12x8xf32>
    %374 = arith.truncf %373 : vector<12x8xf32> to vector<12x8xbf16>
    %375 = vector.extract_strided_slice %337 {offsets = [0, 16], sizes = [12, 8], strides = [1, 1]} : vector<12x32xf32> to vector<12x8xf32>
    %376 = arith.truncf %375 : vector<12x8xf32> to vector<12x8xbf16>
    %cst_189 = arith.constant dense<0.000000e+00> : vector<12x12xf32>
    %377 = tpu.matmul %374, %376, %cst_189 {dimension_numbers = #tpu.dot_dimension_numbers<[1], [1], [0], [0], [0, 0, 1, 0], [], []>} : vector<12x8xbf16>, vector<12x8xbf16>, vector<12x12xf32> -> vector<12x12xf32>
    %378 = arith.addf %377, %5 : vector<12x12xf32>
    %379 = math.exp %378 : vector<12x12xf32>
    %cst_190 = arith.constant dense<0.000000e+00> : vector<12xf32>
    %380 = vector.multi_reduction <add>, %379, %cst_190 [1] : vector<12x12xf32> to vector<12xf32>
    %381 = vector.shape_cast %380 : vector<12xf32> to vector<12x1xf32>
    %382 = tpu.reciprocal %381 {approx = true} : vector<12x1xf32> -> vector<12x1xf32>
    %383 = vector.broadcast %382 : vector<12x1xf32> to vector<12x12xf32>
    %384 = arith.mulf %379, %383 : vector<12x12xf32>
    %385 = arith.truncf %384 : vector<12x12xf32> to vector<12x12xbf16>
    %386 = vector.extract_strided_slice %338 {offsets = [0, 16], sizes = [12, 8], strides = [1, 1]} : vector<12x32xf32> to vector<12x8xf32>
    %387 = arith.truncf %386 : vector<12x8xf32> to vector<12x8xbf16>
    %cst_191 = arith.constant dense<0.000000e+00> : vector<12x8xf32>
    %388 = tpu.matmul %385, %387, %cst_191 {dimension_numbers = #tpu.dot_dimension_numbers<[1], [0], [0], [1], [0, 0, 1, 1], [], []>} : vector<12x12xbf16>, vector<12x8xbf16>, vector<12x8xf32> -> vector<12x8xf32>
    %c0_192 = arith.constant 0 : index
    %c16_193 = arith.constant 16 : index
    %389 = vector.load %arg11[%c0_192, %c16_193] : memref<12x32xf32, #tpu.memory_space<vmem>>, vector<12x8xf32>
    tpu.vector_store %arg11[%c0_192, %c16_193], %388 {strides = array<i32>} : memref<12x32xf32, #tpu.memory_space<vmem>>, vector<12x8xf32>,
    %390 = vector.extract_strided_slice %336 {offsets = [0, 24], sizes = [12, 8], strides = [1, 1]} : vector<12x32xf32> to vector<12x8xf32>
    %391 = arith.truncf %390 : vector<12x8xf32> to vector<12x8xbf16>
    %392 = vector.extract_strided_slice %337 {offsets = [0, 24], sizes = [12, 8], strides = [1, 1]} : vector<12x32xf32> to vector<12x8xf32>
    %393 = arith.truncf %392 : vector<12x8xf32> to vector<12x8xbf16>
    %cst_194 = arith.constant dense<0.000000e+00> : vector<12x12xf32>
    %394 = tpu.matmul %391, %393, %cst_194 {dimension_numbers = #tpu.dot_dimension_numbers<[1], [1], [0], [0], [0, 0, 1, 0], [], []>} : vector<12x8xbf16>, vector<12x8xbf16>, vector<12x12xf32> -> vector<12x12xf32>
    %395 = arith.addf %394, %5 : vector<12x12xf32>
    %396 = math.exp %395 : vector<12x12xf32>
    %cst_195 = arith.constant dense<0.000000e+00> : vector<12xf32>
    %397 = vector.multi_reduction <add>, %396, %cst_195 [1] : vector<12x12xf32> to vector<12xf32>
    %398 = vector.shape_cast %397 : vector<12xf32> to vector<12x1xf32>
    %399 = tpu.reciprocal %398 {approx = true} : vector<12x1xf32> -> vector<12x1xf32>
    %400 = vector.broadcast %399 : vector<12x1xf32> to vector<12x12xf32>
    %401 = arith.mulf %396, %400 : vector<12x12xf32>
    %402 = arith.truncf %401 : vector<12x12xf32> to vector<12x12xbf16>
    %403 = vector.extract_strided_slice %338 {offsets = [0, 24], sizes = [12, 8], strides = [1, 1]} : vector<12x32xf32> to vector<12x8xf32>
    %404 = arith.truncf %403 : vector<12x8xf32> to vector<12x8xbf16>
    %cst_196 = arith.constant dense<0.000000e+00> : vector<12x8xf32>
    %405 = tpu.matmul %402, %404, %cst_196 {dimension_numbers = #tpu.dot_dimension_numbers<[1], [0], [0], [1], [0, 0, 1, 1], [], []>} : vector<12x12xbf16>, vector<12x8xbf16>, vector<12x8xf32> -> vector<12x8xf32>
    %c0_197 = arith.constant 0 : index
    %c24_198 = arith.constant 24 : index
    %406 = vector.load %arg11[%c0_197, %c24_198] : memref<12x32xf32, #tpu.memory_space<vmem>>, vector<12x8xf32>
    tpu.vector_store %arg11[%c0_197, %c24_198], %405 {strides = array<i32>} : memref<12x32xf32, #tpu.memory_space<vmem>>, vector<12x8xf32>,
    %c0_199 = arith.constant 0 : index
    %c0_200 = arith.constant 0 : index
    %407 = vector.load %arg11[%c0_199, %c0_200] : memref<12x32xf32, #tpu.memory_space<vmem>>, vector<12x32xf32>
    %c1_201 = arith.constant 1 : index
    %c0_202 = arith.constant 0 : index
    %c128_203 = arith.constant 128 : index
    %408 = vector.load %arg6[%c1_201, %c0_202, %c128_203] : memref<2x32x1280xbf16, #tpu.memory_space<vmem>>, vector<1x32x32xbf16>
    %409 = vector.shape_cast %408 : vector<1x32x32xbf16> to vector<32x32xbf16>
    %410 = arith.truncf %407 : vector<12x32xf32> to vector<12x32xbf16>
    %cst_204 = arith.constant dense<0.000000e+00> : vector<12x32xf32>
    %411 = tpu.matmul %410, %409, %cst_204 {dimension_numbers = #tpu.dot_dimension_numbers<[1], [0], [0], [1], [0, 0, 1, 1], [], []>} : vector<12x32xbf16>, vector<32x32xbf16>, vector<12x32xf32> -> vector<12x32xf32>
    %c1_205 = arith.constant 1 : index
    %c0_206 = arith.constant 0 : index
    %c128_207 = arith.constant 128 : index
    %412 = vector.load %arg9[%c1_205, %c0_206, %c128_207] : memref<2x1x1792xf32, #tpu.memory_space<vmem>>, vector<1x1x32xf32>
    %413 = vector.shape_cast %412 : vector<1x1x32xf32> to vector<1x32xf32>
    %414 = vector.broadcast %413 : vector<1x32xf32> to vector<12x32xf32>
    %415 = arith.addf %411, %414 : vector<12x32xf32>
    %416 = vector.broadcast %318 : f32 to vector<12x32xf32>
    %417 = arith.mulf %415, %416 : vector<12x32xf32>
    %418 = arith.addf %317, %417 : vector<12x32xf32>
    %c1_208 = arith.constant 1 : index
    %c0_209 = arith.constant 0 : index
    %c256_210 = arith.constant 256 : index
    %419 = vector.load %arg6[%c1_208, %c0_209, %c256_210] : memref<2x32x1280xbf16, #tpu.memory_space<vmem>>, vector<1x32x96xbf16>
    %420 = vector.shape_cast %419 : vector<1x32x96xbf16> to vector<32x96xbf16>
    %421 = arith.truncf %418 : vector<12x32xf32> to vector<12x32xbf16>
    %cst_211 = arith.constant dense<0.000000e+00> : vector<12x96xf32>
    %422 = tpu.matmul %421, %420, %cst_211 {dimension_numbers = #tpu.dot_dimension_numbers<[1], [0], [0], [1], [0, 0, 1, 1], [], []>} : vector<12x32xbf16>, vector<32x96xbf16>, vector<12x96xf32> -> vector<12x96xf32>
    %c1_212 = arith.constant 1 : index
    %c0_213 = arith.constant 0 : index
    %c256_214 = arith.constant 256 : index
    %423 = vector.load %arg9[%c1_212, %c0_213, %c256_214] : memref<2x1x1792xf32, #tpu.memory_space<vmem>>, vector<1x1x96xf32>
    %424 = vector.shape_cast %423 : vector<1x1x96xf32> to vector<1x96xf32>
    %425 = vector.broadcast %424 : vector<1x96xf32> to vector<12x96xf32>
    %426 = arith.addf %422, %425 : vector<12x96xf32>
    %cst_215 = arith.constant 0.000000e+00 : f32
    %427 = vector.broadcast %cst_215 : f32 to vector<12x96xf32>
    %428 = arith.maximumf %426, %427 : vector<12x96xf32>
    %c1_216 = arith.constant 1 : index
    %c0_217 = arith.constant 0 : index
    %c0_218 = arith.constant 0 : index
    %429 = vector.load %arg7[%c1_216, %c0_217, %c0_218] : memref<2x96x384xbf16, #tpu.memory_space<vmem>>, vector<1x96x32xbf16>
    %430 = vector.shape_cast %429 : vector<1x96x32xbf16> to vector<96x32xbf16>
    %431 = arith.truncf %428 : vector<12x96xf32> to vector<12x96xbf16>
    %cst_219 = arith.constant dense<0.000000e+00> : vector<12x32xf32>
    %432 = tpu.matmul %431, %430, %cst_219 {dimension_numbers = #tpu.dot_dimension_numbers<[1], [0], [0], [1], [0, 0, 1, 1], [], []>} : vector<12x96xbf16>, vector<96x32xbf16>, vector<12x32xf32> -> vector<12x32xf32>
    %c1_220 = arith.constant 1 : index
    %c0_221 = arith.constant 0 : index
    %c1280_222 = arith.constant 1280 : index
    %433 = vector.load %arg9[%c1_220, %c0_221, %c1280_222] : memref<2x1x1792xf32, #tpu.memory_space<vmem>>, vector<1x1x32xf32>
    %434 = vector.shape_cast %433 : vector<1x1x32xf32> to vector<1x32xf32>
    %435 = vector.broadcast %434 : vector<1x32xf32> to vector<12x32xf32>
    %436 = arith.addf %432, %435 : vector<12x32xf32>
    %437 = vector.broadcast %319 : f32 to vector<12x32xf32>
    %438 = arith.mulf %436, %437 : vector<12x32xf32>
    %439 = arith.addf %418, %438 : vector<12x32xf32>
    %c1_223 = arith.constant 1 : index
    %c0_224 = arith.constant 0 : index
    %c384_225 = arith.constant 384 : index
    %440 = vector.load %arg6[%c1_223, %c0_224, %c384_225] : memref<2x32x1280xbf16, #tpu.memory_space<vmem>>, vector<1x32x64xbf16>
    %441 = vector.shape_cast %440 : vector<1x32x64xbf16> to vector<32x64xbf16>
    %442 = arith.truncf %439 : vector<12x32xf32> to vector<12x32xbf16>
    %cst_226 = arith.constant dense<0.000000e+00> : vector<12x64xf32>
    %443 = tpu.matmul %442, %441, %cst_226 {dimension_numbers = #tpu.dot_dimension_numbers<[1], [0], [0], [1], [0, 0, 1, 1], [], []>} : vector<12x32xbf16>, vector<32x64xbf16>, vector<12x64xf32> -> vector<12x64xf32>
    %c1_227 = arith.constant 1 : index
    %c0_228 = arith.constant 0 : index
    %c384_229 = arith.constant 384 : index
    %444 = vector.load %arg9[%c1_227, %c0_228, %c384_229] : memref<2x1x1792xf32, #tpu.memory_space<vmem>>, vector<1x1x64xf32>
    %445 = vector.shape_cast %444 : vector<1x1x64xf32> to vector<1x64xf32>
    %446 = vector.broadcast %445 : vector<1x64xf32> to vector<12x64xf32>
    %447 = arith.addf %443, %446 : vector<12x64xf32>
    %448 = vector.extract_strided_slice %447 {offsets = [0, 0], sizes = [12, 32], strides = [1, 1]} : vector<12x64xf32> to vector<12x32xf32>
    %449 = vector.extract_strided_slice %447 {offsets = [0, 32], sizes = [12, 32], strides = [1, 1]} : vector<12x64xf32> to vector<12x32xf32>
    %cst_230 = arith.constant 0.353553385 : f32
    %450 = vector.broadcast %cst_230 : f32 to vector<12x32xf32>
    %451 = arith.mulf %449, %450 : vector<12x32xf32>
    %452 = arith.truncf %448 : vector<12x32xf32> to vector<12x32xbf16>
    %cst_231 = arith.constant dense<0.000000e+00> : vector<4x32xf32>
    %453 = tpu.matmul %4, %452, %cst_231 {dimension_numbers = #tpu.dot_dimension_numbers<[1], [0], [0], [1], [0, 0, 1, 1], [], []>} : vector<4x12xbf16>, vector<12x32xbf16>, vector<4x32xf32> -> vector<4x32xf32>
    %c1_232 = arith.constant 1 : index
    %c0_233 = arith.constant 0 : index
    %c512_234 = arith.constant 512 : index
    %454 = vector.load %arg6[%c1_232, %c0_233, %c512_234] : memref<2x32x1280xbf16, #tpu.memory_space<vmem>>, vector<1x32x32xbf16>
    %455 = vector.shape_cast %454 : vector<1x32x32xbf16> to vector<32x32xbf16>
    %456 = arith.truncf %453 : vector<4x32xf32> to vector<4x32xbf16>
    %cst_235 = arith.constant dense<0.000000e+00> : vector<4x32xf32>
    %457 = tpu.matmul %456, %455, %cst_235 {dimension_numbers = #tpu.dot_dimension_numbers<[1], [0], [0], [1], [0, 0, 1, 1], [], []>} : vector<4x32xbf16>, vector<32x32xbf16>, vector<4x32xf32> -> vector<4x32xf32>
    %c1_236 = arith.constant 1 : index
    %c0_237 = arith.constant 0 : index
    %c512_238 = arith.constant 512 : index
    %458 = vector.load %arg9[%c1_236, %c0_237, %c512_238] : memref<2x1x1792xf32, #tpu.memory_space<vmem>>, vector<1x1x32xf32>
    %459 = vector.shape_cast %458 : vector<1x1x32xf32> to vector<1x32xf32>
    %460 = vector.broadcast %459 : vector<1x32xf32> to vector<4x32xf32>
    %461 = arith.addf %457, %460 : vector<4x32xf32>
    %462 = vector.broadcast %320 : f32 to vector<4x32xf32>
    %463 = arith.mulf %461, %462 : vector<4x32xf32>
    %464 = arith.addf %316, %463 : vector<4x32xf32>
    %c1_239 = arith.constant 1 : index
    %c0_240 = arith.constant 0 : index
    %c640_241 = arith.constant 640 : index
    %465 = vector.load %arg6[%c1_239, %c0_240, %c640_241] : memref<2x32x1280xbf16, #tpu.memory_space<vmem>>, vector<1x32x96xbf16>
    %466 = vector.shape_cast %465 : vector<1x32x96xbf16> to vector<32x96xbf16>
    %467 = arith.truncf %464 : vector<4x32xf32> to vector<4x32xbf16>
    %cst_242 = arith.constant dense<0.000000e+00> : vector<4x96xf32>
    %468 = tpu.matmul %467, %466, %cst_242 {dimension_numbers = #tpu.dot_dimension_numbers<[1], [0], [0], [1], [0, 0, 1, 1], [], []>} : vector<4x32xbf16>, vector<32x96xbf16>, vector<4x96xf32> -> vector<4x96xf32>
    %c1_243 = arith.constant 1 : index
    %c0_244 = arith.constant 0 : index
    %c640_245 = arith.constant 640 : index
    %469 = vector.load %arg9[%c1_243, %c0_244, %c640_245] : memref<2x1x1792xf32, #tpu.memory_space<vmem>>, vector<1x1x96xf32>
    %470 = vector.shape_cast %469 : vector<1x1x96xf32> to vector<1x96xf32>
    %471 = vector.broadcast %470 : vector<1x96xf32> to vector<4x96xf32>
    %472 = arith.addf %468, %471 : vector<4x96xf32>
    %cst_246 = arith.constant 0.000000e+00 : f32
    %473 = vector.broadcast %cst_246 : f32 to vector<4x96xf32>
    %474 = arith.maximumf %472, %473 : vector<4x96xf32>
    %c1_247 = arith.constant 1 : index
    %c0_248 = arith.constant 0 : index
    %c128_249 = arith.constant 128 : index
    %475 = vector.load %arg7[%c1_247, %c0_248, %c128_249] : memref<2x96x384xbf16, #tpu.memory_space<vmem>>, vector<1x96x32xbf16>
    %476 = vector.shape_cast %475 : vector<1x96x32xbf16> to vector<96x32xbf16>
    %477 = arith.truncf %474 : vector<4x96xf32> to vector<4x96xbf16>
    %cst_250 = arith.constant dense<0.000000e+00> : vector<4x32xf32>
    %478 = tpu.matmul %477, %476, %cst_250 {dimension_numbers = #tpu.dot_dimension_numbers<[1], [0], [0], [1], [0, 0, 1, 1], [], []>} : vector<4x96xbf16>, vector<96x32xbf16>, vector<4x32xf32> -> vector<4x32xf32>
    %c1_251 = arith.constant 1 : index
    %c0_252 = arith.constant 0 : index
    %c1408_253 = arith.constant 1408 : index
    %479 = vector.load %arg9[%c1_251, %c0_252, %c1408_253] : memref<2x1x1792xf32, #tpu.memory_space<vmem>>, vector<1x1x32xf32>
    %480 = vector.shape_cast %479 : vector<1x1x32xf32> to vector<1x32xf32>
    %481 = vector.broadcast %480 : vector<1x32xf32> to vector<4x32xf32>
    %482 = arith.addf %478, %481 : vector<4x32xf32>
    %483 = vector.broadcast %321 : f32 to vector<4x32xf32>
    %484 = arith.mulf %482, %483 : vector<4x32xf32>
    %485 = arith.addf %464, %484 : vector<4x32xf32>
    %c1_254 = arith.constant 1 : index
    %c0_255 = arith.constant 0 : index
    %c768_256 = arith.constant 768 : index
    %486 = vector.load %arg6[%c1_254, %c0_255, %c768_256] : memref<2x32x1280xbf16, #tpu.memory_space<vmem>>, vector<1x32x64xbf16>
    %487 = vector.shape_cast %486 : vector<1x32x64xbf16> to vector<32x64xbf16>
    %488 = arith.truncf %485 : vector<4x32xf32> to vector<4x32xbf16>
    %cst_257 = arith.constant dense<0.000000e+00> : vector<4x64xf32>
    %489 = tpu.matmul %488, %487, %cst_257 {dimension_numbers = #tpu.dot_dimension_numbers<[1], [0], [0], [1], [0, 0, 1, 1], [], []>} : vector<4x32xbf16>, vector<32x64xbf16>, vector<4x64xf32> -> vector<4x64xf32>
    %c1_258 = arith.constant 1 : index
    %c0_259 = arith.constant 0 : index
    %c768_260 = arith.constant 768 : index
    %490 = vector.load %arg9[%c1_258, %c0_259, %c768_260] : memref<2x1x1792xf32, #tpu.memory_space<vmem>>, vector<1x1x64xf32>
    %491 = vector.shape_cast %490 : vector<1x1x64xf32> to vector<1x64xf32>
    %492 = vector.broadcast %491 : vector<1x64xf32> to vector<4x64xf32>
    %493 = arith.addf %489, %492 : vector<4x64xf32>
    %494 = vector.extract_strided_slice %493 {offsets = [0, 0], sizes = [4, 32], strides = [1, 1]} : vector<4x64xf32> to vector<4x32xf32>
    %495 = vector.extract_strided_slice %493 {offsets = [0, 32], sizes = [4, 32], strides = [1, 1]} : vector<4x64xf32> to vector<4x32xf32>
    %496 = vector.extract_strided_slice %451 {offsets = [0, 0], sizes = [12, 8], strides = [1, 1]} : vector<12x32xf32> to vector<12x8xf32>
    %497 = arith.truncf %496 : vector<12x8xf32> to vector<12x8xbf16>
    %498 = vector.extract_strided_slice %494 {offsets = [0, 0], sizes = [4, 8], strides = [1, 1]} : vector<4x32xf32> to vector<4x8xf32>
    %499 = arith.truncf %498 : vector<4x8xf32> to vector<4x8xbf16>
    %cst_261 = arith.constant dense<0.000000e+00> : vector<12x4xf32>
    %500 = tpu.matmul %497, %499, %cst_261 {dimension_numbers = #tpu.dot_dimension_numbers<[1], [1], [0], [0], [0, 0, 1, 0], [], []>} : vector<12x8xbf16>, vector<4x8xbf16>, vector<12x4xf32> -> vector<12x4xf32>
    %501 = arith.addf %500, %6 : vector<12x4xf32>
    %502 = math.exp %501 : vector<12x4xf32>
    %cst_262 = arith.constant dense<0.000000e+00> : vector<12xf32>
    %503 = vector.multi_reduction <add>, %502, %cst_262 [1] : vector<12x4xf32> to vector<12xf32>
    %504 = vector.shape_cast %503 : vector<12xf32> to vector<12x1xf32>
    %505 = tpu.reciprocal %504 {approx = true} : vector<12x1xf32> -> vector<12x1xf32>
    %506 = vector.broadcast %505 : vector<12x1xf32> to vector<12x4xf32>
    %507 = arith.mulf %502, %506 : vector<12x4xf32>
    %508 = arith.truncf %507 : vector<12x4xf32> to vector<12x4xbf16>
    %509 = vector.extract_strided_slice %495 {offsets = [0, 0], sizes = [4, 8], strides = [1, 1]} : vector<4x32xf32> to vector<4x8xf32>
    %510 = arith.truncf %509 : vector<4x8xf32> to vector<4x8xbf16>
    %cst_263 = arith.constant dense<0.000000e+00> : vector<12x8xf32>
    %511 = tpu.matmul %508, %510, %cst_263 {dimension_numbers = #tpu.dot_dimension_numbers<[1], [0], [0], [1], [0, 0, 1, 1], [], []>} : vector<12x4xbf16>, vector<4x8xbf16>, vector<12x8xf32> -> vector<12x8xf32>
    %c0_264 = arith.constant 0 : index
    %c0_265 = arith.constant 0 : index
    %512 = vector.load %arg11[%c0_264, %c0_265] : memref<12x32xf32, #tpu.memory_space<vmem>>, vector<12x8xf32>
    tpu.vector_store %arg11[%c0_264, %c0_265], %511 {strides = array<i32>} : memref<12x32xf32, #tpu.memory_space<vmem>>, vector<12x8xf32>,
    %513 = vector.extract_strided_slice %451 {offsets = [0, 8], sizes = [12, 8], strides = [1, 1]} : vector<12x32xf32> to vector<12x8xf32>
    %514 = arith.truncf %513 : vector<12x8xf32> to vector<12x8xbf16>
    %515 = vector.extract_strided_slice %494 {offsets = [0, 8], sizes = [4, 8], strides = [1, 1]} : vector<4x32xf32> to vector<4x8xf32>
    %516 = arith.truncf %515 : vector<4x8xf32> to vector<4x8xbf16>
    %cst_266 = arith.constant dense<0.000000e+00> : vector<12x4xf32>
    %517 = tpu.matmul %514, %516, %cst_266 {dimension_numbers = #tpu.dot_dimension_numbers<[1], [1], [0], [0], [0, 0, 1, 0], [], []>} : vector<12x8xbf16>, vector<4x8xbf16>, vector<12x4xf32> -> vector<12x4xf32>
    %518 = arith.addf %517, %6 : vector<12x4xf32>
    %519 = math.exp %518 : vector<12x4xf32>
    %cst_267 = arith.constant dense<0.000000e+00> : vector<12xf32>
    %520 = vector.multi_reduction <add>, %519, %cst_267 [1] : vector<12x4xf32> to vector<12xf32>
    %521 = vector.shape_cast %520 : vector<12xf32> to vector<12x1xf32>
    %522 = tpu.reciprocal %521 {approx = true} : vector<12x1xf32> -> vector<12x1xf32>
    %523 = vector.broadcast %522 : vector<12x1xf32> to vector<12x4xf32>
    %524 = arith.mulf %519, %523 : vector<12x4xf32>
    %525 = arith.truncf %524 : vector<12x4xf32> to vector<12x4xbf16>
    %526 = vector.extract_strided_slice %495 {offsets = [0, 8], sizes = [4, 8], strides = [1, 1]} : vector<4x32xf32> to vector<4x8xf32>
    %527 = arith.truncf %526 : vector<4x8xf32> to vector<4x8xbf16>
    %cst_268 = arith.constant dense<0.000000e+00> : vector<12x8xf32>
    %528 = tpu.matmul %525, %527, %cst_268 {dimension_numbers = #tpu.dot_dimension_numbers<[1], [0], [0], [1], [0, 0, 1, 1], [], []>} : vector<12x4xbf16>, vector<4x8xbf16>, vector<12x8xf32> -> vector<12x8xf32>
    %c0_269 = arith.constant 0 : index
    %c8_270 = arith.constant 8 : index
    %529 = vector.load %arg11[%c0_269, %c8_270] : memref<12x32xf32, #tpu.memory_space<vmem>>, vector<12x8xf32>
    tpu.vector_store %arg11[%c0_269, %c8_270], %528 {strides = array<i32>} : memref<12x32xf32, #tpu.memory_space<vmem>>, vector<12x8xf32>,
    %530 = vector.extract_strided_slice %451 {offsets = [0, 16], sizes = [12, 8], strides = [1, 1]} : vector<12x32xf32> to vector<12x8xf32>
    %531 = arith.truncf %530 : vector<12x8xf32> to vector<12x8xbf16>
    %532 = vector.extract_strided_slice %494 {offsets = [0, 16], sizes = [4, 8], strides = [1, 1]} : vector<4x32xf32> to vector<4x8xf32>
    %533 = arith.truncf %532 : vector<4x8xf32> to vector<4x8xbf16>
    %cst_271 = arith.constant dense<0.000000e+00> : vector<12x4xf32>
    %534 = tpu.matmul %531, %533, %cst_271 {dimension_numbers = #tpu.dot_dimension_numbers<[1], [1], [0], [0], [0, 0, 1, 0], [], []>} : vector<12x8xbf16>, vector<4x8xbf16>, vector<12x4xf32> -> vector<12x4xf32>
    %535 = arith.addf %534, %6 : vector<12x4xf32>
    %536 = math.exp %535 : vector<12x4xf32>
    %cst_272 = arith.constant dense<0.000000e+00> : vector<12xf32>
    %537 = vector.multi_reduction <add>, %536, %cst_272 [1] : vector<12x4xf32> to vector<12xf32>
    %538 = vector.shape_cast %537 : vector<12xf32> to vector<12x1xf32>
    %539 = tpu.reciprocal %538 {approx = true} : vector<12x1xf32> -> vector<12x1xf32>
    %540 = vector.broadcast %539 : vector<12x1xf32> to vector<12x4xf32>
    %541 = arith.mulf %536, %540 : vector<12x4xf32>
    %542 = arith.truncf %541 : vector<12x4xf32> to vector<12x4xbf16>
    %543 = vector.extract_strided_slice %495 {offsets = [0, 16], sizes = [4, 8], strides = [1, 1]} : vector<4x32xf32> to vector<4x8xf32>
    %544 = arith.truncf %543 : vector<4x8xf32> to vector<4x8xbf16>
    %cst_273 = arith.constant dense<0.000000e+00> : vector<12x8xf32>
    %545 = tpu.matmul %542, %544, %cst_273 {dimension_numbers = #tpu.dot_dimension_numbers<[1], [0], [0], [1], [0, 0, 1, 1], [], []>} : vector<12x4xbf16>, vector<4x8xbf16>, vector<12x8xf32> -> vector<12x8xf32>
    %c0_274 = arith.constant 0 : index
    %c16_275 = arith.constant 16 : index
    %546 = vector.load %arg11[%c0_274, %c16_275] : memref<12x32xf32, #tpu.memory_space<vmem>>, vector<12x8xf32>
    tpu.vector_store %arg11[%c0_274, %c16_275], %545 {strides = array<i32>} : memref<12x32xf32, #tpu.memory_space<vmem>>, vector<12x8xf32>,
    %547 = vector.extract_strided_slice %451 {offsets = [0, 24], sizes = [12, 8], strides = [1, 1]} : vector<12x32xf32> to vector<12x8xf32>
    %548 = arith.truncf %547 : vector<12x8xf32> to vector<12x8xbf16>
    %549 = vector.extract_strided_slice %494 {offsets = [0, 24], sizes = [4, 8], strides = [1, 1]} : vector<4x32xf32> to vector<4x8xf32>
    %550 = arith.truncf %549 : vector<4x8xf32> to vector<4x8xbf16>
    %cst_276 = arith.constant dense<0.000000e+00> : vector<12x4xf32>
    %551 = tpu.matmul %548, %550, %cst_276 {dimension_numbers = #tpu.dot_dimension_numbers<[1], [1], [0], [0], [0, 0, 1, 0], [], []>} : vector<12x8xbf16>, vector<4x8xbf16>, vector<12x4xf32> -> vector<12x4xf32>
    %552 = arith.addf %551, %6 : vector<12x4xf32>
    %553 = math.exp %552 : vector<12x4xf32>
    %cst_277 = arith.constant dense<0.000000e+00> : vector<12xf32>
    %554 = vector.multi_reduction <add>, %553, %cst_277 [1] : vector<12x4xf32> to vector<12xf32>
    %555 = vector.shape_cast %554 : vector<12xf32> to vector<12x1xf32>
    %556 = tpu.reciprocal %555 {approx = true} : vector<12x1xf32> -> vector<12x1xf32>
    %557 = vector.broadcast %556 : vector<12x1xf32> to vector<12x4xf32>
    %558 = arith.mulf %553, %557 : vector<12x4xf32>
    %559 = arith.truncf %558 : vector<12x4xf32> to vector<12x4xbf16>
    %560 = vector.extract_strided_slice %495 {offsets = [0, 24], sizes = [4, 8], strides = [1, 1]} : vector<4x32xf32> to vector<4x8xf32>
    %561 = arith.truncf %560 : vector<4x8xf32> to vector<4x8xbf16>
    %cst_278 = arith.constant dense<0.000000e+00> : vector<12x8xf32>
    %562 = tpu.matmul %559, %561, %cst_278 {dimension_numbers = #tpu.dot_dimension_numbers<[1], [0], [0], [1], [0, 0, 1, 1], [], []>} : vector<12x4xbf16>, vector<4x8xbf16>, vector<12x8xf32> -> vector<12x8xf32>
    %c0_279 = arith.constant 0 : index
    %c24_280 = arith.constant 24 : index
    %563 = vector.load %arg11[%c0_279, %c24_280] : memref<12x32xf32, #tpu.memory_space<vmem>>, vector<12x8xf32>
    tpu.vector_store %arg11[%c0_279, %c24_280], %562 {strides = array<i32>} : memref<12x32xf32, #tpu.memory_space<vmem>>, vector<12x8xf32>,
    %c0_281 = arith.constant 0 : index
    %c0_282 = arith.constant 0 : index
    %564 = vector.load %arg11[%c0_281, %c0_282] : memref<12x32xf32, #tpu.memory_space<vmem>>, vector<12x32xf32>
    %c1_283 = arith.constant 1 : index
    %c0_284 = arith.constant 0 : index
    %c896_285 = arith.constant 896 : index
    %565 = vector.load %arg6[%c1_283, %c0_284, %c896_285] : memref<2x32x1280xbf16, #tpu.memory_space<vmem>>, vector<1x32x32xbf16>
    %566 = vector.shape_cast %565 : vector<1x32x32xbf16> to vector<32x32xbf16>
    %567 = arith.truncf %564 : vector<12x32xf32> to vector<12x32xbf16>
    %cst_286 = arith.constant dense<0.000000e+00> : vector<12x32xf32>
    %568 = tpu.matmul %567, %566, %cst_286 {dimension_numbers = #tpu.dot_dimension_numbers<[1], [0], [0], [1], [0, 0, 1, 1], [], []>} : vector<12x32xbf16>, vector<32x32xbf16>, vector<12x32xf32> -> vector<12x32xf32>
    %c1_287 = arith.constant 1 : index
    %c0_288 = arith.constant 0 : index
    %c896_289 = arith.constant 896 : index
    %569 = vector.load %arg9[%c1_287, %c0_288, %c896_289] : memref<2x1x1792xf32, #tpu.memory_space<vmem>>, vector<1x1x32xf32>
    %570 = vector.shape_cast %569 : vector<1x1x32xf32> to vector<1x32xf32>
    %571 = vector.broadcast %570 : vector<1x32xf32> to vector<12x32xf32>
    %572 = arith.addf %568, %571 : vector<12x32xf32>
    %573 = vector.broadcast %322 : f32 to vector<12x32xf32>
    %574 = arith.mulf %572, %573 : vector<12x32xf32>
    %575 = arith.addf %439, %574 : vector<12x32xf32>
    %c1_290 = arith.constant 1 : index
    %c0_291 = arith.constant 0 : index
    %c1024_292 = arith.constant 1024 : index
    %576 = vector.load %arg6[%c1_290, %c0_291, %c1024_292] : memref<2x32x1280xbf16, #tpu.memory_space<vmem>>, vector<1x32x96xbf16>
    %577 = vector.shape_cast %576 : vector<1x32x96xbf16> to vector<32x96xbf16>
    %578 = arith.truncf %575 : vector<12x32xf32> to vector<12x32xbf16>
    %cst_293 = arith.constant dense<0.000000e+00> : vector<12x96xf32>
    %579 = tpu.matmul %578, %577, %cst_293 {dimension_numbers = #tpu.dot_dimension_numbers<[1], [0], [0], [1], [0, 0, 1, 1], [], []>} : vector<12x32xbf16>, vector<32x96xbf16>, vector<12x96xf32> -> vector<12x96xf32>
    %c1_294 = arith.constant 1 : index
    %c0_295 = arith.constant 0 : index
    %c1024_296 = arith.constant 1024 : index
    %580 = vector.load %arg9[%c1_294, %c0_295, %c1024_296] : memref<2x1x1792xf32, #tpu.memory_space<vmem>>, vector<1x1x96xf32>
    %581 = vector.shape_cast %580 : vector<1x1x96xf32> to vector<1x96xf32>
    %582 = vector.broadcast %581 : vector<1x96xf32> to vector<12x96xf32>
    %583 = arith.addf %579, %582 : vector<12x96xf32>
    %cst_297 = arith.constant 0.000000e+00 : f32
    %584 = vector.broadcast %cst_297 : f32 to vector<12x96xf32>
    %585 = arith.maximumf %583, %584 : vector<12x96xf32>
    %c1_298 = arith.constant 1 : index
    %c0_299 = arith.constant 0 : index
    %c256_300 = arith.constant 256 : index
    %586 = vector.load %arg7[%c1_298, %c0_299, %c256_300] : memref<2x96x384xbf16, #tpu.memory_space<vmem>>, vector<1x96x32xbf16>
    %587 = vector.shape_cast %586 : vector<1x96x32xbf16> to vector<96x32xbf16>
    %588 = arith.truncf %585 : vector<12x96xf32> to vector<12x96xbf16>
    %cst_301 = arith.constant dense<0.000000e+00> : vector<12x32xf32>
    %589 = tpu.matmul %588, %587, %cst_301 {dimension_numbers = #tpu.dot_dimension_numbers<[1], [0], [0], [1], [0, 0, 1, 1], [], []>} : vector<12x96xbf16>, vector<96x32xbf16>, vector<12x32xf32> -> vector<12x32xf32>
    %c1_302 = arith.constant 1 : index
    %c0_303 = arith.constant 0 : index
    %c1536_304 = arith.constant 1536 : index
    %590 = vector.load %arg9[%c1_302, %c0_303, %c1536_304] : memref<2x1x1792xf32, #tpu.memory_space<vmem>>, vector<1x1x32xf32>
    %591 = vector.shape_cast %590 : vector<1x1x32xf32> to vector<1x32xf32>
    %592 = vector.broadcast %591 : vector<1x32xf32> to vector<12x32xf32>
    %593 = arith.addf %589, %592 : vector<12x32xf32>
    %594 = vector.broadcast %323 : f32 to vector<12x32xf32>
    %595 = arith.mulf %593, %594 : vector<12x32xf32>
    %596 = arith.addf %575, %595 : vector<12x32xf32>
    %597 = vector.broadcast %324 : f32 to vector<4x32xf32>
    %598 = arith.mulf %485, %597 : vector<4x32xf32>
    %599 = arith.addf %598, %316 : vector<4x32xf32>
    %c0_305 = arith.constant 0 : index
    %c0_306 = arith.constant 0 : index
    %600 = vector.load %arg12[%c0_305, %c0_306] : memref<16x32xf32, #tpu.memory_space<vmem>>, vector<4x32xf32>
    tpu.vector_store %arg12[%c0_305, %c0_306], %599 {strides = array<i32>} : memref<16x32xf32, #tpu.memory_space<vmem>>, vector<4x32xf32>,
    %601 = vector.broadcast %324 : f32 to vector<12x32xf32>
    %602 = arith.mulf %596, %601 : vector<12x32xf32>
    %603 = arith.addf %602, %317 : vector<12x32xf32>
    %c4_307 = arith.constant 4 : index
    %c0_308 = arith.constant 0 : index
    %604 = vector.load %arg12[%c4_307, %c0_308] : memref<16x32xf32, #tpu.memory_space<vmem>>, vector<12x32xf32>
    tpu.vector_store %arg12[%c4_307, %c0_308], %603 {strides = array<i32>} : memref<16x32xf32, #tpu.memory_space<vmem>>, vector<12x32xf32>,
    %c0_309 = arith.constant 0 : index
    %c0_310 = arith.constant 0 : index
    %605 = vector.load %arg12[%c0_309, %c0_310] : memref<16x32xf32, #tpu.memory_space<vmem>>, vector<16x32xf32>
    %c1_311 = arith.constant 1 : index
    %c0_312 = arith.constant 0 : index
    %c1152_313 = arith.constant 1152 : index
    %606 = vector.load %arg6[%c1_311, %c0_312, %c1152_313] : memref<2x32x1280xbf16, #tpu.memory_space<vmem>>, vector<1x32x64xbf16>
    %607 = vector.shape_cast %606 : vector<1x32x64xbf16> to vector<32x64xbf16>
    %608 = arith.truncf %605 : vector<16x32xf32> to vector<16x32xbf16>
    %cst_314 = arith.constant dense<0.000000e+00> : vector<16x64xf32>
    %609 = tpu.matmul %608, %607, %cst_314 {dimension_numbers = #tpu.dot_dimension_numbers<[1], [0], [0], [1], [0, 0, 1, 1], [], []>} : vector<16x32xbf16>, vector<32x64xbf16>, vector<16x64xf32> -> vector<16x64xf32>
    %c1_315 = arith.constant 1 : index
    %c0_316 = arith.constant 0 : index
    %c1152_317 = arith.constant 1152 : index
    %610 = vector.load %arg9[%c1_315, %c0_316, %c1152_317] : memref<2x1x1792xf32, #tpu.memory_space<vmem>>, vector<1x1x64xf32>
    %611 = vector.shape_cast %610 : vector<1x1x64xf32> to vector<1x64xf32>
    %612 = vector.broadcast %611 : vector<1x64xf32> to vector<16x64xf32>
    %613 = arith.addf %609, %612 : vector<16x64xf32>
    %cst_318 = arith.constant 0.000000e+00 : f32
    %614 = vector.broadcast %cst_318 : f32 to vector<16x64xf32>
    %615 = arith.maximumf %613, %614 : vector<16x64xf32>
    %616 = arith.truncf %615 : vector<16x64xf32> to vector<16x64xbf16>
    %c1_319 = arith.constant 1 : index
    %c0_320 = arith.constant 0 : index
    %c0_321 = arith.constant 0 : index
    %617 = vector.load %arg8[%c1_319, %c0_320, %c0_321] : memref<2x64x32xbf16, #tpu.memory_space<vmem>>, vector<1x64x32xbf16>
    %618 = vector.shape_cast %617 : vector<1x64x32xbf16> to vector<64x32xbf16>
    %cst_322 = arith.constant dense<0.000000e+00> : vector<16x32xf32>
    %619 = tpu.matmul %616, %618, %cst_322 {dimension_numbers = #tpu.dot_dimension_numbers<[1], [0], [0], [1], [0, 0, 1, 1], [], []>} : vector<16x64xbf16>, vector<64x32xbf16>, vector<16x32xf32> -> vector<16x32xf32>
    %c1_323 = arith.constant 1 : index
    %c0_324 = arith.constant 0 : index
    %c1664_325 = arith.constant 1664 : index
    %620 = vector.load %arg9[%c1_323, %c0_324, %c1664_325] : memref<2x1x1792xf32, #tpu.memory_space<vmem>>, vector<1x1x32xf32>
    %621 = vector.shape_cast %620 : vector<1x1x32xf32> to vector<1x32xf32>
    %622 = vector.broadcast %621 : vector<1x32xf32> to vector<16x32xf32>
    %623 = arith.addf %619, %622 : vector<16x32xf32>
    %624 = vector.broadcast %325 : f32 to vector<16x32xf32>
    %625 = arith.mulf %623, %624 : vector<16x32xf32>
    %626 = arith.addf %625, %605 : vector<16x32xf32>
    %c0_326 = arith.constant 0 : index
    %c0_327 = arith.constant 0 : index
    %c0_328 = arith.constant 0 : index
    %627 = vector.load %arg10[%c0_326, %c0_327, %c0_328] : memref<1x16x32xf32, #tpu.memory_space<vmem>>, vector<1x16x32xf32>
    %628 = vector.shape_cast %627 : vector<1x16x32xf32> to vector<16x32xf32>
    %629 = vector.shape_cast %626 : vector<16x32xf32> to vector<1x16x32xf32>
    tpu.vector_store %arg10[%c0_326, %c0_327, %c0_328], %629 {strides = array<i32>} : memref<1x16x32xf32, #tpu.memory_space<vmem>>, vector<1x16x32xf32>,
    return
  }
  func.func @transform_0(%arg0: i32) -> (i32, i32) {
    %c0_i32 = arith.constant 0 : i32
    %c0_i32_0 = arith.constant 0 : i32
    %c0_i32_1 = arith.constant 0 : i32
    return %c0_i32, %c0_i32_0 : i32, i32
  }
  func.func @transform_1(%arg0: i32) -> (i32, i32, i32) {
    %c0_i32 = arith.constant 0 : i32
    %c0_i32_0 = arith.constant 0 : i32
    %c0_i32_1 = arith.constant 0 : i32
    return %arg0, %c0_i32, %c0_i32_0 : i32, i32, i32
  }
  func.func @transform_2(%arg0: i32) -> (i32, i32) {
    %c0_i32 = arith.constant 0 : i32
    %c0_i32_0 = arith.constant 0 : i32
    %c0_i32_1 = arith.constant 0 : i32
    return %c0_i32, %c0_i32_0 : i32, i32
  }
  func.func @transform_3(%arg0: i32) -> (i32, i32) {
    %c0_i32 = arith.constant 0 : i32
    %c0_i32_0 = arith.constant 0 : i32
    %c0_i32_1 = arith.constant 0 : i32
    return %c0_i32, %c0_i32_0 : i32, i32
  }
  func.func @transform_4(%arg0: i32) -> (i32, i32) {
    %c0_i32 = arith.constant 0 : i32
    %c0_i32_0 = arith.constant 0 : i32
    %c0_i32_1 = arith.constant 0 : i32
    return %c0_i32, %c0_i32_0 : i32, i32
  }
  func.func @transform_5(%arg0: i32) -> (i32, i32, i32) {
    %c0_i32 = arith.constant 0 : i32
    %c0_i32_0 = arith.constant 0 : i32
    %c0_i32_1 = arith.constant 0 : i32
    %c0_i32_2 = arith.constant 0 : i32
    return %c0_i32, %c0_i32_0, %c0_i32_1 : i32, i32, i32
  }
  func.func @transform_6(%arg0: i32) -> (i32, i32, i32) {
    %c0_i32 = arith.constant 0 : i32
    %c0_i32_0 = arith.constant 0 : i32
    %c0_i32_1 = arith.constant 0 : i32
    %c0_i32_2 = arith.constant 0 : i32
    return %c0_i32, %c0_i32_0, %c0_i32_1 : i32, i32, i32
  }
  func.func @transform_7(%arg0: i32) -> (i32, i32, i32) {
    %c0_i32 = arith.constant 0 : i32
    %c0_i32_0 = arith.constant 0 : i32
    %c0_i32_1 = arith.constant 0 : i32
    %c0_i32_2 = arith.constant 0 : i32
    return %c0_i32, %c0_i32_0, %c0_i32_1 : i32, i32, i32
  }
  func.func @transform_8(%arg0: i32) -> (i32, i32, i32) {
    %c0_i32 = arith.constant 0 : i32
    %c0_i32_0 = arith.constant 0 : i32
    %c0_i32_1 = arith.constant 0 : i32
    %c0_i32_2 = arith.constant 0 : i32
    return %c0_i32, %c0_i32_0, %c0_i32_1 : i32, i32, i32
  }
  func.func @transform_9(%arg0: i32) -> (i32, i32, i32) {
    %c0_i32 = arith.constant 0 : i32
    %c0_i32_0 = arith.constant 0 : i32
    %c0_i32_1 = arith.constant 0 : i32
    return %arg0, %c0_i32, %c0_i32_0 : i32, i32, i32
  }
}

</mosaic_0001>

<bundles_post_ra>
// kernel: tpu_custom_call.1
= control target key start
LH: loop header
LB: loop body
LE: loop exit
PB: predicated region body
PF: predicated region fallthrough
CT: control target
= control target key end

     0   :  { %14 = vsyncpa [#allocation7], 0  ;;  %s6592_s0 = inlined_call_operand.vmem [shape: f32[2,8], index: 0, kind: input, shape index: {}]   ;;  %s6593_s1 = inlined_call_operand.vmem [shape: f32[1,16,32], index: 1, kind: input, shape index: {}]   ;;  %s6594_s2 = inlined_call_operand.vmem [shape: bf16[4,12], index: 2, kind: input, shape index: {}]   ;;  %s6595_s3 = inlined_call_operand.vmem [shape: f32[12,12], index: 3, kind: input, shape index: {}]   ;;  %s6596_s4 = inlined_call_operand.vmem [shape: f32[12,4], index: 4, kind: input, shape index: {}]   ;;  %s6597_s5 = inlined_call_operand.hbm [shape: bf16[2,32,1280], index: 5, kind: input, shape index: {}]   ;;  %s6598_s6 = inlined_call_operand.hbm [shape: bf16[2,96,384], index: 6, kind: input, shape index: {}]   ;;  %s6599_s7 = inlined_call_operand.vmem [shape: bf16[2,64,32], index: 7, kind: input, shape index: {}]   ;;  %s6600_s8 = inlined_call_operand.vmem [shape: f32[2,1,1792], index: 8, kind: input, shape index: {}]   ;;  %s6601_s9 = inlined_call_operand.hbm [shape: f32[1,16,32], index: 9, kind: output, shape index: {}]  }
   0x1   :  { %15 = vsyncpa [#allocation5], 0 }
   0x2   :  { %16 = vsyncpa [#allocation10], 0 }
   0x3   :  { %17 = vsyncpa [#allocation6], 0  ;;  %s24_s11 = sshll.u32 %s6592_s0, 4  ;;  %s25_s11 = int_to_ptr.vmem [resolvable:$true] %s24_s11 }
   0x4   :  { %s5636_s12 = scalar_lea.vmem %s25_s11, 32  ;;  %p5641_p1 = scmp.lt.s32.totalorder %s25_s11, %s25_s11 }
   0x5   :  { %p5637_p0 = scmp.ne.s32.totalorder %s25_s11, %s5636_s12  ;;  %p5642_p2 = scmp.lt.s32.totalorder %s5636_s12, %s5636_s12 }
   0x7   :  { %p5643_p3 = por %p5642_p2, %p5641_p1 }
   0x9   :  { %p5644_p4 = pnand %p5643_p3, %p5637_p0 }
   0xb   :  { %5647 = shalt.err (!%p5644_p4)
}
   0xc   :  { %s5722_s13 = smov [#allocation4]   ;;  %s5723_s14 = smov [#allocation8]  }
   0xd   :  { %27 = dma.vmem_to_smem %s25_s11, 32, %s5722_s13, [#allocation7]  }
   0xe   :  { %s41_s15 = sshll.u32 %s5723_s14, 4  ;;  %s5648_s18 = scalar_lea.hbm %s6597_s5, 5120  ;;  %s42_s15 = int_to_ptr.vmem [resolvable:$true] %s41_s15 }
   0xf   :  { %p5649_p5 = scmp.ne.s32.totalorder %s6597_s5, %s5648_s18  ;;  %p5652_p6 = scmp.lt.u32.totalorder %s5648_s18, %s6597_s5 }
  0x11   :  { %p5654_p7 = pnand %p5652_p6, %p5649_p5 }
  0x13   :  { %5657 = shalt.err (!%p5654_p7)
}
  0x14   :  { %s5658_s22 = scalar_lea.vmem %s42_s15, 5120  ;;  %p5663_p9 = scmp.lt.s32.totalorder %s42_s15, %s42_s15 }
  0x15   :  { %p5659_p8 = scmp.ne.s32.totalorder %s42_s15, %s5658_s22  ;;  %p5664_p10 = scmp.lt.s32.totalorder %s5658_s22, %s5658_s22 }
  0x17   :  { %p5665_p11 = por %p5664_p10, %p5663_p9 }
  0x19   :  { %p5666_p12 = pnand %p5665_p11, %p5659_p8 }
  0x1b   :  { %5669 = shalt.err (!%p5666_p12)
}
  0x1c   :  { %s5724_s23 = smov 640   ;;  %s5725_s24 = smov 40  }
  0x1d   :  { %47 = dma.hbm_to_vmem [thread:$0]  %s6597_s5, 5120, %s42_s15, [#allocation5], %s5724_s23, %s5724_s23, %s5725_s24  }
  0x1e   :  { %s5726_s27 = smov [#allocation9]   ;;  %s5670_s10 = scalar_lea.hbm %s6598_s6, 4608 }
  0x1f   :  { %s53_s28 = sshll.u32 %s5726_s27, 4  ;;  %p5671_p13 = scmp.ne.s32.totalorder %s6598_s6, %s5670_s10  ;;  %s54_s28 = int_to_ptr.vmem [resolvable:$true] %s53_s28 }
  0x20   :  { %p5674_p0 = scmp.lt.u32.totalorder %s5670_s10, %s6598_s6 }
  0x22   :  { %p5676_p1 = pnand %p5674_p0, %p5671_p13 }
  0x24   :  { %5679 = shalt.err (!%p5676_p1)
}
  0x25   :  { %s5680_s16 = scalar_lea.vmem %s54_s28, 4608  ;;  %p5685_p3 = scmp.lt.s32.totalorder %s54_s28, %s54_s28 }
  0x26   :  { %p5681_p2 = scmp.ne.s32.totalorder %s54_s28, %s5680_s16  ;;  %p5686_p4 = scmp.lt.s32.totalorder %s5680_s16, %s5680_s16 }
  0x28   :  { %p5687_p5 = por %p5686_p4, %p5685_p3 }
  0x2a   :  { %p5688_p6 = pnand %p5687_p5, %p5681_p2 }
  0x2c   :  { %5691 = shalt.err (!%p5688_p6)
}
  0x2d   :  { %s5727_s5 = smov 192   ;;  %s5728_s15 = smov 12  }
  0x2e   :  { %59 = dma.hbm_to_vmem [thread:$0]  %s6598_s6, 4608, %s54_s28, [#allocation10], %s5727_s5, %s5727_s5, %s5728_s15  }
  0x2f   :  { %5714 = dma.done.wait [#allocation7], 32  }
  0x30   :  { %5715 = vsyncadd [#allocation7], 4294967264 }
  0x31   :  { %5716 = dma.done.wait [#allocation5], 5120  }
  0x32   :  { %5717 = vsyncadd [#allocation5], 4294962176 }
  0x33   :  { %5718 = dma.done.wait [#allocation10], 4608  }
  0x34   :  { %5719 = vsyncadd [#allocation10], 4294962688 }
  0x35   :  { %73 = sfence }
  0x36   :  { %v5729_v0 = vmov 0.0   ;;  %v5417_v1 = vld [vmem:[#allocation8] ss:$40 sps:$4 sm:$0xff]   ;;  %vm5730_vm0 = vmmov 0   ;;  %v5418_v4 = vld [vmem:[#allocation8 + $0x50] ss:$40 sps:$4 sm:$0xff]  }
  0x37   :  { %4909 = vmatprep.subr.bf16.mxu0 %v5729_v0  ;;  %4913 = vmatprep.mubr.msk.bf16.mxu0 %vm5730_vm0, %v5729_v0  ;;  %v5830_v2 = vld [vmem:[%s6593_s1] sm:$0xff]  ;;  %v5835_v3 = vld [vmem:[%s6593_s1 + $0x8] sm:$0xff]  ;;  %vm116_vm1 = vcmask 261120   ;;  %s5731_s23 = smov 96   ;;  %s5732_s25 = smov 120   ;;  %vm168_vm2 = vcmask 64512  }
  0x38   :  { %4917 = vmatprep.subr.bf16.mxu1 %v5729_v0  ;;  %4919 = vmatprep.mubr.msk.bf16.mxu1 %vm5730_vm0, %v5729_v0  ;;  %v94_v5 = vpack.c.bf16 %v5835_v3, %v5830_v2  ;;  %v4525_v7 = vld [vmem:[%s6600_s8] ss:$0 sm:$0xff]  ;;  %s5733_s26 = smov 88   ;;  %s5734_s27 = smov 80   ;;  %v79_v31 = vld [vmem:[%s6595_s3 + $0x8] sm:$0xf] }
  0x39   :  { %4910 = vmatpush3.bf16.msra.mxu0 %v5417_v1  ;;  %s5735_s28 = smov 112   ;;  %s5736_s29 = smov 72   ;;  %v78_v29 = vld [vmem:[%s6595_s3] sm:$0xff]  ;;  %vm220_vm3 = vcmask 97280   ;;  %vm6604_vm4 = vcmask 93184   ;;  %vm6603_vm5 = vcmask 1045504  }
  0x3a   :  { %4911 = vmatprep.subr.bf16.mxu0 %v5729_v0  ;;  %v103_v6 = vrot.slane %v94_v5, 2  ;;  %s5737_s30 = smov 104   ;;  %s5738_s14 = smov 56   ;;  %vm284_vm6 = vcmask 60416   ;;  %vm410_vm7 = vcmask 130112   ;;  %vm412_vm8 = vcmask 126016  }
  0x3b   :  { %s5739_s16 = smov 64   ;;  %s5740_s5 = smov 48   ;;  %vm537_vm9 = vcmask 195712   ;;  %vm539_vm10 = vcmask 191616   ;;  %vm664_vm11 = vcmask 261312   ;;  %vm666_vm12 = vcmask 257216  }
  0x3c   :  { %s5741_s15 = smov 8   ;;  %s5742_s17 = smov 16   ;;  %vm743_vm13 = vcmask 1043456   ;;  %vm6610_vm14 = vcmask 785408   ;;  %vm6602_vm15 = vcmask 257024  }
  0x3d   :  { %4912 = vmatpush3.bf16.msra.mxu0 %v5418_v4  ;;  %s5743_s18 = smov 24   ;;  %s82_s19 = sld [smem:[#allocation4]] }
  0x3e   :  { %4923 = vmatprep.subr.bf16.mxu0 %v5729_v0  ;;  %s4518_s22 = sld [smem:[#allocation4 + $0x1]]  ;;  %s4519_s6 = sld [smem:[#allocation4 + $0x2]] }
  0x3f   :  { %s4520_s13 = sld [smem:[#allocation4 + $0x3]]  ;;  %s4522_s21 = sld [smem:[#allocation4 + $0x5]] }
  0x40   :  { %4914 = vmatmul.mubr.msk.bf16.vlgmr.msra.gmra.mrb[0].mxu0 %vm116_vm1, %v103_v6  ;;  %s4524_s12 = sld [smem:[#allocation4 + $0x7]]  ;;  %s4613_s10 = sld [smem:[#allocation4 + $0x81]] }
  0x41   :  { %4925 = vmatprep.mubr.msk.bf16.mxu0 %vm5730_vm0, %v5729_v0 }
 0x113   :  { %v154_v8 = vpop.f32.mrb[0].mxu0 }
 0x114   :  { %v155_v9 = vadd.f32 %v4525_v7, %v154_v8  ;;  %v4915_v10 = vpop.f32.mrb[1].mxu0 }
 0x115   :  { %v157_v11 = vpop.f32.mrb[2].mxu0 }
 0x116   :  { %v158_v12 = vadd.f32 %v4525_v7, %v157_v11  ;;  %v4916_v13 = vpop.f32.mrb[3].mxu0  ;;  %v161_v14 = vmul.f32 0.35355338, %v155_v9 }
 0x118   :  { %v162_v15 = vmul.f32 0.35355338, %v158_v12  ;;  %v5850_v16 = vpack.c.bf16 %v158_v12, %v155_v9 }
 0x11a   :  { %v163_v17 = vpack.c.bf16 %v162_v15, %v161_v14  ;;  %166 = vrot.lane.b32.xlu0 %v5850_v16, %s5731_s23 }
 0x11c   :  { %287 = vrot.lane.b32.xlu1 %v163_v17, %s5732_s25 }
 0x11e   :  { %289 = vrot.lane.b32.xlu0 %v5850_v16, %s5733_s26 }
 0x120   :  { %416 = vrot.lane.b32.xlu1 %v5850_v16, %s5734_s27 }
 0x122   :  { %414 = vrot.lane.b32.xlu0 %v163_v17, %s5735_s28 }
 0x124   :  { %543 = vrot.lane.b32.xlu1 %v5850_v16, %s5736_s29 }
 0x126   :  { %541 = vrot.lane.b32.xlu0 %v163_v17, %s5737_s30 }
 0x18c   :  { %v167_v18 = vpop.permute.xlu0 %166 }
 0x18d   :  { %v173_v19 = vsel %vm168_vm2, %v167_v18, 0 }
 0x18e   :  { %4918 = vmatpush3.bf16.xpose.msra.mxu1 %v173_v19  ;;  %v288_v21 = vpop.permute.xlu1 %287 }
 0x18f   :  { %4929 = vmatprep.subr.bf16.mxu1 %v5729_v0 }
 0x190   :  { %v290_v20 = vpop.permute.xlu0 %289 }
 0x191   :  { %v295_v22 = vsel %vm168_vm2, %v290_v20, 0 }
 0x192   :  { %v417_v23 = vpop.permute.xlu1 %416 }
 0x193   :  { %v422_v24 = vsel %vm168_vm2, %v417_v23, 0 }
 0x194   :  { %v415_v26 = vpop.permute.xlu0 %414 }
 0x195   :  { %4920 = vmatmul.mubr.msk.bf16.vlgmr.msra.gmra.mrb[0].mxu1 %vm168_vm2, %v163_v17 }
 0x196   :  { %4930 = vmatpush3.bf16.xpose.msra.mxu1 %v295_v22  ;;  %4931 = vmatprep.mubr.msk.bf16.mxu1 %vm5730_vm0, %v5729_v0  ;;  %v544_v25 = vpop.permute.xlu1 %543 }
 0x197   :  { %4941 = vmatprep.subr.bf16.mxu1 %v5729_v0  ;;  %v549_v27 = vsel %vm168_vm2, %v544_v25, 0 }
 0x198   :  { %v542_v28 = vpop.permute.xlu0 %541 }
 0x19d   :  { %4932 = vmatmul.mubr.msk.bf16.vlgmr.msra.gmra.mrb[4].mxu1 %vm168_vm2, %v288_v21 }
 0x19e   :  { %4942 = vmatpush3.bf16.xpose.msra.mxu1 %v422_v24  ;;  %4943 = vmatprep.mubr.msk.bf16.mxu1 %vm5730_vm0, %v5729_v0 }
 0x19f   :  { %4953 = vmatprep.subr.bf16.mxu1 %v5729_v0 }
 0x1a5   :  { %4944 = vmatmul.mubr.msk.bf16.vlgmr.msra.gmra.mrb[8].mxu1 %vm168_vm2, %v415_v26 }
 0x1a6   :  { %4954 = vmatpush3.bf16.xpose.msra.mxu1 %v549_v27  ;;  %4955 = vmatprep.mubr.msk.bf16.mxu1 %vm5730_vm0, %v5729_v0 }
 0x1a7   :  { %4965 = vmatprep.subr.bf16.mxu1 %v5729_v0 }
 0x1ad   :  { %4956 = vmatmul.mubr.msk.bf16.vlgmr.msra.gmra.mrb[12].mxu1 %vm168_vm2, %v542_v28 }
 0x1ae   :  { %4969 = vmatprep.mubr.msk.bf16.mxu1 %vm5730_vm0, %v5729_v0 }
 0x268   :  { %v209_v30 = vpop.f32.mrb[0].mxu1 }
 0x269   :  { %v210_v32 = vadd.f32 %v209_v30, %v78_v29  ;;  %v4921_v33 = vpop.f32.mrb[1].mxu1 }
 0x26a   :  { %v212_v34 = vpop.f32.mrb[2].mxu1 }
 0x26b   :  { %v216_v35 = vmul.f32 1.442695, %v210_v32  ;;  %v213_v36 = vadd.f32 %v212_v34, %v79_v31  ;;  %v4922_v37 = vpop.f32.mrb[3].mxu1 }
 0x26d   :  { %5501 = vpow2.f32 %v216_v35  ;;  %v218_v38 = vmul.f32 1.442695, %v213_v36 }
 0x26f   :  { %5503 = vpow2.f32 %v218_v38 }
 0x270   :  { %v331_v39 = vpop.f32.mrb[4].mxu1 }
 0x271   :  { %v332_v40 = vadd.f32 %v331_v39, %v78_v29  ;;  %v4933_v41 = vpop.f32.mrb[5].mxu1 }
 0x272   :  { %v334_v42 = vpop.f32.mrb[6].mxu1 }
 0x273   :  { %v338_v43 = vmul.f32 1.442695, %v332_v40  ;;  %v4934_v44 = vpop.f32.mrb[7].mxu1  ;;  %v335_v59 = vadd.f32 %v334_v42, %v79_v31 }
 0x275   :  { %5505 = vpow2.f32 %v338_v43  ;;  %v340_v60 = vmul.f32 1.442695, %v335_v59 }
 0x277   :  { %v5889_v45 = vpop.eup %5501  ;;  %5507 = vpow2.f32 %v340_v60 }
 0x278   :  { %v458_v46 = vpop.f32.mrb[8].mxu1  ;;  %v221_v47 = vsel %vm220_vm3, %v5889_v45, 0.0 }
 0x279   :  { %v5504_v48 = vpop.eup %5503  ;;  %222 = vadd.xlane.f32.xlu1 %v221_v47  ;;  %v4945_v49 = vpop.f32.mrb[9].mxu1  ;;  %v459_v62 = vadd.f32 %v458_v46, %v78_v29 }
 0x27a   :  { %v461_v50 = vpop.f32.mrb[10].mxu1  ;;  %v225_v51 = vsel %vm6604_vm4, %v5504_v48, 0.0 }
 0x27b   :  { %226 = vadd.xlane.f32.xlu0 %v225_v51  ;;  %v4946_v52 = vpop.f32.mrb[11].mxu1  ;;  %v462_v61 = vadd.f32 %v461_v50, %v79_v31  ;;  %v465_v4 = vmul.f32 1.442695, %v459_v62 }
 0x27d   :  { %v467_v63 = vmul.f32 1.442695, %v462_v61 }
 0x27f   :  { %v5894_v53 = vpop.eup %5505  ;;  %5509 = vpow2.f32 %v467_v63  ;;  %v5419_v63 = vld [vmem:[#allocation8 + $0x4] ss:$40 sps:$4 sm:$0xff]  }
 0x280   :  { %v585_v54 = vpop.f32.mrb[12].mxu1  ;;  %v342_v55 = vsel %vm220_vm3, %v5894_v53, 0.0  ;;  %5511 = vpow2.f32 %v465_v4  ;;  %4966 = vmatpush3.bf16.msra.mxu1 %v5419_v63 }
 0x281   :  { %343 = vadd.xlane.f32.xlu0 %v342_v55  ;;  %v4957_v56 = vpop.f32.mrb[13].mxu1  ;;  %v586_v5 = vadd.f32 %v585_v54, %v78_v29  ;;  %v5508_v8 = vpop.eup %5507  ;;  %4967 = vmatprep.subr.bf16.mxu1 %v5729_v0 }
 0x282   :  { %v588_v57 = vpop.f32.mrb[14].mxu1  ;;  %v345_v9 = vsel %vm6604_vm4, %v5508_v8, 0.0 }
 0x283   :  { %v4958_v58 = vpop.f32.mrb[15].mxu1  ;;  %v589_v1 = vadd.f32 %v588_v57, %v79_v31  ;;  %v592_v7 = vmul.f32 1.442695, %v586_v5 }
 0x285   :  { %v594_v6 = vmul.f32 1.442695, %v589_v1 }
 0x287   :  { %5513 = vpow2.f32 %v594_v6  ;;  %v5420_v6 = vld [vmem:[#allocation8 + $0x54] ss:$40 sps:$4 sm:$0xff]  }
 0x288   :  { %5515 = vpow2.f32 %v592_v7  ;;  %4968 = vmatpush3.bf16.msra.mxu1 %v5420_v6 }
 0x289   :  { %v5510_v10 = vpop.eup %5509  ;;  %4981 = vmatprep.subr.bf16.mxu1 %v5729_v0 }
 0x28a   :  { %353 = vrot.lane.b32.xlu1 %v5850_v16, %s5738_s14  ;;  %v5512_v11 = vpop.eup %5511  ;;  %v472_v12 = vsel %vm6604_vm4, %v5510_v10, 0.0 }
 0x28b   :  { %v469_v14 = vsel %vm220_vm3, %v5512_v11, 0.0 }
 0x291   :  { %v5904_v13 = vpop.eup %5513 }
 0x292   :  { %v599_v15 = vsel %vm6604_vm4, %v5904_v13, 0.0  ;;  %v5909_v17 = vpop.eup %5515  ;;  %vm6605_vm4 = vcmask 27648  }
 0x293   :  { %v596_v18 = vsel %vm220_vm3, %v5909_v17, 0.0 }
 0x297   :  { %233 = vrot.lane.b32.xlu0 %v5850_v16, %s5739_s16 }
 0x2ae   :  { %346 = vadd.xlane.f32.xlu1 %v345_v9 }
 0x2b2   :  { %473 = vadd.xlane.f32.xlu1 %v472_v12 }
 0x2b6   :  { %470 = vadd.xlane.f32.xlu0 %v469_v14  ;;  %600 = vadd.xlane.f32.xlu1 %v599_v15 }
 0x2ba   :  { %597 = vadd.xlane.f32.xlu0 %v596_v18 }
 0x2c7   :  { %480 = vrot.lane.b32.xlu1 %v5850_v16, %s5740_s5 }
 0x2d0   :  { %607 = vrot.lane.b32.xlu0 %v5850_v16, %s5725_s24 }
 0x306   :  { %v223_v19 = vpop.xlane.xlu1 %222 }
 0x307   :  { %5517 = vrcp.f32 %v223_v19 }
 0x308   :  { %v227_v20 = vpop.xlane.xlu0 %226 }
 0x309   :  { %5519 = vrcp.f32 %v227_v20 }
 0x30a   :  { %v354_v28 = vpop.permute.xlu1 %353 }
 0x30b   :  { %v359_v16 = vsel %vm6603_vm5, %v354_v28, 0 }
 0x30e   :  { %v344_v21 = vpop.xlane.xlu0 %343 }
 0x30f   :  { %5521 = vrcp.f32 %v344_v21  ;;  %v5421_v21 = vld [vmem:[#allocation8 + $0x8] ss:$40 sps:$4 sm:$0xff]  }
 0x311   :  { %v5518_v22 = vpop.eup %5517 }
 0x312   :  { %v234_v23 = vpop.permute.xlu0 %233  ;;  %v230_v26 = vmul.f32 %v5518_v22, %v5889_v45  ;;  %v5422_v22 = vld [vmem:[#allocation8 + $0x58] ss:$40 sps:$4 sm:$0xff]  }
 0x313   :  { %v5520_v24 = vpop.eup %5519  ;;  %v240_v25 = vsel %vm6603_vm5, %v234_v23, 0  ;;  %v5423_v23 = vld [vmem:[#allocation9] ss:$12 sps:$4 sm:$0xff]  }
 0x314   :  { %v231_v27 = vmul.f32 %v5520_v24, %v5504_v48  ;;  %4924 = vmatpush3.bf16.msra.mxu0 %v240_v25  ;;  %v5424_v24 = vld [vmem:[#allocation9 + $0x18] ss:$12 sps:$4 sm:$0xff]   ;;  %v5425_v25 = vld [vmem:[#allocation9 + $0x30] ss:$12 sps:$4 sm:$0xff]  }
 0x315   :  { %4935 = vmatprep.subr.bf16.mxu0 %v5729_v0 }
 0x316   :  { %v232_v29 = vpack.c.bf16 %v231_v27, %v230_v26  ;;  %v5426_v26 = vld [vmem:[#allocation9 + $0x48] ss:$12 sps:$4 sm:$0xff]   ;;  %v4537_v27 = vld [vmem:[%s6600_s8 + $0x1] ss:$0 sm:$0xff] }
 0x318   :  { %4926 = vmatmul.mubr.msk.bf16.vlgmr.msra.gmra.mrb[4].mxu0 %vm220_vm3, %v232_v29  ;;  %v738_v29 = vstv %s82_s19  ;;  %s4523_s19 = sld [smem:[#allocation4 + $0x6]] }
 0x319   :  { %4936 = vmatpush3.bf16.msra.mxu0 %v359_v16  ;;  %4937 = vmatprep.mubr.msk.bf16.mxu0 %vm5730_vm0, %v5729_v0  ;;  %v5522_v34 = vpop.eup %5521 }
 0x31a   :  { %4947 = vmatprep.subr.bf16.mxu0 %v5729_v0  ;;  %v350_v36 = vmul.f32 %v5522_v34, %v5894_v53 }
 0x33b   :  { %v347_v30 = vpop.xlane.xlu1 %346 }
 0x33c   :  { %5523 = vrcp.f32 %v347_v30 }
 0x33f   :  { %v474_v31 = vpop.xlane.xlu1 %473 }
 0x340   :  { %5525 = vrcp.f32 %v474_v31 }
 0x343   :  { %v471_v32 = vpop.xlane.xlu0 %470  ;;  %v601_v33 = vpop.xlane.xlu1 %600 }
 0x344   :  { %5527 = vrcp.f32 %v471_v32 }
 0x346   :  { %v5524_v35 = vpop.eup %5523 }
 0x347   :  { %v351_v37 = vmul.f32 %v5524_v35, %v5508_v8  ;;  %v598_v38 = vpop.xlane.xlu0 %597  ;;  %v481_v39 = vpop.permute.xlu1 %480 }
 0x348   :  { %5529 = vrcp.f32 %v598_v38  ;;  %v486_v41 = vsel %vm6603_vm5, %v481_v39, 0 }
 0x349   :  { %v352_v40 = vpack.c.bf16 %v351_v37, %v350_v36  ;;  %5531 = vrcp.f32 %v601_v33 }
 0x34a   :  { %v5526_v42 = vpop.eup %5525 }
 0x34b   :  { %4938 = vmatmul.mubr.msk.bf16.vlgmr.msra.gmra.mrb[8].mxu0 %vm220_vm3, %v352_v40  ;;  %v478_v44 = vmul.f32 %v5526_v42, %v5510_v10  ;;  %v608_v46 = vpop.permute.xlu0 %607 }
 0x34c   :  { %4948 = vmatpush3.bf16.msra.mxu0 %v486_v41  ;;  %4949 = vmatprep.mubr.msk.bf16.mxu0 %vm5730_vm0, %v5729_v0  ;;  %v613_v49 = vsel %vm6603_vm5, %v608_v46, 0 }
 0x34d   :  { %4959 = vmatprep.subr.bf16.mxu0 %v5729_v0 }
 0x34e   :  { %v5528_v43 = vpop.eup %5527 }
 0x34f   :  { %v477_v45 = vmul.f32 %v5528_v43, %v5512_v11  ;;  %v5427_v43 = vld [vmem:[#allocation9 + $0x60] ss:$12 sps:$4 sm:$0xff]  }
 0x351   :  { %v479_v47 = vpack.c.bf16 %v478_v44, %v477_v45  ;;  %v5428_v44 = vld [vmem:[#allocation9 + $0x78] ss:$12 sps:$4 sm:$0xff]  }
 0x352   :  { %v5530_v48 = vpop.eup %5529 }
 0x353   :  { %4950 = vmatmul.mubr.msk.bf16.vlgmr.msra.gmra.mrb[12].mxu0 %vm220_vm3, %v479_v47  ;;  %v5532_v50 = vpop.eup %5531  ;;  %v604_v51 = vmul.f32 %v5530_v48, %v5909_v17 }
 0x354   :  { %4960 = vmatpush3.bf16.msra.mxu0 %v613_v49  ;;  %4961 = vmatprep.mubr.msk.bf16.mxu0 %vm5730_vm0, %v5729_v0  ;;  %v605_v52 = vmul.f32 %v5532_v50, %v5904_v13 }
 0x355   :  { %4973 = vmatprep.subr.bf16.mxu0 %v5729_v0 }
 0x356   :  { %v606_v53 = vpack.c.bf16 %v605_v52, %v604_v51 }
 0x35b   :  { %4962 = vmatmul.mubr.msk.bf16.vlgmr.msra.gmra.mrb[16].mxu0 %vm220_vm3, %v606_v53  ;;  %v5429_v53 = vld [vmem:[#allocation8 + $0xc] ss:$40 sps:$4 sm:$0xff]  }
 0x35c   :  { %4977 = vmatprep.mubr.msk.bf16.mxu0 %vm5730_vm0, %v5729_v0  ;;  %4974 = vmatpush3.bf16.msra.mxu0 %v5421_v21 }
 0x35d   :  { %4975 = vmatprep.subr.bf16.mxu0 %v5729_v0 }
 0x360   :  { %4976 = vmatpush3.bf16.msra.mxu0 %v5422_v22 }
 0x361   :  { %4997 = vmatprep.subr.bf16.mxu0 %v5729_v0 }
 0x3eb   :  { %v276_v54 = vpop.f32.mrb[4].mxu0 }
 0x3ec   :  { %283 = vst.msk [vmem:[#allocation2] sm:$0xff] %vm168_vm2, %v276_v54  ;;  %v4927_v55 = vpop.f32.mrb[5].mxu0  ;;  %v5430_v54 = vld [vmem:[#allocation8 + $0x5c] ss:$40 sps:$4 sm:$0xff]  }
 0x3ed   :  { %v279_v56 = vpop.f32.mrb[6].mxu0  ;;  %v4545_v55 = vld [vmem:[%s6600_s8 + $0xa] ss:$0 sm:$0xff] }
 0x3ee   :  { %285 = vst.msk [vmem:[#allocation2 + $0x8] sm:$0xf] %vm284_vm6, %v279_v56  ;;  %v4928_v57 = vpop.f32.mrb[7].mxu0 }
 0x3ef   :  { %v924_v57 = vstv %s4518_s22 }
 0x41e   :  { %v395_v58 = vpop.f32.mrb[8].mxu0 }
 0x41f   :  { %404 = vrot.lane.b32.xlu1 %v395_v58, %s5741_s15  ;;  %v4939_v59 = vpop.f32.mrb[9].mxu0 }
 0x420   :  { %v398_v60 = vpop.f32.mrb[10].mxu0 }
 0x421   :  { %406 = vrot.lane.b32.xlu0 %v398_v60, %s5741_s15  ;;  %v4940_v61 = vpop.f32.mrb[11].mxu0 }
 0x426   :  { %v522_v62 = vpop.f32.mrb[12].mxu0 }
 0x427   :  { %531 = vrot.lane.b32.xlu1 %v522_v62, %s5742_s17  ;;  %v4951_v1 = vpop.f32.mrb[13].mxu0 }
 0x428   :  { %v525_v4 = vpop.f32.mrb[14].mxu0 }
 0x429   :  { %533 = vrot.lane.b32.xlu0 %v525_v4, %s5742_s17  ;;  %v4952_v5 = vpop.f32.mrb[15].mxu0 }
 0x42e   :  { %v649_v7 = vpop.f32.mrb[16].mxu0 }
 0x42f   :  { %658 = vrot.lane.b32.xlu1 %v649_v7, %s5743_s18  ;;  %v4963_v8 = vpop.f32.mrb[17].mxu0 }
 0x430   :  { %v652_v9 = vpop.f32.mrb[18].mxu0 }
 0x431   :  { %660 = vrot.lane.b32.xlu0 %v652_v9, %s5743_s18  ;;  %v4964_v10 = vpop.f32.mrb[19].mxu0 }
 0x491   :  { %v405_v11 = vpop.permute.xlu1 %404 }
 0x492   :  { %411 = vst.msk [vmem:[#allocation2] sm:$0xff] %vm410_vm7, %v405_v11  ;;  %v4553_v11 = vld [vmem:[%s6600_s8 + $0x3] ss:$0 sm:$0xff] }
 0x493   :  { %v407_v12 = vpop.permute.xlu0 %406 }
 0x494   :  { %413 = vst.msk [vmem:[#allocation2 + $0x8] sm:$0xf] %vm412_vm8, %v407_v12 }
 0x499   :  { %v532_v13 = vpop.permute.xlu1 %531 }
 0x49a   :  { %538 = vst.msk [vmem:[#allocation2] sm:$0xff] %vm537_vm9, %v532_v13 }
 0x49b   :  { %v534_v14 = vpop.permute.xlu0 %533 }
 0x49c   :  { %540 = vst.msk [vmem:[#allocation2 + $0x8] sm:$0xf] %vm539_vm10, %v534_v14 }
 0x4a1   :  { %v659_v15 = vpop.permute.xlu1 %658 }
 0x4a2   :  { %665 = vst.msk [vmem:[#allocation2] sm:$0xff] %vm664_vm11, %v659_v15 }
 0x4a3   :  { %v661_v17 = vpop.permute.xlu0 %660 }
 0x4a4   :  { %667 = vst.msk [vmem:[#allocation2 + $0x8] sm:$0xf] %vm666_vm12, %v661_v17 }
 0x4a9   :  { %v668_v19 = vld [vmem:[#allocation2] sm:$0xff] }
 0x4ab   :  { %v669_v18 = vld [vmem:[#allocation2 + $0x8] sm:$0xf] }
 0x4ac   :  { %v674_v20 = vpack.c.bf16 %v669_v18, %v668_v19 }
 0x4ae   :  { %4970 = vmatmul.mubr.msk.bf16.vlgmr.msra.gmra.mrb[16].mxu1 %vm116_vm1, %v674_v20 }
 0x4af   :  { %4993 = vmatprep.mubr.msk.bf16.mxu1 %vm5730_vm0, %v5729_v0  ;;  %4982 = vmatpush3.bf16.msra.mxu1 %v5423_v23 }
 0x4b0   :  { %4983 = vmatprep.subr.bf16.mxu1 %v5729_v0 }
 0x4b3   :  { %4984 = vmatpush3.bf16.msra.mxu1 %v5424_v24  ;;  %v77_v24 = vld [vmem:[%s6594_s2] sm:$0x3] }
 0x4b4   :  { %4985 = vmatprep.subr.bf16.mxu1 %v5729_v0 }
 0x4b7   :  { %4986 = vmatpush3.bf16.msra.mxu1 %v5425_v25  ;;  %v5431_v25 = vld [vmem:[#allocation8 + $0x10] ss:$40 sps:$4 sm:$0xff]  }
 0x4b8   :  { %4987 = vmatprep.subr.bf16.mxu1 %v5729_v0 }
 0x4bb   :  { %4988 = vmatpush3.bf16.msra.mxu1 %v5426_v26  ;;  %v5432_v26 = vld [vmem:[#allocation8 + $0x60] ss:$40 sps:$4 sm:$0xff]  }
 0x4bc   :  { %4989 = vmatprep.subr.bf16.mxu1 %v5729_v0 }
 0x4bf   :  { %4990 = vmatpush3.bf16.msra.mxu1 %v5427_v43 }
 0x4c0   :  { %4991 = vmatprep.subr.bf16.mxu1 %v5729_v0 }
 0x4c3   :  { %4992 = vmatpush3.bf16.msra.mxu1 %v5428_v44 }
 0x4c4   :  { %5019 = vmatprep.subr.bf16.mxu1 %v5729_v0 }
 0x581   :  { %v731_v28 = vpop.f32.mrb[16].mxu1 }
 0x582   :  { %v732_v16 = vadd.f32 %v4537_v27, %v731_v28  ;;  %v4971_v30 = vpop.f32.mrb[17].mxu1 }
 0x583   :  { %v734_v31 = vpop.f32.mrb[18].mxu1 }
 0x584   :  { %v739_v32 = vmul.f32 %v738_v29, %v732_v16  ;;  %v735_v33 = vadd.f32 %v4537_v27, %v734_v31  ;;  %v4972_v34 = vpop.f32.mrb[19].mxu1  ;;  %v5433_v31 = vld [vmem:[#allocation8 + $0x14] ss:$40 sps:$4 sm:$0xff]  }
 0x585   :  { %v5436_v34 = vld [vmem:[#allocation9 + $0x1c] ss:$12 sps:$4 sm:$0xff]  }
 0x586   :  { %v740_v35 = vmul.f32 %v738_v29, %v735_v33  ;;  %v744_v36 = vrot.slane %v739_v32, 4  ;;  %v5434_v32 = vld [vmem:[#allocation8 + $0x64] ss:$40 sps:$4 sm:$0xff]  }
 0x587   :  { %v5435_v33 = vld [vmem:[#allocation9 + $0x4] ss:$12 sps:$4 sm:$0xff]  }
 0x588   :  { %v745_v37 = vrot.slane %v740_v35, 4  ;;  %v749_v39 = vadd.f32 %v744_v36, %v5830_v2  ;;  %v4541_v2 = vld [vmem:[%s6600_s8 + $0x2] ss:$0 sm:$0xff] }
 0x589   :  { %v5437_v35 = vld [vmem:[#allocation9 + $0x34] ss:$12 sps:$4 sm:$0xff]  }
 0x58a   :  { %v746_v38 = vsel %vm743_vm13, %v744_v36, %v745_v37  ;;  %v5438_v36 = vld [vmem:[#allocation9 + $0x4c] ss:$12 sps:$4 sm:$0xff]   ;;  %v4558_v37 = vld [vmem:[%s6600_s8 + $0x4] ss:$0 sm:$0xff] }
 0x58b   :  { %v750_v40 = vadd.f32 %v746_v38, %v5835_v3 }
 0x58d   :  { %v755_v41 = vpack.c.bf16 %v750_v40, %v749_v39 }
 0x58f   :  { %v764_v42 = vrot.slane %v755_v41, 2 }
 0x591   :  { %4978 = vmatmul.mubr.msk.bf16.vlgmr.msra.gmra.mrb[20].mxu0 %vm116_vm1, %v764_v42 }
 0x592   :  { %5001 = vmatprep.mubr.msk.bf16.mxu0 %vm5730_vm0, %v5729_v0  ;;  %4998 = vmatpush3.bf16.msra.mxu0 %v5429_v53 }
 0x593   :  { %4999 = vmatprep.subr.bf16.mxu0 %v5729_v0 }
 0x596   :  { %5000 = vmatpush3.bf16.msra.mxu0 %v5430_v54 }
 0x597   :  { %5005 = vmatprep.subr.bf16.mxu0 %v5729_v0 }
 0x664   :  { %v814_v3 = vpop.f32.mrb[20].mxu0 }
 0x665   :  { %v815_v45 = vadd.f32 %v4541_v2, %v814_v3  ;;  %v4979_v46 = vpop.f32.mrb[21].mxu0 }
 0x666   :  { %v817_v47 = vpop.f32.mrb[22].mxu0  ;;  %v5439_v46 = vld [vmem:[#allocation9 + $0x64] ss:$12 sps:$4 sm:$0xff]  }
 0x667   :  { %v818_v48 = vadd.f32 %v4541_v2, %v817_v47  ;;  %v4980_v49 = vpop.f32.mrb[23].mxu0  ;;  %v821_v50 = vmax.f32 %v815_v45, 0.0  ;;  %v6030_v2 = vld [vmem:[%s6593_s1] sm:$0xff]  ;;  %v5440_v47 = vld [vmem:[#allocation9 + $0x7c] ss:$12 sps:$4 sm:$0xff]  }
 0x669   :  { %v822_v51 = vmax.f32 %v818_v48, 0.0  ;;  %v4562_v48 = vld [vmem:[%s6600_s8 + $0x5] ss:$0 sm:$0xff] }
 0x66b   :  { %v835_v52 = vpack.c.bf16 %v822_v51, %v821_v50 }
 0x66d   :  { %4994 = vmatmul.mubr.msk.bf16.vlgmr.msra.gmra.mrb[20].mxu1 %vm6610_vm14, %v835_v52 }
 0x66e   :  { %5023 = vmatprep.mubr.msk.bf16.mxu1 %vm5730_vm0, %v5729_v0  ;;  %5020 = vmatpush3.bf16.msra.mxu1 %v5433_v31 }
 0x66f   :  { %5021 = vmatprep.subr.bf16.mxu1 %v5729_v0 }
 0x672   :  { %5022 = vmatpush3.bf16.msra.mxu1 %v5434_v32  ;;  %v80_v32 = vld [vmem:[%s6596_s4] sm:$0xff] }
 0x673   :  { %5043 = vmatprep.subr.bf16.mxu1 %v5729_v0 }
 0x740   :  { %v917_v56 = vpop.f32.mrb[20].mxu1 }
 0x741   :  { %v918_v58 = vadd.f32 %v4545_v55, %v917_v56  ;;  %v4995_v59 = vpop.f32.mrb[21].mxu1  ;;  %v5441_v56 = vld [vmem:[#allocation8 + $0x18] ss:$40 sps:$4 sm:$0xff]  }
 0x742   :  { %v920_v60 = vpop.f32.mrb[22].mxu1 }
 0x743   :  { %v925_v61 = vmul.f32 %v924_v57, %v918_v58  ;;  %v921_v62 = vadd.f32 %v4545_v55, %v920_v60  ;;  %v4996_v63 = vpop.f32.mrb[23].mxu1  ;;  %v4566_v58 = vld [vmem:[%s6600_s8 + $0xb] ss:$0 sm:$0xff]  ;;  %v1292_v60 = vstv %s4520_s13  ;;  %s4521_s13 = sld [smem:[#allocation4 + $0x4]] }
 0x745   :  { %v926_v1 = vmul.f32 %v924_v57, %v921_v62  ;;  %v929_v4 = vrot.slane %v925_v61, 4  ;;  %v5442_v57 = vld [vmem:[#allocation8 + $0x68] ss:$40 sps:$4 sm:$0xff]  }
 0x747   :  { %v930_v5 = vrot.slane %v926_v1, 4  ;;  %v5989_v7 = vadd.f32 %v929_v4, %v749_v39  ;;  %v1122_v39 = vstv %s4519_s6 }
 0x749   :  { %v931_v6 = vsel %vm743_vm13, %v929_v4, %v930_v5  ;;  %v6049_v5 = vstv %s4523_s19 }
 0x74a   :  { %v5991_v8 = vadd.f32 %v931_v6, %v750_v40 }
 0x74c   :  { %v940_v9 = vpack.c.bf16 %v5991_v8, %v5989_v7 }
 0x74e   :  { %v949_v10 = vrot.slane %v940_v9, 2 }
 0x750   :  { %5002 = vmatmul.mubr.msk.bf16.vlgmr.msra.gmra.mrb[24].mxu0 %vm116_vm1, %v949_v10 }
 0x751   :  { %5007 = vmatprep.mubr.msk.bf16.mxu0 %vm5730_vm0, %v5729_v0 }
 0x823   :  { %v999_v12 = vpop.f32.mrb[24].mxu0 }
 0x824   :  { %v1000_v13 = vadd.f32 %v4553_v11, %v999_v12  ;;  %v5003_v14 = vpop.f32.mrb[25].mxu0  ;;  %v4574_v12 = vld [vmem:[%s6600_s8 + $0x6] ss:$0 sm:$0xff] }
 0x825   :  { %v1002_v15 = vpop.f32.mrb[26].mxu0 }
 0x826   :  { %v1003_v17 = vadd.f32 %v4553_v11, %v1002_v15  ;;  %v5004_v18 = vpop.f32.mrb[27].mxu0  ;;  %v1006_v19 = vmul.f32 0.35355338, %v1000_v13 }
 0x828   :  { %v1007_v20 = vmul.f32 0.35355338, %v1003_v17  ;;  %v1008_v21 = vpack.c.bf16 %v1003_v17, %v1000_v13 }
 0x82a   :  { %v1362_v22 = vpack.c.bf16 %v1007_v20, %v1006_v19  ;;  %v1013_v23 = vsel %vm6603_vm5, %v1008_v21, 0  ;;  %vm6608_vm5 = vcmask 31744  }
 0x82b   :  { %5006 = vmatpush3.bf16.msra.mxu0 %v1013_v23 }
 0x82c   :  { %1365 = vrot.lane.b32.xlu1 %v1362_v22, %s5731_s23  ;;  %5011 = vmatprep.subr.bf16.mxu0 %v5729_v0 }
 0x82e   :  { %5008 = vmatmul.mubr.msk.bf16.vlgmr.msra.gmra.mrb[28].mxu0 %vm220_vm3, %v77_v24 }
 0x82f   :  { %5012 = vmatpush3.bf16.msra.mxu0 %v5431_v25  ;;  %5015 = vmatprep.mubr.msk.bf16.mxu0 %vm5730_vm0, %v5729_v0 }
 0x830   :  { %1484 = vrot.lane.b32.xlu1 %v1362_v22, %s5733_s26  ;;  %5013 = vmatprep.subr.bf16.mxu0 %v5729_v0 }
 0x833   :  { %5014 = vmatpush3.bf16.msra.mxu0 %v5432_v26 }
 0x834   :  { %1609 = vrot.lane.b32.xlu1 %v1362_v22, %s5734_s27  ;;  %5027 = vmatprep.subr.bf16.mxu0 %v5729_v0 }
 0x838   :  { %1734 = vrot.lane.b32.xlu1 %v1362_v22, %s5736_s29 }
 0x89e   :  { %v1366_v21 = vpop.permute.xlu1 %1365 }
 0x8a2   :  { %v1485_v22 = vpop.permute.xlu1 %1484 }
 0x8a6   :  { %v1610_v23 = vpop.permute.xlu1 %1609 }
 0x8aa   :  { %v1735_v24 = vpop.permute.xlu1 %1734 }
 0x901   :  { %v1049_v27 = vpop.f32.mrb[28].mxu0 }
 0x902   :  { %v1059_v28 = vpack.c.bf16 %v1049_v27, %v1049_v27  ;;  %v5009_v29 = vpop.f32.mrb[29].mxu0 }
 0x903   :  { %v1052_v16 = vpop.f32.mrb[30].mxu0 }
 0x904   :  { %v5010_v30 = vpop.f32.mrb[31].mxu0  ;;  %5016 = vmatmul.mubr.msk.bf16.vlgmr.msra.gmra.mrb[32].mxu0 %vm116_vm1, %v1059_v28 }
 0x905   :  { %5039 = vmatprep.mubr.msk.bf16.mxu0 %vm5730_vm0, %v5729_v0  ;;  %5028 = vmatpush3.bf16.msra.mxu0 %v5435_v33 }
 0x906   :  { %5029 = vmatprep.subr.bf16.mxu0 %v5729_v0 }
 0x909   :  { %5030 = vmatpush3.bf16.msra.mxu0 %v5436_v34  ;;  %v81_v34 = vld [vmem:[%s6596_s4 + $0x8] sm:$0xf] }
 0x90a   :  { %5031 = vmatprep.subr.bf16.mxu0 %v5729_v0 }
 0x90d   :  { %5032 = vmatpush3.bf16.msra.mxu0 %v5437_v35 }
 0x90e   :  { %5033 = vmatprep.subr.bf16.mxu0 %v5729_v0 }
 0x911   :  { %5034 = vmatpush3.bf16.msra.mxu0 %v5438_v36 }
 0x912   :  { %5035 = vmatprep.subr.bf16.mxu0 %v5729_v0 }
 0x915   :  { %5036 = vmatpush3.bf16.msra.mxu0 %v5439_v46 }
 0x916   :  { %5037 = vmatprep.subr.bf16.mxu0 %v5729_v0 }
 0x919   :  { %5038 = vmatpush3.bf16.msra.mxu0 %v5440_v47 }
 0x91a   :  { %5063 = vmatprep.subr.bf16.mxu0 %v5729_v0 }
 0x9d7   :  { %v1116_v38 = vpop.f32.mrb[32].mxu0 }
 0x9d8   :  { %v1117_v40 = vadd.f32 %v4558_v37, %v1116_v38  ;;  %v5017_v41 = vpop.f32.mrb[33].mxu0 }
 0x9d9   :  { %v1119_v42 = vpop.f32.mrb[34].mxu0 }
 0x9da   :  { %v1123_v43 = vmul.f32 %v1122_v39, %v1117_v40  ;;  %v5018_v44 = vpop.f32.mrb[35].mxu0 }
 0x9dc   :  { %v1124_v3 = vadd.f32 %v6030_v2, %v1123_v43 }
 0x9de   :  { %v1129_v45 = vpack.c.bf16 %v1124_v3, %v1124_v3 }
 0x9e0   :  { %5024 = vmatmul.mubr.msk.bf16.vlgmr.msra.gmra.mrb[24].mxu1 %vm116_vm1, %v1129_v45 }
 0x9e1   :  { %5047 = vmatprep.mubr.msk.bf16.mxu1 %vm5730_vm0, %v5729_v0  ;;  %5044 = vmatpush3.bf16.msra.mxu1 %v5441_v56 }
 0x9e2   :  { %5045 = vmatprep.subr.bf16.mxu1 %v5729_v0 }
 0x9e5   :  { %5046 = vmatpush3.bf16.msra.mxu1 %v5442_v57 }
 0x9e6   :  { %5051 = vmatprep.subr.bf16.mxu1 %v5729_v0 }
 0xab3   :  { %v1186_v49 = vpop.f32.mrb[24].mxu1 }
 0xab4   :  { %v1187_v50 = vadd.f32 %v4562_v48, %v1186_v49  ;;  %v5025_v51 = vpop.f32.mrb[25].mxu1 }
 0xab5   :  { %v1189_v52 = vpop.f32.mrb[26].mxu1 }
 0xab6   :  { %v1192_v53 = vmax.f32 %v1187_v50, 0.0  ;;  %v5026_v54 = vpop.f32.mrb[27].mxu1 }
 0xab8   :  { %v1205_v55 = vpack.c.bf16 %v1192_v53, %v1192_v53 }
 0xaba   :  { %5040 = vmatmul.mubr.msk.bf16.vlgmr.msra.gmra.mrb[36].mxu0 %vm6610_vm14, %v1205_v55 }
 0xabb   :  { %5065 = vmatprep.mubr.msk.bf16.mxu0 %vm5730_vm0, %v5729_v0 }
 0xb8d   :  { %v1286_v59 = vpop.f32.mrb[36].mxu0 }
 0xb8e   :  { %v1287_v61 = vadd.f32 %v4566_v58, %v1286_v59  ;;  %v5041_v62 = vpop.f32.mrb[37].mxu0 }
 0xb8f   :  { %v1289_v63 = vpop.f32.mrb[38].mxu0 }
 0xb90   :  { %v1293_v1 = vmul.f32 %v1292_v60, %v1287_v61  ;;  %v5042_v4 = vpop.f32.mrb[39].mxu0 }
 0xb92   :  { %v1294_v6 = vadd.f32 %v1293_v1, %v1124_v3 }
 0xb94   :  { %v1299_v9 = vpack.c.bf16 %v1294_v6, %v1294_v6  ;;  %v2126_v10 = vmul.f32 %v6049_v5, %v1294_v6 }
 0xb96   :  { %v2127_v11 = vadd.f32 %v6030_v2, %v2126_v10  ;;  %5048 = vmatmul.mubr.msk.bf16.vlgmr.msra.gmra.mrb[28].mxu1 %vm116_vm1, %v1299_v9 }
 0xb97   :  { %5053 = vmatprep.mubr.msk.bf16.mxu1 %vm5730_vm0, %v5729_v0 }
 0xb98   :  { %2129 = vst.msk [vmem:[#allocation3] sm:$0xf] %vm6602_vm15, %v2127_v11  ;;  %vm6609_vm15 = vcmask 1041408  }
 0xc69   :  { %v1356_v13 = vpop.f32.mrb[28].mxu1 }
 0xc6a   :  { %v1357_v14 = vadd.f32 %v4574_v12, %v1356_v13  ;;  %v5049_v15 = vpop.f32.mrb[29].mxu1 }
 0xc6b   :  { %v1359_v17 = vpop.f32.mrb[30].mxu1 }
 0xc6c   :  { %v6060_v18 = vpack.c.bf16 %v1357_v14, %v1357_v14  ;;  %v5050_v19 = vpop.f32.mrb[31].mxu1 }
 0xc6e   :  { %1432 = vrot.lane.b32.xlu1 %v6060_v18, %s5731_s23  ;;  %1486 = vrot.lane.b32.xlu0 %v6060_v18, %s5732_s25  ;;  %v1371_v20 = vsel %vm168_vm2, %v6060_v18, 0 }
 0xc6f   :  { %5052 = vmatpush3.bf16.xpose.msra.mxu1 %v1371_v20 }
 0xc70   :  { %5057 = vmatprep.subr.bf16.mxu1 %v5729_v0 }
 0xc72   :  { %1611 = vrot.lane.b32.xlu0 %v6060_v18, %s5735_s28 }
 0xc76   :  { %1736 = vrot.lane.b32.xlu0 %v6060_v18, %s5737_s30  ;;  %5054 = vmatmul.mubr.msk.bf16.vlgmr.msra.gmra.mrb[32].mxu1 %vm168_vm2, %v1366_v21 }
 0xc77   :  { %5059 = vmatprep.mubr.msk.bf16.mxu1 %vm5730_vm0, %v5729_v0 }
 0xce0   :  { %v1433_v25 = vpop.permute.xlu1 %1432  ;;  %v1487_v26 = vpop.permute.xlu0 %1486 }
 0xce1   :  { %v1439_v27 = vsel %vm6609_vm15, %v1433_v25, 0  ;;  %v1492_v28 = vsel %vm168_vm2, %v1487_v26, 0 }
 0xce2   :  { %5058 = vmatpush3.bf16.msra.mxu1 %v1439_v27  ;;  %5064 = vmatpush3.bf16.xpose.msra.mxu0 %v1492_v28 }
 0xce3   :  { %5075 = vmatprep.subr.bf16.mxu0 %v5729_v0  ;;  %5069 = vmatprep.subr.bf16.mxu1 %v5729_v0 }
 0xce4   :  { %v1612_v29 = vpop.permute.xlu0 %1611 }
 0xce5   :  { %v1617_v16 = vsel %vm168_vm2, %v1612_v29, 0 }
 0xce8   :  { %v1737_v30 = vpop.permute.xlu0 %1736 }
 0xce9   :  { %5066 = vmatmul.mubr.msk.bf16.vlgmr.msra.gmra.mrb[40].mxu0 %vm168_vm2, %v1485_v22  ;;  %v1742_v31 = vsel %vm168_vm2, %v1737_v30, 0 }
 0xcea   :  { %5076 = vmatpush3.bf16.xpose.msra.mxu0 %v1617_v16  ;;  %5077 = vmatprep.mubr.msk.bf16.mxu0 %vm5730_vm0, %v5729_v0 }
 0xceb   :  { %5087 = vmatprep.subr.bf16.mxu0 %v5729_v0 }
 0xcf1   :  { %5078 = vmatmul.mubr.msk.bf16.vlgmr.msra.gmra.mrb[44].mxu0 %vm168_vm2, %v1610_v23 }
 0xcf2   :  { %5088 = vmatpush3.bf16.xpose.msra.mxu0 %v1742_v31  ;;  %5089 = vmatprep.mubr.msk.bf16.mxu0 %vm5730_vm0, %v5729_v0 }
 0xcf3   :  { %5099 = vmatprep.subr.bf16.mxu0 %v5729_v0 }
 0xcf9   :  { %5090 = vmatmul.mubr.msk.bf16.vlgmr.msra.gmra.mrb[48].mxu0 %vm168_vm2, %v1735_v24 }
 0xcfa   :  { %5103 = vmatprep.mubr.msk.bf16.mxu0 %vm5730_vm0, %v5729_v0 }
 0xd49   :  { %v1407_v33 = vpop.f32.mrb[32].mxu1 }
 0xd4a   :  { %v1408_v35 = vadd.f32 %v1407_v33, %v80_v32  ;;  %v5055_v36 = vpop.f32.mrb[33].mxu1 }
 0xd4b   :  { %v1410_v37 = vpop.f32.mrb[34].mxu1 }
 0xd4c   :  { %v1414_v38 = vmul.f32 1.442695, %v1408_v35  ;;  %v1411_v39 = vadd.f32 %v1410_v37, %v81_v34  ;;  %v5056_v40 = vpop.f32.mrb[35].mxu1 }
 0xd4e   :  { %5533 = vpow2.f32 %v1414_v38  ;;  %v1416_v41 = vmul.f32 1.442695, %v1411_v39 }
 0xd50   :  { %5535 = vpow2.f32 %v1416_v41 }
 0xd58   :  { %v6099_v42 = vpop.eup %5533 }
 0xd59   :  { %v1419_v43 = vsel %vm6608_vm5, %v6099_v42, 0.0 }
 0xd5a   :  { %v5536_v44 = vpop.eup %5535  ;;  %1420 = vadd.xlane.f32.xlu0 %v1419_v43 }
 0xd5b   :  { %v1423_v3 = vsel %vm6605_vm4, %v5536_v44, 0.0 }
 0xd5c   :  { %1424 = vadd.xlane.f32.xlu1 %v1423_v3 }
 0xdbc   :  { %v1528_v45 = vpop.f32.mrb[40].mxu0 }
 0xdbd   :  { %v1529_v46 = vadd.f32 %v1528_v45, %v80_v32  ;;  %v5067_v47 = vpop.f32.mrb[41].mxu0 }
 0xdbe   :  { %v1531_v48 = vpop.f32.mrb[42].mxu0 }
 0xdbf   :  { %v1535_v49 = vmul.f32 1.442695, %v1529_v46  ;;  %v1532_v50 = vadd.f32 %v1531_v48, %v81_v34  ;;  %v5068_v51 = vpop.f32.mrb[43].mxu0 }
 0xdc1   :  { %5537 = vpow2.f32 %v1535_v49  ;;  %v1537_v52 = vmul.f32 1.442695, %v1532_v50 }
 0xdc3   :  { %5539 = vpow2.f32 %v1537_v52 }
 0xdc4   :  { %v1653_v53 = vpop.f32.mrb[44].mxu0 }
 0xdc5   :  { %v1654_v54 = vadd.f32 %v1653_v53, %v80_v32  ;;  %v5079_v55 = vpop.f32.mrb[45].mxu0 }
 0xdc6   :  { %v1656_v56 = vpop.f32.mrb[46].mxu0 }
 0xdc7   :  { %v1660_v57 = vmul.f32 1.442695, %v1654_v54  ;;  %v1657_v58 = vadd.f32 %v1656_v56, %v81_v34  ;;  %v5080_v59 = vpop.f32.mrb[47].mxu0 }
 0xdc9   :  { %5541 = vpow2.f32 %v1660_v57  ;;  %v1662_v60 = vmul.f32 1.442695, %v1657_v58 }
 0xdcb   :  { %v5538_v61 = vpop.eup %5537  ;;  %5543 = vpow2.f32 %v1662_v60 }
 0xdcc   :  { %v1778_v62 = vpop.f32.mrb[48].mxu0  ;;  %v1539_v63 = vsel %vm6608_vm5, %v5538_v61, 0.0 }
 0xdcd   :  { %v5540_v1 = vpop.eup %5539  ;;  %v1779_v4 = vadd.f32 %v1778_v62, %v80_v32  ;;  %1540 = vadd.xlane.f32.xlu0 %v1539_v63  ;;  %v5091_v6 = vpop.f32.mrb[49].mxu0 }
 0xdce   :  { %v1781_v9 = vpop.f32.mrb[50].mxu0  ;;  %v1542_v13 = vsel %vm6605_vm4, %v5540_v1, 0.0  ;;  %v5444_v6 = vld [vmem:[#allocation8 + $0x6c] ss:$40 sps:$4 sm:$0xff]  }
 0xdcf   :  { %v1785_v10 = vmul.f32 1.442695, %v1779_v4  ;;  %v1782_v11 = vadd.f32 %v1781_v9, %v81_v34  ;;  %v5092_v12 = vpop.f32.mrb[51].mxu0 }
 0xdd1   :  { %5545 = vpow2.f32 %v1785_v10  ;;  %v1787_v14 = vmul.f32 1.442695, %v1782_v11  ;;  %1543 = vadd.xlane.f32.xlu0 %v1542_v13 }
 0xdd3   :  { %v5542_v15 = vpop.eup %5541  ;;  %5547 = vpow2.f32 %v1787_v14 }
 0xdd4   :  { %v1664_v17 = vsel %vm6608_vm5, %v5542_v15, 0.0 }
 0xdd5   :  { %v5544_v19 = vpop.eup %5543  ;;  %1665 = vadd.xlane.f32.xlu1 %v1664_v17 }
 0xdd6   :  { %v1667_v20 = vsel %vm6605_vm4, %v5544_v19, 0.0 }
 0xdd7   :  { %1668 = vadd.xlane.f32.xlu0 %v1667_v20 }
 0xddb   :  { %v5546_v21 = vpop.eup %5545 }
 0xddc   :  { %v1789_v22 = vsel %vm6608_vm5, %v5546_v21, 0.0 }
 0xddd   :  { %v5548_v23 = vpop.eup %5547  ;;  %1790 = vadd.xlane.f32.xlu1 %v1789_v22 }
 0xdde   :  { %v1792_v24 = vsel %vm6605_vm4, %v5548_v23, 0.0  ;;  %vm6606_vm4 = vcmask 261124  }
 0xddf   :  { %1793 = vadd.xlane.f32.xlu0 %v1792_v24 }
 0xde7   :  { %v1421_v25 = vpop.xlane.xlu0 %1420 }
 0xde8   :  { %5549 = vrcp.f32 %v1421_v25 }
 0xde9   :  { %v1425_v26 = vpop.xlane.xlu1 %1424 }
 0xdea   :  { %5551 = vrcp.f32 %v1425_v26 }
 0xdee   :  { %1675 = vrot.lane.b32.xlu1 %v6060_v18, %s5734_s27 }
 0xdf2   :  { %v5550_v27 = vpop.eup %5549  ;;  %1800 = vrot.lane.b32.xlu1 %v6060_v18, %s5736_s29 }
 0xdf3   :  { %v1428_v29 = vmul.f32 %v5550_v27, %v6099_v42  ;;  %v5445_v27 = vld [vmem:[#allocation8 + $0x20] ss:$40 sps:$4 sm:$0xff]  }
 0xdf4   :  { %v5552_v28 = vpop.eup %5551 }
 0xdf5   :  { %v1429_v16 = vmul.f32 %v5552_v28, %v5536_v44  ;;  %1550 = vrot.lane.b32.xlu0 %v6060_v18, %s5733_s26  ;;  %v5446_v28 = vld [vmem:[#allocation8 + $0x70] ss:$40 sps:$4 sm:$0xff]  }
 0xdf7   :  { %v1430_v30 = vpack.c.bf16 %v1429_v16, %v1428_v29  ;;  %v5447_v29 = vld [vmem:[#allocation9 + $0x8] ss:$12 sps:$4 sm:$0xff]   ;;  %v5448_v16 = vld [vmem:[#allocation9 + $0x20] ss:$12 sps:$4 sm:$0xff]  }
 0xdf9   :  { %5060 = vmatmul.mubr.msk.bf16.vlgmr.msra.gmra.mrb[36].mxu1 %vm6608_vm5, %v1430_v30  ;;  %v5449_v30 = vld [vmem:[#allocation9 + $0x38] ss:$12 sps:$4 sm:$0xff]  }
 0xdfa   :  { %5071 = vmatprep.mubr.msk.bf16.mxu1 %vm5730_vm0, %v5729_v0 }
 0xe5a   :  { %v1541_v31 = vpop.xlane.xlu0 %1540 }
 0xe5e   :  { %v1544_v32 = vpop.xlane.xlu0 %1543 }
 0xe5f   :  { %5553 = vrcp.f32 %v1544_v32  ;;  %v4586_v32 = vld [vmem:[%s6600_s8 + $0x7] ss:$0 sm:$0xff] }
 0xe60   :  { %5555 = vrcp.f32 %v1541_v31  ;;  %v5450_v31 = vld [vmem:[#allocation9 + $0x50] ss:$12 sps:$4 sm:$0xff]  }
 0xe62   :  { %v1666_v34 = vpop.xlane.xlu1 %1665 }
 0xe64   :  { %v1669_v33 = vpop.xlane.xlu0 %1668 }
 0xe65   :  { %5557 = vrcp.f32 %v1669_v33 }
 0xe66   :  { %5559 = vrcp.f32 %v1666_v34  ;;  %v1929_v34 = vstv %s4521_s13 }
 0xe69   :  { %v5554_v35 = vpop.eup %5553 }
 0xe6a   :  { %v1791_v36 = vpop.xlane.xlu1 %1790  ;;  %v5556_v38 = vpop.eup %5555  ;;  %v1548_v39 = vmul.f32 %v5554_v35, %v5540_v1  ;;  %v5443_v1 = vld [vmem:[#allocation8 + $0x1c] ss:$40 sps:$4 sm:$0xff]  }
 0xe6b   :  { %v1547_v40 = vmul.f32 %v5556_v38, %v5538_v61  ;;  %5100 = vmatpush3.bf16.msra.mxu0 %v5443_v1 }
 0xe6c   :  { %v1794_v37 = vpop.xlane.xlu0 %1793  ;;  %5101 = vmatprep.subr.bf16.mxu0 %v5729_v0 }
 0xe6d   :  { %5561 = vrcp.f32 %v1794_v37  ;;  %v1549_v43 = vpack.c.bf16 %v1548_v39, %v1547_v40 }
 0xe6e   :  { %v1676_v42 = vpop.permute.xlu1 %1675  ;;  %5563 = vrcp.f32 %v1791_v36 }
 0xe6f   :  { %v5558_v44 = vpop.eup %5557  ;;  %v1681_v3 = vsel %vm6609_vm15, %v1676_v42, 0  ;;  %5102 = vmatpush3.bf16.msra.mxu0 %v5444_v6 }
 0xe70   :  { %v1551_v18 = vpop.permute.xlu0 %1550  ;;  %v5560_v45 = vpop.eup %5559  ;;  %v1673_v46 = vmul.f32 %v5558_v44, %v5544_v19  ;;  %5115 = vmatprep.subr.bf16.mxu0 %v5729_v0 }
 0xe71   :  { %v1556_v41 = vsel %vm6609_vm15, %v1551_v18, 0  ;;  %v1672_v47 = vmul.f32 %v5560_v45, %v5542_v15 }
 0xe72   :  { %5070 = vmatpush3.bf16.msra.mxu1 %v1556_v41  ;;  %v1801_v48 = vpop.permute.xlu1 %1800 }
 0xe73   :  { %5081 = vmatprep.subr.bf16.mxu1 %v5729_v0  ;;  %v1674_v49 = vpack.c.bf16 %v1673_v46, %v1672_v47  ;;  %v1806_v51 = vsel %vm6609_vm15, %v1801_v48, 0  ;;  %v5451_v47 = vld [vmem:[#allocation9 + $0x68] ss:$12 sps:$4 sm:$0xff]   ;;  %v5452_v48 = vld [vmem:[#allocation9 + $0x80] ss:$12 sps:$4 sm:$0xff]  }
 0xe75   :  { %5072 = vmatmul.mubr.msk.bf16.vlgmr.msra.gmra.mrb[40].mxu1 %vm6608_vm5, %v1549_v43 }
 0xe76   :  { %5082 = vmatpush3.bf16.msra.mxu1 %v1681_v3  ;;  %5083 = vmatprep.mubr.msk.bf16.mxu1 %vm5730_vm0, %v5729_v0 }
 0xe77   :  { %5093 = vmatprep.subr.bf16.mxu1 %v5729_v0  ;;  %v5562_v50 = vpop.eup %5561 }
 0xe78   :  { %v5564_v52 = vpop.eup %5563  ;;  %v1798_v53 = vmul.f32 %v5562_v50, %v5548_v23 }
 0xe79   :  { %v1797_v54 = vmul.f32 %v5564_v52, %v5546_v21 }
 0xe7b   :  { %v1799_v55 = vpack.c.bf16 %v1798_v53, %v1797_v54 }
 0xe7d   :  { %5084 = vmatmul.mubr.msk.bf16.vlgmr.msra.gmra.mrb[44].mxu1 %vm6608_vm5, %v1674_v49 }
 0xe7e   :  { %5094 = vmatpush3.bf16.msra.mxu1 %v1806_v51  ;;  %5095 = vmatprep.mubr.msk.bf16.mxu1 %vm5730_vm0, %v5729_v0 }
 0xe7f   :  { %5107 = vmatprep.subr.bf16.mxu1 %v5729_v0 }
 0xe85   :  { %5096 = vmatmul.mubr.msk.bf16.vlgmr.msra.gmra.mrb[48].mxu1 %vm6608_vm5, %v1799_v55 }
 0xe86   :  { %5111 = vmatprep.mubr.msk.bf16.mxu1 %vm5730_vm0, %v5729_v0  ;;  %5108 = vmatpush3.bf16.msra.mxu1 %v5445_v27  ;;  %v5458_v27 = vld [vmem:[%s6599_s7 + $0x18] sm:$0xff]  }
 0xe87   :  { %5109 = vmatprep.subr.bf16.mxu1 %v5729_v0 }
 0xe8a   :  { %5110 = vmatpush3.bf16.msra.mxu1 %v5446_v28  ;;  %v4602_v28 = vld [vmem:[%s6600_s8 + $0x9] ss:$0 sm:$0xff] }
 0xe8b   :  { %5131 = vmatprep.subr.bf16.mxu1 %v5729_v0 }
 0xecc   :  { %v1475_v56 = vpop.f32.mrb[36].mxu1 }
 0xecd   :  { %1482 = vst.msk [vmem:[#allocation2] sm:$0xff] %vm168_vm2, %v1475_v56  ;;  %v5061_v57 = vpop.f32.mrb[37].mxu1 }
 0xece   :  { %v1478_v58 = vpop.f32.mrb[38].mxu1  ;;  %v5453_v57 = vld [vmem:[#allocation8 + $0x24] ss:$40 sps:$4 sm:$0xff]  }
 0xecf   :  { %1483 = vst.msk [vmem:[#allocation2 + $0x8] sm:$0xf] %vm284_vm6, %v1478_v58  ;;  %v5062_v59 = vpop.f32.mrb[39].mxu1  ;;  %v5454_v58 = vld [vmem:[#allocation8 + $0x74] ss:$40 sps:$4 sm:$0xff]  }
 0xed0   :  { %v4594_v59 = vld [vmem:[%s6600_s8 + $0xc] ss:$0 sm:$0xff] }
 0xf48   :  { %v1592_v60 = vpop.f32.mrb[40].mxu1 }
 0xf49   :  { %1601 = vrot.lane.b32.xlu0 %v1592_v60, %s5741_s15  ;;  %v5073_v61 = vpop.f32.mrb[41].mxu1 }
 0xf4a   :  { %v1595_v62 = vpop.f32.mrb[42].mxu1  ;;  %v2113_v61 = vstv %s4522_s21 }
 0xf4b   :  { %1603 = vrot.lane.b32.xlu1 %v1595_v62, %s5741_s15  ;;  %v5074_v63 = vpop.f32.mrb[43].mxu1 }
 0xf50   :  { %v1717_v4 = vpop.f32.mrb[44].mxu1 }
 0xf51   :  { %1726 = vrot.lane.b32.xlu0 %v1717_v4, %s5742_s17  ;;  %v5085_v9 = vpop.f32.mrb[45].mxu1 }
 0xf52   :  { %v1720_v10 = vpop.f32.mrb[46].mxu1 }
 0xf53   :  { %1728 = vrot.lane.b32.xlu1 %v1720_v10, %s5742_s17  ;;  %v5086_v11 = vpop.f32.mrb[47].mxu1 }
 0xf58   :  { %v1842_v12 = vpop.f32.mrb[48].mxu1 }
 0xf59   :  { %1851 = vrot.lane.b32.xlu0 %v1842_v12, %s5743_s18  ;;  %v5097_v13 = vpop.f32.mrb[49].mxu1 }
 0xf5a   :  { %v1845_v14 = vpop.f32.mrb[50].mxu1 }
 0xf5b   :  { %1853 = vrot.lane.b32.xlu1 %v1845_v14, %s5743_s18  ;;  %v5098_v15 = vpop.f32.mrb[51].mxu1 }
 0xfbb   :  { %v1602_v17 = vpop.permute.xlu0 %1601 }
 0xfbc   :  { %1607 = vst.msk [vmem:[#allocation2] sm:$0xff] %vm410_vm7, %v1602_v17 }
 0xfbd   :  { %v1604_v19 = vpop.permute.xlu1 %1603 }
 0xfbe   :  { %1608 = vst.msk [vmem:[#allocation2 + $0x8] sm:$0xf] %vm412_vm8, %v1604_v19 }
 0xfc3   :  { %v1727_v20 = vpop.permute.xlu0 %1726 }
 0xfc4   :  { %1732 = vst.msk [vmem:[#allocation2] sm:$0xff] %vm537_vm9, %v1727_v20 }
 0xfc5   :  { %v1729_v21 = vpop.permute.xlu1 %1728 }
 0xfc6   :  { %1733 = vst.msk [vmem:[#allocation2 + $0x8] sm:$0xf] %vm539_vm10, %v1729_v21  ;;  %v5630_v21 = vld [vmem:[%s6593_s1 + $0x8] sm:$0xff] }
 0xfcb   :  { %v1852_v22 = vpop.permute.xlu0 %1851 }
 0xfcc   :  { %1857 = vst.msk [vmem:[#allocation2] sm:$0xff] %vm664_vm11, %v1852_v22 }
 0xfcd   :  { %v1854_v23 = vpop.permute.xlu1 %1853 }
 0xfce   :  { %1858 = vst.msk [vmem:[#allocation2 + $0x8] sm:$0xf] %vm666_vm12, %v1854_v23 }
 0xfd3   :  { %v1859_v24 = vld [vmem:[#allocation2] sm:$0xff] }
 0xfd5   :  { %v1860_v25 = vld [vmem:[#allocation2 + $0x8] sm:$0xf] }
 0xfd6   :  { %v1865_v26 = vpack.c.bf16 %v1860_v25, %v1859_v24  ;;  %v5455_v25 = vld [vmem:[%s6599_s7] sm:$0xff]  }
 0xfd8   :  { %5104 = vmatmul.mubr.msk.bf16.vlgmr.msra.gmra.mrb[52].mxu0 %vm116_vm1, %v1865_v26 }
 0xfd9   :  { %5127 = vmatprep.mubr.msk.bf16.mxu0 %vm5730_vm0, %v5729_v0  ;;  %5116 = vmatpush3.bf16.msra.mxu0 %v5447_v29 }
 0xfda   :  { %5117 = vmatprep.subr.bf16.mxu0 %v5729_v0 }
 0xfdd   :  { %5118 = vmatpush3.bf16.msra.mxu0 %v5448_v16 }
 0xfde   :  { %5119 = vmatprep.subr.bf16.mxu0 %v5729_v0 }
 0xfe1   :  { %5120 = vmatpush3.bf16.msra.mxu0 %v5449_v30 }
 0xfe2   :  { %5121 = vmatprep.subr.bf16.mxu0 %v5729_v0 }
 0xfe5   :  { %5122 = vmatpush3.bf16.msra.mxu0 %v5450_v31 }
 0xfe6   :  { %5123 = vmatprep.subr.bf16.mxu0 %v5729_v0 }
 0xfe9   :  { %5124 = vmatpush3.bf16.msra.mxu0 %v5451_v47 }
 0xfea   :  { %5125 = vmatprep.subr.bf16.mxu0 %v5729_v0 }
 0xfed   :  { %5126 = vmatpush3.bf16.msra.mxu0 %v5452_v48 }
 0xfee   :  { %5151 = vmatprep.subr.bf16.mxu0 %v5729_v0 }
0x10ab   :  { %v1922_v33 = vpop.f32.mrb[52].mxu0 }
0x10ac   :  { %v1923_v35 = vadd.f32 %v4586_v32, %v1922_v33  ;;  %v5105_v36 = vpop.f32.mrb[53].mxu0 }
0x10ad   :  { %v1925_v37 = vpop.f32.mrb[54].mxu0 }
0x10ae   :  { %v1930_v38 = vmul.f32 %v1929_v34, %v1923_v35  ;;  %v1926_v39 = vadd.f32 %v4586_v32, %v1925_v37  ;;  %v5106_v18 = vpop.f32.mrb[55].mxu0  ;;  %v5459_v37 = vld [vmem:[#allocation8 + $0xa0] ss:$40 sps:$4 sm:$0xff]  }
0x10b0   :  { %v1931_v40 = vmul.f32 %v1929_v34, %v1926_v39  ;;  %v1934_v41 = vrot.slane %v1930_v38, 4  ;;  %v5460_v38 = vld [vmem:[#allocation8 + $0xf0] ss:$40 sps:$4 sm:$0xff]   ;;  %v4606_v39 = vld [vmem:[%s6600_s8 + $0xd] ss:$0 sm:$0xff] }
0x10b2   :  { %v1935_v42 = vrot.slane %v1931_v40, 4  ;;  %v1939_v44 = vadd.f32 %v1934_v41, %v5989_v7  ;;  %v4590_v7 = vld [vmem:[%s6600_s8 + $0x8] ss:$0 sm:$0xff]  ;;  %v2294_v40 = vstv %s4524_s12 }
0x10b4   :  { %v1936_v43 = vsel %vm743_vm13, %v1934_v41, %v1935_v42 }
0x10b5   :  { %v1940_v3 = vadd.f32 %v1936_v43, %v5991_v8 }
0x10b7   :  { %v1945_v45 = vpack.c.bf16 %v1940_v3, %v1939_v44 }
0x10b9   :  { %v1954_v46 = vrot.slane %v1945_v45, 2 }
0x10bb   :  { %5112 = vmatmul.mubr.msk.bf16.vlgmr.msra.gmra.mrb[52].mxu1 %vm116_vm1, %v1954_v46 }
0x10bc   :  { %5135 = vmatprep.mubr.msk.bf16.mxu1 %vm5730_vm0, %v5729_v0  ;;  %5132 = vmatpush3.bf16.msra.mxu1 %v5453_v57 }
0x10bd   :  { %5133 = vmatprep.subr.bf16.mxu1 %v5729_v0 }
0x10c0   :  { %5134 = vmatpush3.bf16.msra.mxu1 %v5454_v58 }
0x10c1   :  { %5139 = vmatprep.subr.bf16.mxu1 %v5729_v0 }
0x118e   :  { %v2004_v8 = vpop.f32.mrb[52].mxu1 }
0x118f   :  { %v2005_v49 = vadd.f32 %v4590_v7, %v2004_v8  ;;  %v5113_v50 = vpop.f32.mrb[53].mxu1 }
0x1190   :  { %v2007_v51 = vpop.f32.mrb[54].mxu1 }
0x1191   :  { %v2008_v52 = vadd.f32 %v4590_v7, %v2007_v51  ;;  %v5114_v53 = vpop.f32.mrb[55].mxu1  ;;  %v2011_v54 = vmax.f32 %v2005_v49, 0.0  ;;  %v4621_v49 = vld [vmem:[%s6600_s8 + $0xe] ss:$0 sm:$0xff] }
0x1193   :  { %v2012_v55 = vmax.f32 %v2008_v52, 0.0 }
0x1195   :  { %v2025_v56 = vpack.c.bf16 %v2012_v55, %v2011_v54 }
0x1197   :  { %5128 = vmatmul.mubr.msk.bf16.vlgmr.msra.gmra.mrb[56].mxu0 %vm6610_vm14, %v2025_v56 }
0x1198   :  { %5155 = vmatprep.mubr.msk.bf16.mxu0 %vm5730_vm0, %v5729_v0  ;;  %5152 = vmatpush3.bf16.msra.mxu0 %v5459_v37 }
0x1199   :  { %5153 = vmatprep.subr.bf16.mxu0 %v5729_v0 }
0x119c   :  { %5154 = vmatpush3.bf16.msra.mxu0 %v5460_v38 }
0x119d   :  { %5165 = vmatprep.subr.bf16.mxu0 %v5729_v0 }
0x126a   :  { %v2106_v60 = vpop.f32.mrb[56].mxu0 }
0x126b   :  { %v2107_v62 = vadd.f32 %v4594_v59, %v2106_v60  ;;  %v5129_v63 = vpop.f32.mrb[57].mxu0 }
0x126c   :  { %v2109_v1 = vpop.f32.mrb[58].mxu0 }
0x126d   :  { %v2114_v4 = vmul.f32 %v2113_v61, %v2107_v62  ;;  %v2110_v6 = vadd.f32 %v4594_v59, %v2109_v1  ;;  %v5130_v9 = vpop.f32.mrb[59].mxu0 }
0x126f   :  { %v2118_v10 = vrot.slane %v2114_v4, 4  ;;  %v2115_v11 = vmul.f32 %v2113_v61, %v2110_v6 }
0x1271   :  { %v2123_v12 = vadd.f32 %v2118_v10, %v1939_v44  ;;  %v2119_v13 = vrot.slane %v2115_v11, 4 }
0x1273   :  { %v2130_v14 = vmul.f32 %v6049_v5, %v2123_v12  ;;  %v2120_v15 = vsel %vm743_vm13, %v2118_v10, %v2119_v13 }
0x1274   :  { %v2124_v17 = vadd.f32 %v2120_v15, %v1940_v3 }
0x1275   :  { %v2132_v19 = vadd.f32 %v6030_v2, %v2130_v14  ;;  %v5456_v2 = vld [vmem:[%s6599_s7 + $0x8] sm:$0xff]   ;;  %v5631_v14 = vld [vmem:[%s6595_s3] sm:$0xff] }
0x1276   :  { %v2131_v20 = vmul.f32 %v6049_v5, %v2124_v17  ;;  %v5457_v5 = vld [vmem:[%s6599_s7 + $0x10] sm:$0xff]  }
0x1277   :  { %2135 = vst.msk [vmem:[#allocation3] sm:$0xf0] %vm6606_vm4, %v2132_v19  ;;  %vm6607_vm4 = vcmask 523264  }
0x1278   :  { %v2133_v22 = vadd.f32 %v5630_v21, %v2131_v20  ;;  %v5632_v21 = vld [vmem:[%s6595_s3 + $0x8] sm:$0xf]  ;;  %s4612_s3 = sld [smem:[#allocation4 + $0x80]] }
0x127a   :  { %2136 = vst.msk [vmem:[#allocation3 + $0x8] sm:$0xff] %vm116_vm1, %v2133_v22 }
0x127e   :  { %v2137_v23 = vld [vmem:[#allocation3] sm:$0xff] }
0x1281   :  { %v2138_v24 = vld [vmem:[#allocation3 + $0x8] sm:$0xff] }
0x1282   :  { %v2143_v26 = vpack.c.bf16 %v2138_v24, %v2137_v23 }
0x1284   :  { %5136 = vmatmul.mubr.msk.bf16.vlgmr.msra.gmra.mrb[56].mxu1 %vm116_vm1, %v2143_v26 }
0x1285   :  { %5140 = vmatpush3.bf16.msra.mxu1 %v5455_v25  ;;  %5147 = vmatprep.mubr.msk.bf16.mxu1 %vm5730_vm0, %v5729_v0 }
0x1286   :  { %5141 = vmatprep.subr.bf16.mxu1 %v5729_v0 }
0x1289   :  { %5142 = vmatpush3.bf16.msra.mxu1 %v5456_v2 }
0x128a   :  { %5143 = vmatprep.subr.bf16.mxu1 %v5729_v0 }
0x128d   :  { %5144 = vmatpush3.bf16.msra.mxu1 %v5457_v5 }
0x128e   :  { %5145 = vmatprep.subr.bf16.mxu1 %v5729_v0 }
0x1291   :  { %5146 = vmatpush3.bf16.msra.mxu1 %v5458_v27 }
0x1292   :  { %5159 = vmatprep.subr.bf16.mxu1 %v5729_v0 }
0x1357   :  { %v2200_v29 = vpop.f32.mrb[56].mxu1 }
0x1358   :  { %v2201_v16 = vadd.f32 %v4602_v28, %v2200_v29  ;;  %v5137_v30 = vpop.f32.mrb[57].mxu1 }
0x1359   :  { %v2203_v31 = vpop.f32.mrb[58].mxu1 }
0x135a   :  { %v2204_v32 = vadd.f32 %v4602_v28, %v2203_v31  ;;  %v5138_v33 = vpop.f32.mrb[59].mxu1  ;;  %v2207_v34 = vmax.f32 %v2201_v16, 0.0 }
0x135c   :  { %v2208_v35 = vmax.f32 %v2204_v32, 0.0 }
0x135e   :  { %v2209_v36 = vpack.c.bf16 %v2208_v35, %v2207_v34 }
0x1360   :  { %5148 = vmatmul.mubr.msk.bf16.vlgmr.msra.gmra.mrb[60].mxu1 %vm6607_vm4, %v2209_v36  ;;  %vm6611_vm4 = vcmask 93184  }
0x1361   :  { %5161 = vmatprep.mubr.msk.bf16.mxu1 %vm5730_vm0, %v5729_v0  ;;  %vm6612_vm5 = vmmov %vm6611_vm4 }
0x1362   :  { %vm6613_vm15 = vmmov %vm6611_vm4 }
0x1433   :  { %v2287_v18 = vpop.f32.mrb[60].mxu1 }
0x1434   :  { %v2288_v41 = vadd.f32 %v4606_v39, %v2287_v18  ;;  %v5149_v42 = vpop.f32.mrb[61].mxu1 }
0x1435   :  { %v2290_v43 = vpop.f32.mrb[62].mxu1 }
0x1436   :  { %v2295_v44 = vmul.f32 %v2294_v40, %v2288_v41  ;;  %v2291_v3 = vadd.f32 %v4606_v39, %v2290_v43  ;;  %v5150_v45 = vpop.f32.mrb[63].mxu1 }
0x1438   :  { %v2296_v46 = vmul.f32 %v2294_v40, %v2291_v3  ;;  %v6221_v47 = vadd.f32 %v2295_v44, %v2137_v23 }
0x143a   :  { %v6223_v48 = vadd.f32 %v2296_v46, %v2138_v24 }
0x143c   :  { %v2312_v7 = vpack.c.bf16 %v6223_v48, %v6221_v47 }
0x143e   :  { %v2322_v8 = vrot.slane %v2312_v7, 2 }
0x1440   :  { %5156 = vmatmul.mubr.msk.bf16.vlgmr.msra.gmra.mrb[60].mxu0 %vm116_vm1, %v2322_v8 }
0x1441   :  { %5167 = vmatprep.mubr.msk.bf16.mxu0 %vm5730_vm0, %v5729_v0 }
0x1513   :  { %v2372_v50 = vpop.f32.mrb[60].mxu0 }
0x1514   :  { %v2373_v51 = vadd.f32 %v4621_v49, %v2372_v50  ;;  %v5157_v52 = vpop.f32.mrb[61].mxu0 }
0x1515   :  { %v2375_v53 = vpop.f32.mrb[62].mxu0 }
0x1516   :  { %v2376_v54 = vadd.f32 %v4621_v49, %v2375_v53  ;;  %v5158_v55 = vpop.f32.mrb[63].mxu0  ;;  %v2379_v56 = vmul.f32 0.35355338, %v2373_v51 }
0x1518   :  { %v2380_v57 = vmul.f32 0.35355338, %v2376_v54  ;;  %v6233_v58 = vpack.c.bf16 %v2376_v54, %v2373_v51 }
0x151a   :  { %v2381_v59 = vpack.c.bf16 %v2380_v57, %v2379_v56  ;;  %2502 = vrot.lane.b32.xlu1 %v6233_v58, %s5733_s26  ;;  %2384 = vrot.lane.b32.xlu0 %v6233_v58, %s5731_s23 }
0x151e   :  { %2627 = vrot.lane.b32.xlu1 %v6233_v58, %s5734_s27  ;;  %2500 = vrot.lane.b32.xlu0 %v2381_v59, %s5732_s25 }
0x1522   :  { %2752 = vrot.lane.b32.xlu1 %v6233_v58, %s5736_s29  ;;  %2625 = vrot.lane.b32.xlu0 %v2381_v59, %s5735_s28 }
0x1526   :  { %2750 = vrot.lane.b32.xlu0 %v2381_v59, %s5737_s30 }
0x158c   :  { %v2385_v60 = vpop.permute.xlu0 %2384  ;;  %v2503_v62 = vpop.permute.xlu1 %2502 }
0x158d   :  { %v2390_v61 = vsel %vm168_vm2, %v2385_v60, 0  ;;  %v2508_v63 = vsel %vm168_vm2, %v2503_v62, 0 }
0x158e   :  { %5160 = vmatpush3.bf16.xpose.msra.mxu1 %v2390_v61 }
0x158f   :  { %5171 = vmatprep.subr.bf16.mxu1 %v5729_v0 }
0x1590   :  { %v2628_v1 = vpop.permute.xlu1 %2627  ;;  %v2501_v4 = vpop.permute.xlu0 %2500 }
0x1591   :  { %v2633_v6 = vsel %vm168_vm2, %v2628_v1, 0 }
0x1594   :  { %v2753_v9 = vpop.permute.xlu1 %2752  ;;  %v2626_v10 = vpop.permute.xlu0 %2625 }
0x1595   :  { %5162 = vmatmul.mubr.msk.bf16.vlgmr.msra.gmra.mrb[64].mxu1 %vm168_vm2, %v2381_v59  ;;  %v2758_v11 = vsel %vm168_vm2, %v2753_v9, 0 }
0x1596   :  { %5172 = vmatpush3.bf16.xpose.msra.mxu1 %v2508_v63  ;;  %5173 = vmatprep.mubr.msk.bf16.mxu1 %vm5730_vm0, %v5729_v0 }
0x1597   :  { %5183 = vmatprep.subr.bf16.mxu1 %v5729_v0 }
0x1598   :  { %v2751_v12 = vpop.permute.xlu0 %2750 }
0x159d   :  { %5174 = vmatmul.mubr.msk.bf16.vlgmr.msra.gmra.mrb[68].mxu1 %vm168_vm2, %v2501_v4 }
0x159e   :  { %5184 = vmatpush3.bf16.xpose.msra.mxu1 %v2633_v6  ;;  %5185 = vmatprep.mubr.msk.bf16.mxu1 %vm5730_vm0, %v5729_v0 }
0x159f   :  { %5195 = vmatprep.subr.bf16.mxu1 %v5729_v0 }
0x15a5   :  { %5186 = vmatmul.mubr.msk.bf16.vlgmr.msra.gmra.mrb[72].mxu1 %vm168_vm2, %v2626_v10 }
0x15a6   :  { %5196 = vmatpush3.bf16.xpose.msra.mxu1 %v2758_v11  ;;  %5197 = vmatprep.mubr.msk.bf16.mxu1 %vm5730_vm0, %v5729_v0 }
0x15a7   :  { %5207 = vmatprep.subr.bf16.mxu1 %v5729_v0 }
0x15ad   :  { %5198 = vmatmul.mubr.msk.bf16.vlgmr.msra.gmra.mrb[76].mxu1 %vm168_vm2, %v2751_v12 }
0x15ae   :  { %5211 = vmatprep.mubr.msk.bf16.mxu1 %vm5730_vm0, %v5729_v0 }
0x1668   :  { %v2426_v13 = vpop.f32.mrb[64].mxu1 }
0x1669   :  { %v2427_v15 = vadd.f32 %v5631_v14, %v2426_v13  ;;  %v5163_v17 = vpop.f32.mrb[65].mxu1 }
0x166a   :  { %v2429_v19 = vpop.f32.mrb[66].mxu1 }
0x166b   :  { %v2433_v20 = vmul.f32 1.442695, %v2427_v15  ;;  %v2430_v22 = vadd.f32 %v5632_v21, %v2429_v19  ;;  %v5164_v23 = vpop.f32.mrb[67].mxu1 }
0x166d   :  { %5565 = vpow2.f32 %v2433_v20  ;;  %v2435_v24 = vmul.f32 1.442695, %v2430_v22 }
0x166f   :  { %5567 = vpow2.f32 %v2435_v24 }
0x1670   :  { %v2544_v25 = vpop.f32.mrb[68].mxu1 }
0x1671   :  { %v2545_v26 = vadd.f32 %v5631_v14, %v2544_v25  ;;  %v5175_v2 = vpop.f32.mrb[69].mxu1 }
0x1672   :  { %v2547_v5 = vpop.f32.mrb[70].mxu1 }
0x1673   :  { %v2551_v27 = vmul.f32 1.442695, %v2545_v26  ;;  %v5176_v28 = vpop.f32.mrb[71].mxu1  ;;  %v2548_v41 = vadd.f32 %v5632_v21, %v2547_v5 }
0x1675   :  { %5569 = vpow2.f32 %v2551_v27  ;;  %v2553_v42 = vmul.f32 1.442695, %v2548_v41 }
0x1677   :  { %v5566_v29 = vpop.eup %5565  ;;  %5571 = vpow2.f32 %v2553_v42 }
0x1678   :  { %v2669_v16 = vpop.f32.mrb[72].mxu1  ;;  %v2437_v30 = vsel %vm220_vm3, %v5566_v29, 0.0 }
0x1679   :  { %v5568_v31 = vpop.eup %5567  ;;  %2438 = vadd.xlane.f32.xlu1 %v2437_v30  ;;  %v5187_v32 = vpop.f32.mrb[73].mxu1  ;;  %v2670_v44 = vadd.f32 %v5631_v14, %v2669_v16 }
0x167a   :  { %v2672_v33 = vpop.f32.mrb[74].mxu1  ;;  %v2440_v34 = vsel %vm6611_vm4, %v5568_v31, 0.0 }
0x167b   :  { %2441 = vadd.xlane.f32.xlu0 %v2440_v34  ;;  %v5188_v35 = vpop.f32.mrb[75].mxu1  ;;  %v2673_v43 = vadd.f32 %v5632_v21, %v2672_v33  ;;  %v2676_v46 = vmul.f32 1.442695, %v2670_v44  ;;  %v5461_v44 = vld [vmem:[#allocation8 + $0xa4] ss:$40 sps:$4 sm:$0xff]  }
0x167c   :  { %5208 = vmatpush3.bf16.msra.mxu1 %v5461_v44 }
0x167d   :  { %v2678_v3 = vmul.f32 1.442695, %v2673_v43  ;;  %5209 = vmatprep.subr.bf16.mxu1 %v5729_v0 }
0x167f   :  { %v6274_v36 = vpop.eup %5569  ;;  %5573 = vpow2.f32 %v2678_v3 }
0x1680   :  { %v2794_v37 = vpop.f32.mrb[76].mxu1  ;;  %v2555_v38 = vsel %vm220_vm3, %v6274_v36, 0.0  ;;  %5575 = vpow2.f32 %v2676_v46 }
0x1681   :  { %2556 = vadd.xlane.f32.xlu0 %v2555_v38  ;;  %v5199_v39 = vpop.f32.mrb[77].mxu1  ;;  %v2795_v7 = vadd.f32 %v5631_v14, %v2794_v37  ;;  %v5572_v50 = vpop.eup %5571 }
0x1682   :  { %v2797_v18 = vpop.f32.mrb[78].mxu1  ;;  %v2558_v51 = vsel %vm6611_vm4, %v5572_v50, 0.0 }
0x1683   :  { %v5200_v40 = vpop.f32.mrb[79].mxu1  ;;  %v2798_v45 = vadd.f32 %v5632_v21, %v2797_v18  ;;  %v2801_v49 = vmul.f32 1.442695, %v2795_v7 }
0x1685   :  { %v2803_v8 = vmul.f32 1.442695, %v2798_v45  ;;  %v5462_v45 = vld [vmem:[#allocation8 + $0xf4] ss:$40 sps:$4 sm:$0xff]  }
0x1686   :  { %5210 = vmatpush3.bf16.msra.mxu1 %v5462_v45 }
0x1687   :  { %5577 = vpow2.f32 %v2803_v8  ;;  %5223 = vmatprep.subr.bf16.mxu1 %v5729_v0 }
0x1688   :  { %5579 = vpow2.f32 %v2801_v49 }
0x1689   :  { %v5574_v52 = vpop.eup %5573 }
0x168a   :  { %2566 = vrot.lane.b32.xlu1 %v6233_v58, %s5738_s14  ;;  %v5576_v53 = vpop.eup %5575  ;;  %v2683_v54 = vsel %vm6612_vm5, %v5574_v52, 0.0  ;;  %vm6614_vm5 = vcmask 1045504  }
0x168b   :  { %v2680_v56 = vsel %vm220_vm3, %v5576_v53, 0.0  ;;  %vm6616_vm4 = vmmov %vm6614_vm5 }
0x1691   :  { %v6284_v55 = vpop.eup %5577 }
0x1692   :  { %v2808_v57 = vsel %vm6613_vm15, %v6284_v55, 0.0  ;;  %v5580_v59 = vpop.eup %5579  ;;  %vm6615_vm15 = vmmov %vm6614_vm5 }
0x1693   :  { %v2805_v60 = vsel %vm220_vm3, %v5580_v59, 0.0 }
0x1697   :  { %2448 = vrot.lane.b32.xlu0 %v6233_v58, %s5739_s16 }
0x16ae   :  { %2559 = vadd.xlane.f32.xlu1 %v2558_v51 }
0x16b2   :  { %2684 = vadd.xlane.f32.xlu1 %v2683_v54 }
0x16b6   :  { %2681 = vadd.xlane.f32.xlu0 %v2680_v56  ;;  %2809 = vadd.xlane.f32.xlu1 %v2808_v57 }
0x16ba   :  { %2806 = vadd.xlane.f32.xlu0 %v2805_v60 }
0x16c7   :  { %2691 = vrot.lane.b32.xlu1 %v6233_v58, %s5740_s5 }
0x16d0   :  { %2816 = vrot.lane.b32.xlu0 %v6233_v58, %s5725_s24  ;;  %s4618_s24 = sld [smem:[#allocation4 + $0x86]] }
0x1706   :  { %v2439_v61 = vpop.xlane.xlu1 %2438 }
0x1707   :  { %5581 = vrcp.f32 %v2439_v61 }
0x1708   :  { %v2442_v62 = vpop.xlane.xlu0 %2441 }
0x1709   :  { %5583 = vrcp.f32 %v2442_v62 }
0x170a   :  { %v2567_v12 = vpop.permute.xlu1 %2566 }
0x170b   :  { %v2572_v14 = vsel %vm6615_vm15, %v2567_v12, 0  ;;  %vm6618_vm15 = vmmov %vm6616_vm4 }
0x170e   :  { %v2557_v63 = vpop.xlane.xlu0 %2556 }
0x170f   :  { %5585 = vrcp.f32 %v2557_v63  ;;  %v5463_v63 = vld [vmem:[#allocation8 + $0xa8] ss:$40 sps:$4 sm:$0xff]  }
0x1711   :  { %v5582_v1 = vpop.eup %5581 }
0x1712   :  { %v2449_v4 = vpop.permute.xlu0 %2448  ;;  %v2445_v10 = vmul.f32 %v5582_v1, %v5566_v29  ;;  %v5464_v1 = vld [vmem:[#allocation8 + $0xf8] ss:$40 sps:$4 sm:$0xff]  }
0x1713   :  { %v5584_v6 = vpop.eup %5583  ;;  %v2454_v9 = vsel %vm6614_vm5, %v2449_v4, 0  ;;  %vm6617_vm5 = vmmov %vm6616_vm4  ;;  %v5465_v4 = vld [vmem:[#allocation9 + $0x90] ss:$12 sps:$4 sm:$0xff]  }
0x1714   :  { %v2446_v11 = vmul.f32 %v5584_v6, %v5568_v31  ;;  %5166 = vmatpush3.bf16.msra.mxu0 %v2454_v9  ;;  %v5466_v6 = vld [vmem:[#allocation9 + $0xa8] ss:$12 sps:$4 sm:$0xff]   ;;  %v5467_v9 = vld [vmem:[#allocation9 + $0xc0] ss:$12 sps:$4 sm:$0xff]  }
0x1715   :  { %5177 = vmatprep.subr.bf16.mxu0 %v5729_v0 }
0x1716   :  { %v2447_v13 = vpack.c.bf16 %v2446_v11, %v2445_v10  ;;  %v5468_v10 = vld [vmem:[#allocation9 + $0xd8] ss:$12 sps:$4 sm:$0xff]   ;;  %v4634_v11 = vld [vmem:[%s6600_s8 + $0xf] ss:$0 sm:$0xff] }
0x1718   :  { %5168 = vmatmul.mubr.msk.bf16.vlgmr.msra.gmra.mrb[64].mxu0 %vm220_vm3, %v2447_v13  ;;  %v2945_v13 = vstv %s4612_s3  ;;  %s4615_s3 = sld [smem:[#allocation4 + $0x83]] }
0x1719   :  { %5178 = vmatpush3.bf16.msra.mxu0 %v2572_v14  ;;  %5179 = vmatprep.mubr.msk.bf16.mxu0 %vm5730_vm0, %v5729_v0  ;;  %v5586_v20 = vpop.eup %5585 }
0x171a   :  { %5189 = vmatprep.subr.bf16.mxu0 %v5729_v0  ;;  %v2563_v22 = vmul.f32 %v5586_v20, %v6274_v36 }
0x173b   :  { %v2560_v58 = vpop.xlane.xlu1 %2559 }
0x173c   :  { %5587 = vrcp.f32 %v2560_v58 }
0x173f   :  { %v2685_v15 = vpop.xlane.xlu1 %2684 }
0x1740   :  { %5589 = vrcp.f32 %v2685_v15 }
0x1743   :  { %v2682_v17 = vpop.xlane.xlu0 %2681  ;;  %v2810_v19 = vpop.xlane.xlu1 %2809 }
0x1744   :  { %5591 = vrcp.f32 %v2682_v17 }
0x1746   :  { %v5588_v21 = vpop.eup %5587 }
0x1747   :  { %v2564_v23 = vmul.f32 %v5588_v21, %v5572_v50  ;;  %v2807_v24 = vpop.xlane.xlu0 %2806  ;;  %v2692_v25 = vpop.permute.xlu1 %2691 }
0x1748   :  { %5593 = vrcp.f32 %v2807_v24  ;;  %v2697_v2 = vsel %vm6616_vm4, %v2692_v25, 0  ;;  %vm6620_vm4 = vcmask 1041408  }
0x1749   :  { %v2565_v26 = vpack.c.bf16 %v2564_v23, %v2563_v22  ;;  %5595 = vrcp.f32 %v2810_v19 }
0x174a   :  { %v5590_v5 = vpop.eup %5589 }
0x174b   :  { %5180 = vmatmul.mubr.msk.bf16.vlgmr.msra.gmra.mrb[68].mxu0 %vm220_vm3, %v2565_v26  ;;  %v2689_v28 = vmul.f32 %v5590_v5, %v5574_v52  ;;  %v2817_v16 = vpop.permute.xlu0 %2816 }
0x174c   :  { %5190 = vmatpush3.bf16.msra.mxu0 %v2697_v2  ;;  %5191 = vmatprep.mubr.msk.bf16.mxu0 %vm5730_vm0, %v5729_v0  ;;  %v2822_v32 = vsel %vm6617_vm5, %v2817_v16, 0  ;;  %vm6621_vm5 = vcmask 31744  }
0x174d   :  { %5201 = vmatprep.subr.bf16.mxu0 %v5729_v0 }
0x174e   :  { %v5592_v27 = vpop.eup %5591 }
0x174f   :  { %v2688_v29 = vmul.f32 %v5592_v27, %v5576_v53  ;;  %v5469_v27 = vld [vmem:[#allocation9 + $0xf0] ss:$12 sps:$4 sm:$0xff]  }
0x1751   :  { %v2690_v30 = vpack.c.bf16 %v2689_v28, %v2688_v29  ;;  %v5470_v28 = vld [vmem:[#allocation9 + $0x108] ss:$12 sps:$4 sm:$0xff]   ;;  %v4639_v29 = vld [vmem:[%s6600_s8 + $0x10] ss:$0 sm:$0xff] }
0x1752   :  { %v5594_v31 = vpop.eup %5593 }
0x1753   :  { %5192 = vmatmul.mubr.msk.bf16.vlgmr.msra.gmra.mrb[72].mxu0 %vm220_vm3, %v2690_v30  ;;  %v5596_v33 = vpop.eup %5595  ;;  %v2813_v34 = vmul.f32 %v5594_v31, %v5580_v59 }
0x1754   :  { %5202 = vmatpush3.bf16.msra.mxu0 %v2822_v32  ;;  %5203 = vmatprep.mubr.msk.bf16.mxu0 %vm5730_vm0, %v5729_v0  ;;  %v2814_v35 = vmul.f32 %v5596_v33, %v6284_v55 }
0x1755   :  { %5215 = vmatprep.subr.bf16.mxu0 %v5729_v0 }
0x1756   :  { %v2815_v36 = vpack.c.bf16 %v2814_v35, %v2813_v34 }
0x175b   :  { %5204 = vmatmul.mubr.msk.bf16.vlgmr.msra.gmra.mrb[76].mxu0 %vm220_vm3, %v2815_v36 }
0x175c   :  { %5219 = vmatprep.mubr.msk.bf16.mxu0 %vm5730_vm0, %v5729_v0  ;;  %5216 = vmatpush3.bf16.msra.mxu0 %v5463_v63 }
0x175d   :  { %5217 = vmatprep.subr.bf16.mxu0 %v5729_v0 }
0x1760   :  { %5218 = vmatpush3.bf16.msra.mxu0 %v5464_v1 }
0x1761   :  { %5239 = vmatprep.subr.bf16.mxu0 %v5729_v0 }
0x17eb   :  { %v2490_v37 = vpop.f32.mrb[64].mxu0 }
0x17ec   :  { %2497 = vst.msk [vmem:[#allocation2] sm:$0xff] %vm168_vm2, %v2490_v37  ;;  %v5169_v38 = vpop.f32.mrb[65].mxu0 }
0x17ed   :  { %v2493_v39 = vpop.f32.mrb[66].mxu0  ;;  %v5471_v38 = vld [vmem:[#allocation8 + $0xac] ss:$40 sps:$4 sm:$0xff]  }
0x17ee   :  { %2498 = vst.msk [vmem:[#allocation2 + $0x8] sm:$0xf] %vm284_vm6, %v2493_v39  ;;  %v5170_v18 = vpop.f32.mrb[67].mxu0  ;;  %v5472_v39 = vld [vmem:[#allocation8 + $0xfc] ss:$40 sps:$4 sm:$0xff]  }
0x17ef   :  { %v4644_v18 = vld [vmem:[%s6600_s8 + $0x18] ss:$0 sm:$0xff] }
0x181e   :  { %v2608_v40 = vpop.f32.mrb[68].mxu0 }
0x181f   :  { %2617 = vrot.lane.b32.xlu1 %v2608_v40, %s5741_s15  ;;  %v5181_v41 = vpop.f32.mrb[69].mxu0 }
0x1820   :  { %v2611_v42 = vpop.f32.mrb[70].mxu0  ;;  %v3130_v41 = vstv %s4613_s10 }
0x1821   :  { %2619 = vrot.lane.b32.xlu0 %v2611_v42, %s5741_s15  ;;  %v5182_v43 = vpop.f32.mrb[71].mxu0 }
0x1826   :  { %v2733_v3 = vpop.f32.mrb[72].mxu0 }
0x1827   :  { %2742 = vrot.lane.b32.xlu1 %v2733_v3, %s5742_s17  ;;  %v5193_v46 = vpop.f32.mrb[73].mxu0 }
0x1828   :  { %v2736_v7 = vpop.f32.mrb[74].mxu0 }
0x1829   :  { %2744 = vrot.lane.b32.xlu0 %v2736_v7, %s5742_s17  ;;  %v5194_v8 = vpop.f32.mrb[75].mxu0 }
0x182e   :  { %v2858_v49 = vpop.f32.mrb[76].mxu0 }
0x182f   :  { %2867 = vrot.lane.b32.xlu1 %v2858_v49, %s5743_s18  ;;  %v5205_v50 = vpop.f32.mrb[77].mxu0 }
0x1830   :  { %v2861_v51 = vpop.f32.mrb[78].mxu0 }
0x1831   :  { %2869 = vrot.lane.b32.xlu0 %v2861_v51, %s5743_s18  ;;  %v5206_v52 = vpop.f32.mrb[79].mxu0 }
0x1891   :  { %v2618_v53 = vpop.permute.xlu1 %2617 }
0x1892   :  { %2623 = vst.msk [vmem:[#allocation2] sm:$0xff] %vm410_vm7, %v2618_v53 }
0x1893   :  { %v2620_v54 = vpop.permute.xlu0 %2619 }
0x1894   :  { %2624 = vst.msk [vmem:[#allocation2 + $0x8] sm:$0xf] %vm412_vm8, %v2620_v54 }
0x1899   :  { %v2743_v55 = vpop.permute.xlu1 %2742 }
0x189a   :  { %2748 = vst.msk [vmem:[#allocation2] sm:$0xff] %vm537_vm9, %v2743_v55  ;;  %v4653_v55 = vld [vmem:[%s6600_s8 + $0x11] ss:$0 sm:$0xff] }
0x189b   :  { %v2745_v56 = vpop.permute.xlu0 %2744 }
0x189c   :  { %2749 = vst.msk [vmem:[#allocation2 + $0x8] sm:$0xf] %vm539_vm10, %v2745_v56 }
0x18a1   :  { %v2868_v57 = vpop.permute.xlu1 %2867 }
0x18a2   :  { %2873 = vst.msk [vmem:[#allocation2] sm:$0xff] %vm664_vm11, %v2868_v57 }
0x18a3   :  { %v2870_v59 = vpop.permute.xlu0 %2869 }
0x18a4   :  { %2874 = vst.msk [vmem:[#allocation2 + $0x8] sm:$0xf] %vm666_vm12, %v2870_v59 }
0x18a9   :  { %v2875_v60 = vld [vmem:[#allocation2] sm:$0xff] }
0x18ab   :  { %v2876_v61 = vld [vmem:[#allocation2 + $0x8] sm:$0xf] }
0x18ac   :  { %v2881_v62 = vpack.c.bf16 %v2876_v61, %v2875_v60 }
0x18ae   :  { %5212 = vmatmul.mubr.msk.bf16.vlgmr.msra.gmra.mrb[80].mxu1 %vm116_vm1, %v2881_v62 }
0x18af   :  { %5235 = vmatprep.mubr.msk.bf16.mxu1 %vm5730_vm0, %v5729_v0  ;;  %5224 = vmatpush3.bf16.msra.mxu1 %v5465_v4 }
0x18b0   :  { %5225 = vmatprep.subr.bf16.mxu1 %v5729_v0 }
0x18b3   :  { %5226 = vmatpush3.bf16.msra.mxu1 %v5466_v6 }
0x18b4   :  { %5227 = vmatprep.subr.bf16.mxu1 %v5729_v0 }
0x18b7   :  { %5228 = vmatpush3.bf16.msra.mxu1 %v5467_v9 }
0x18b8   :  { %5229 = vmatprep.subr.bf16.mxu1 %v5729_v0 }
0x18bb   :  { %5230 = vmatpush3.bf16.msra.mxu1 %v5468_v10  ;;  %v5473_v10 = vld [vmem:[#allocation8 + $0xb0] ss:$40 sps:$4 sm:$0xff]  }
0x18bc   :  { %5231 = vmatprep.subr.bf16.mxu1 %v5729_v0 }
0x18bf   :  { %5232 = vmatpush3.bf16.msra.mxu1 %v5469_v27 }
0x18c0   :  { %5233 = vmatprep.subr.bf16.mxu1 %v5729_v0 }
0x18c3   :  { %5234 = vmatpush3.bf16.msra.mxu1 %v5470_v28 }
0x18c4   :  { %5261 = vmatprep.subr.bf16.mxu1 %v5729_v0 }
0x1981   :  { %v2938_v12 = vpop.f32.mrb[80].mxu1 }
0x1982   :  { %v2939_v14 = vadd.f32 %v4634_v11, %v2938_v12  ;;  %v5213_v58 = vpop.f32.mrb[81].mxu1  ;;  %v5474_v12 = vld [vmem:[#allocation8 + $0x100] ss:$40 sps:$4 sm:$0xff]  }
0x1983   :  { %v2941_v15 = vpop.f32.mrb[82].mxu1 }
0x1984   :  { %v2946_v17 = vmul.f32 %v2945_v13, %v2939_v14  ;;  %v2942_v19 = vadd.f32 %v4634_v11, %v2941_v15  ;;  %v5214_v20 = vpop.f32.mrb[83].mxu1  ;;  %v5633_v11 = vld [vmem:[%s6594_s2] sm:$0x3]  ;;  %s4614_s2 = sld [smem:[#allocation4 + $0x82]] }
0x1985   :  { %v5476_v20 = vld [vmem:[#allocation8 + $0x104] ss:$40 sps:$4 sm:$0xff]  }
0x1986   :  { %v2947_v21 = vmul.f32 %v2945_v13, %v2942_v19  ;;  %v2950_v22 = vrot.slane %v2946_v17, 4  ;;  %v5475_v19 = vld [vmem:[#allocation8 + $0xb4] ss:$40 sps:$4 sm:$0xff]  }
0x1988   :  { %v2951_v23 = vrot.slane %v2947_v21, 4  ;;  %v2955_v25 = vadd.f32 %v2950_v22, %v6221_v47  ;;  %v5477_v21 = vld [vmem:[#allocation9 + $0x94] ss:$12 sps:$4 sm:$0xff]  }
0x198a   :  { %v2952_v24 = vsel %vm743_vm13, %v2950_v22, %v2951_v23  ;;  %v5478_v22 = vld [vmem:[#allocation9 + $0xac] ss:$12 sps:$4 sm:$0xff]   ;;  %v5479_v23 = vld [vmem:[#allocation9 + $0xc4] ss:$12 sps:$4 sm:$0xff]  }
0x198b   :  { %v2956_v26 = vadd.f32 %v2952_v24, %v6223_v48  ;;  %v5480_v24 = vld [vmem:[#allocation9 + $0xdc] ss:$12 sps:$4 sm:$0xff]  }
0x198d   :  { %v2961_v2 = vpack.c.bf16 %v2956_v26, %v2955_v25 }
0x198f   :  { %v2970_v5 = vrot.slane %v2961_v2, 2  ;;  %v3325_v2 = vstv %s4614_s2 }
0x1991   :  { %5220 = vmatmul.mubr.msk.bf16.vlgmr.msra.gmra.mrb[80].mxu0 %vm116_vm1, %v2970_v5 }
0x1992   :  { %5243 = vmatprep.mubr.msk.bf16.mxu0 %vm5730_vm0, %v5729_v0  ;;  %5240 = vmatpush3.bf16.msra.mxu0 %v5471_v38 }
0x1993   :  { %5241 = vmatprep.subr.bf16.mxu0 %v5729_v0 }
0x1996   :  { %5242 = vmatpush3.bf16.msra.mxu0 %v5472_v39 }
0x1997   :  { %5247 = vmatprep.subr.bf16.mxu0 %v5729_v0 }
0x1a64   :  { %v3020_v16 = vpop.f32.mrb[80].mxu0 }
0x1a65   :  { %v3021_v30 = vadd.f32 %v4639_v29, %v3020_v16  ;;  %v5221_v31 = vpop.f32.mrb[81].mxu0 }
0x1a66   :  { %v3023_v32 = vpop.f32.mrb[82].mxu0 }
0x1a67   :  { %v3024_v33 = vadd.f32 %v4639_v29, %v3023_v32  ;;  %v5222_v34 = vpop.f32.mrb[83].mxu0  ;;  %v3027_v35 = vmax.f32 %v3021_v30, 0.0  ;;  %v5481_v32 = vld [vmem:[#allocation9 + $0xf4] ss:$12 sps:$4 sm:$0xff]  }
0x1a68   :  { %v4664_v34 = vld [vmem:[%s6600_s8 + $0x13] ss:$0 sm:$0xff] }
0x1a69   :  { %v3028_v36 = vmax.f32 %v3024_v33, 0.0  ;;  %v5482_v33 = vld [vmem:[#allocation9 + $0x10c] ss:$12 sps:$4 sm:$0xff]  }
0x1a6b   :  { %v3042_v37 = vpack.c.bf16 %v3028_v36, %v3027_v35 }
0x1a6d   :  { %5236 = vmatmul.mubr.msk.bf16.vlgmr.msra.gmra.mrb[84].mxu1 %vm6610_vm14, %v3042_v37 }
0x1a6e   :  { %5265 = vmatprep.mubr.msk.bf16.mxu1 %vm5730_vm0, %v5729_v0  ;;  %5262 = vmatpush3.bf16.msra.mxu1 %v5475_v19 }
0x1a6f   :  { %5263 = vmatprep.subr.bf16.mxu1 %v5729_v0 }
0x1a72   :  { %5264 = vmatpush3.bf16.msra.mxu1 %v5476_v20 }
0x1a73   :  { %5285 = vmatprep.subr.bf16.mxu1 %v5729_v0 }
0x1b40   :  { %v3123_v40 = vpop.f32.mrb[84].mxu1 }
0x1b41   :  { %v3124_v42 = vadd.f32 %v4644_v18, %v3123_v40  ;;  %v5237_v43 = vpop.f32.mrb[85].mxu1 }
0x1b42   :  { %v3126_v44 = vpop.f32.mrb[86].mxu1  ;;  %v4669_v43 = vld [vmem:[%s6600_s8 + $0x19] ss:$0 sm:$0xff] }
0x1b43   :  { %v3131_v3 = vmul.f32 %v3130_v41, %v3124_v42  ;;  %v3127_v45 = vadd.f32 %v4644_v18, %v3126_v44  ;;  %v5238_v46 = vpop.f32.mrb[87].mxu1  ;;  %v5484_v42 = vld [vmem:[#allocation8 + $0x108] ss:$40 sps:$4 sm:$0xff]  }
0x1b45   :  { %v3132_v7 = vmul.f32 %v3130_v41, %v3127_v45  ;;  %v3135_v8 = vrot.slane %v3131_v3, 4  ;;  %v5483_v41 = vld [vmem:[#allocation8 + $0xb8] ss:$40 sps:$4 sm:$0xff]   ;;  %v3495_v3 = vstv %s4615_s3 }
0x1b47   :  { %v3136_v49 = vrot.slane %v3132_v7, 4  ;;  %v6364_v51 = vadd.f32 %v3135_v8, %v2955_v25  ;;  %v4659_v25 = vld [vmem:[%s6600_s8 + $0x12] ss:$0 sm:$0xff] }
0x1b49   :  { %v3137_v50 = vsel %vm743_vm13, %v3135_v8, %v3136_v49 }
0x1b4a   :  { %v6366_v52 = vadd.f32 %v3137_v50, %v2956_v26  ;;  %v6419_v50 = vstv %s4618_s24  ;;  %s4619_s24 = sld [smem:[#allocation4 + $0x87]] }
0x1b4c   :  { %v3146_v53 = vpack.c.bf16 %v6366_v52, %v6364_v51 }
0x1b4e   :  { %v3155_v54 = vrot.slane %v3146_v53, 2 }
0x1b50   :  { %5244 = vmatmul.mubr.msk.bf16.vlgmr.msra.gmra.mrb[84].mxu0 %vm116_vm1, %v3155_v54 }
0x1b51   :  { %5249 = vmatprep.mubr.msk.bf16.mxu0 %vm5730_vm0, %v5729_v0 }
0x1c23   :  { %v3205_v56 = vpop.f32.mrb[84].mxu0 }
0x1c24   :  { %v3206_v57 = vadd.f32 %v4653_v55, %v3205_v56  ;;  %v5245_v59 = vpop.f32.mrb[85].mxu0 }
0x1c25   :  { %v3208_v60 = vpop.f32.mrb[86].mxu0 }
0x1c26   :  { %v3209_v61 = vadd.f32 %v4653_v55, %v3208_v60  ;;  %v5246_v62 = vpop.f32.mrb[87].mxu0  ;;  %v3212_v63 = vmul.f32 0.35355338, %v3206_v57 }
0x1c28   :  { %v3213_v1 = vmul.f32 0.35355338, %v3209_v61  ;;  %v3214_v4 = vpack.c.bf16 %v3209_v61, %v3206_v57  ;;  %v4678_v57 = vld [vmem:[%s6600_s8 + $0x14] ss:$0 sm:$0xff] }
0x1c2a   :  { %v3565_v6 = vpack.c.bf16 %v3213_v1, %v3212_v63  ;;  %v3216_v9 = vsel %vm6618_vm15, %v3214_v4, 0  ;;  %vm6622_vm15 = vcmask 27648  }
0x1c2b   :  { %5248 = vmatpush3.bf16.msra.mxu0 %v3216_v9 }
0x1c2c   :  { %3568 = vrot.lane.b32.xlu1 %v3565_v6, %s5731_s23  ;;  %5253 = vmatprep.subr.bf16.mxu0 %v5729_v0 }
0x1c2e   :  { %5250 = vmatmul.mubr.msk.bf16.vlgmr.msra.gmra.mrb[88].mxu0 %vm220_vm3, %v5633_v11  ;;  %vm6619_vm3 = vcmask 257024  }
0x1c2f   :  { %5254 = vmatpush3.bf16.msra.mxu0 %v5473_v10  ;;  %5257 = vmatprep.mubr.msk.bf16.mxu0 %vm5730_vm0, %v5729_v0 }
0x1c30   :  { %3684 = vrot.lane.b32.xlu1 %v3565_v6, %s5733_s26  ;;  %5255 = vmatprep.subr.bf16.mxu0 %v5729_v0 }
0x1c33   :  { %5256 = vmatpush3.bf16.msra.mxu0 %v5474_v12 }
0x1c34   :  { %3809 = vrot.lane.b32.xlu1 %v3565_v6, %s5734_s27  ;;  %5269 = vmatprep.subr.bf16.mxu0 %v5729_v0 }
0x1c38   :  { %3934 = vrot.lane.b32.xlu1 %v3565_v6, %s5736_s29 }
0x1c9e   :  { %v3569_v6 = vpop.permute.xlu1 %3568 }
0x1ca2   :  { %v3685_v9 = vpop.permute.xlu1 %3684 }
0x1ca6   :  { %v3810_v10 = vpop.permute.xlu1 %3809 }
0x1caa   :  { %v3935_v11 = vpop.permute.xlu1 %3934 }
0x1d01   :  { %v3252_v13 = vpop.f32.mrb[88].mxu0 }
0x1d02   :  { %v3262_v14 = vpack.c.bf16 %v3252_v13, %v3252_v13  ;;  %v5251_v58 = vpop.f32.mrb[89].mxu0 }
0x1d03   :  { %v3255_v15 = vpop.f32.mrb[90].mxu0 }
0x1d04   :  { %v5252_v17 = vpop.f32.mrb[91].mxu0  ;;  %5258 = vmatmul.mubr.msk.bf16.vlgmr.msra.gmra.mrb[92].mxu0 %vm116_vm1, %v3262_v14 }
0x1d05   :  { %5281 = vmatprep.mubr.msk.bf16.mxu0 %vm5730_vm0, %v5729_v0  ;;  %5270 = vmatpush3.bf16.msra.mxu0 %v5477_v21 }
0x1d06   :  { %5271 = vmatprep.subr.bf16.mxu0 %v5729_v0 }
0x1d09   :  { %5272 = vmatpush3.bf16.msra.mxu0 %v5478_v22  ;;  %v5634_v22 = vld [vmem:[%s6596_s4] sm:$0xff] }
0x1d0a   :  { %5273 = vmatprep.subr.bf16.mxu0 %v5729_v0 }
0x1d0d   :  { %5274 = vmatpush3.bf16.msra.mxu0 %v5479_v23 }
0x1d0e   :  { %5275 = vmatprep.subr.bf16.mxu0 %v5729_v0 }
0x1d11   :  { %5276 = vmatpush3.bf16.msra.mxu0 %v5480_v24 }
0x1d12   :  { %5277 = vmatprep.subr.bf16.mxu0 %v5729_v0 }
0x1d15   :  { %5278 = vmatpush3.bf16.msra.mxu0 %v5481_v32 }
0x1d16   :  { %5279 = vmatprep.subr.bf16.mxu0 %v5729_v0 }
0x1d19   :  { %5280 = vmatpush3.bf16.msra.mxu0 %v5482_v33 }
0x1d1a   :  { %5305 = vmatprep.subr.bf16.mxu0 %v5729_v0 }
0x1dd7   :  { %v3319_v26 = vpop.f32.mrb[92].mxu0 }
0x1dd8   :  { %v3320_v5 = vadd.f32 %v4659_v25, %v3319_v26  ;;  %v5259_v27 = vpop.f32.mrb[93].mxu0 }
0x1dd9   :  { %v3322_v28 = vpop.f32.mrb[94].mxu0 }
0x1dda   :  { %v3326_v29 = vmul.f32 %v3325_v2, %v3320_v5  ;;  %v5260_v16 = vpop.f32.mrb[95].mxu0  ;;  %v5635_v2 = vld [vmem:[%s6596_s4 + $0x8] sm:$0xf]  ;;  %s4616_s4 = sld [smem:[#allocation4 + $0x84]] }
0x1ddc   :  { %v3327_v30 = vadd.f32 %v3326_v29, %v6221_v47 }
0x1dde   :  { %v3332_v31 = vpack.c.bf16 %v3327_v30, %v3327_v30 }
0x1de0   :  { %5266 = vmatmul.mubr.msk.bf16.vlgmr.msra.gmra.mrb[88].mxu1 %vm116_vm1, %v3332_v31 }
0x1de1   :  { %5289 = vmatprep.mubr.msk.bf16.mxu1 %vm5730_vm0, %v5729_v0  ;;  %5286 = vmatpush3.bf16.msra.mxu1 %v5483_v41 }
0x1de2   :  { %5287 = vmatprep.subr.bf16.mxu1 %v5729_v0 }
0x1de5   :  { %5288 = vmatpush3.bf16.msra.mxu1 %v5484_v42 }
0x1de6   :  { %5293 = vmatprep.subr.bf16.mxu1 %v5729_v0 }
0x1eb3   :  { %v3389_v35 = vpop.f32.mrb[88].mxu1 }
0x1eb4   :  { %v3390_v36 = vadd.f32 %v4664_v34, %v3389_v35  ;;  %v5267_v37 = vpop.f32.mrb[89].mxu1 }
0x1eb5   :  { %v3392_v38 = vpop.f32.mrb[90].mxu1 }
0x1eb6   :  { %v3395_v39 = vmax.f32 %v3390_v36, 0.0  ;;  %v5268_v18 = vpop.f32.mrb[91].mxu1 }
0x1eb8   :  { %v3408_v40 = vpack.c.bf16 %v3395_v39, %v3395_v39 }
0x1eba   :  { %5282 = vmatmul.mubr.msk.bf16.vlgmr.msra.gmra.mrb[96].mxu0 %vm6610_vm14, %v3408_v40 }
0x1ebb   :  { %5307 = vmatprep.mubr.msk.bf16.mxu0 %vm5730_vm0, %v5729_v0 }
0x1f8d   :  { %v3489_v44 = vpop.f32.mrb[96].mxu0 }
0x1f8e   :  { %v3490_v45 = vadd.f32 %v4669_v43, %v3489_v44  ;;  %v5283_v46 = vpop.f32.mrb[97].mxu0 }
0x1f8f   :  { %v3492_v7 = vpop.f32.mrb[98].mxu0 }
0x1f90   :  { %v3496_v8 = vmul.f32 %v3495_v3, %v3490_v45  ;;  %v5284_v49 = vpop.f32.mrb[99].mxu0 }
0x1f92   :  { %v3497_v53 = vadd.f32 %v3496_v8, %v3327_v30 }
0x1f94   :  { %v3502_v54 = vpack.c.bf16 %v3497_v53, %v3497_v53  ;;  %v4326_v55 = vmul.f32 %v6419_v50, %v3497_v53 }
0x1f96   :  { %v4327_v56 = vadd.f32 %v4326_v55, %v6221_v47  ;;  %5290 = vmatmul.mubr.msk.bf16.vlgmr.msra.gmra.mrb[92].mxu1 %vm116_vm1, %v3502_v54 }
0x1f97   :  { %5295 = vmatprep.mubr.msk.bf16.mxu1 %vm5730_vm0, %v5729_v0 }
0x1f98   :  { %4328 = vst.msk [vmem:[#allocation3] sm:$0xf] %vm6619_vm3, %v4327_v56  ;;  %vm6623_vm3 = vmmov %vm6621_vm5 }
0x2069   :  { %v3559_v59 = vpop.f32.mrb[92].mxu1 }
0x206a   :  { %v3560_v60 = vadd.f32 %v4678_v57, %v3559_v59  ;;  %v5291_v61 = vpop.f32.mrb[93].mxu1 }
0x206b   :  { %v3562_v62 = vpop.f32.mrb[94].mxu1 }
0x206c   :  { %v6430_v63 = vpack.c.bf16 %v3560_v60, %v3560_v60  ;;  %v5292_v1 = vpop.f32.mrb[95].mxu1 }
0x206e   :  { %3633 = vrot.lane.b32.xlu1 %v6430_v63, %s5731_s23  ;;  %3686 = vrot.lane.b32.xlu0 %v6430_v63, %s5732_s25  ;;  %v3574_v4 = vsel %vm168_vm2, %v6430_v63, 0 }
0x206f   :  { %5294 = vmatpush3.bf16.xpose.msra.mxu1 %v3574_v4 }
0x2070   :  { %5299 = vmatprep.subr.bf16.mxu1 %v5729_v0 }
0x2072   :  { %3811 = vrot.lane.b32.xlu0 %v6430_v63, %s5735_s28 }
0x2076   :  { %3936 = vrot.lane.b32.xlu0 %v6430_v63, %s5737_s30  ;;  %5296 = vmatmul.mubr.msk.bf16.vlgmr.msra.gmra.mrb[96].mxu1 %vm168_vm2, %v3569_v6 }
0x2077   :  { %5301 = vmatprep.mubr.msk.bf16.mxu1 %vm5730_vm0, %v5729_v0 }
0x20e0   :  { %v3634_v12 = vpop.permute.xlu1 %3633  ;;  %v3687_v13 = vpop.permute.xlu0 %3686 }
0x20e1   :  { %v3639_v14 = vsel %vm6620_vm4, %v3634_v12, 0  ;;  %v3692_v58 = vsel %vm168_vm2, %v3687_v13, 0  ;;  %vm6624_vm4 = vmmov %vm6622_vm15 }
0x20e2   :  { %5300 = vmatpush3.bf16.msra.mxu1 %v3639_v14  ;;  %5306 = vmatpush3.bf16.xpose.msra.mxu0 %v3692_v58  ;;  %vm6627_vm14 = vmmov %vm6624_vm4 }
0x20e3   :  { %5317 = vmatprep.subr.bf16.mxu0 %v5729_v0  ;;  %5311 = vmatprep.subr.bf16.mxu1 %v5729_v0 }
0x20e4   :  { %v3812_v15 = vpop.permute.xlu0 %3811 }
0x20e5   :  { %v3817_v17 = vsel %vm168_vm2, %v3812_v15, 0 }
0x20e8   :  { %v3937_v19 = vpop.permute.xlu0 %3936 }
0x20e9   :  { %5308 = vmatmul.mubr.msk.bf16.vlgmr.msra.gmra.mrb[100].mxu0 %vm168_vm2, %v3685_v9  ;;  %v3942_v20 = vsel %vm168_vm2, %v3937_v19, 0 }
0x20ea   :  { %5318 = vmatpush3.bf16.xpose.msra.mxu0 %v3817_v17  ;;  %5319 = vmatprep.mubr.msk.bf16.mxu0 %vm5730_vm0, %v5729_v0 }
0x20eb   :  { %5329 = vmatprep.subr.bf16.mxu0 %v5729_v0 }
0x20f1   :  { %5320 = vmatmul.mubr.msk.bf16.vlgmr.msra.gmra.mrb[104].mxu0 %vm168_vm2, %v3810_v10 }
0x20f2   :  { %5330 = vmatpush3.bf16.xpose.msra.mxu0 %v3942_v20  ;;  %5331 = vmatprep.mubr.msk.bf16.mxu0 %vm5730_vm0, %v5729_v0 }
0x20f3   :  { %5341 = vmatprep.subr.bf16.mxu0 %v5729_v0 }
0x20f9   :  { %5332 = vmatmul.mubr.msk.bf16.vlgmr.msra.gmra.mrb[108].mxu0 %vm168_vm2, %v3935_v11 }
0x20fa   :  { %5345 = vmatprep.mubr.msk.bf16.mxu0 %vm5730_vm0, %v5729_v0 }
0x2149   :  { %v3610_v21 = vpop.f32.mrb[96].mxu1 }
0x214a   :  { %v3611_v23 = vadd.f32 %v5634_v22, %v3610_v21  ;;  %v5297_v24 = vpop.f32.mrb[97].mxu1 }
0x214b   :  { %v3613_v25 = vpop.f32.mrb[98].mxu1 }
0x214c   :  { %v3617_v26 = vmul.f32 1.442695, %v3611_v23  ;;  %v3614_v5 = vadd.f32 %v5635_v2, %v3613_v25  ;;  %v5298_v27 = vpop.f32.mrb[99].mxu1 }
0x214e   :  { %5597 = vpow2.f32 %v3617_v26  ;;  %v3619_v28 = vmul.f32 1.442695, %v3614_v5 }
0x2150   :  { %5599 = vpow2.f32 %v3619_v28 }
0x2158   :  { %v5598_v29 = vpop.eup %5597 }
0x2159   :  { %v3621_v16 = vsel %vm6621_vm5, %v5598_v29, 0.0  ;;  %vm6625_vm5 = vmmov %vm6623_vm3 }
0x215a   :  { %v5600_v30 = vpop.eup %5599  ;;  %3622 = vadd.xlane.f32.xlu0 %v3621_v16 }
0x215b   :  { %v3624_v31 = vsel %vm6622_vm15, %v5600_v30, 0.0  ;;  %vm6626_vm15 = vmmov %vm6624_vm4 }
0x215c   :  { %3625 = vadd.xlane.f32.xlu1 %v3624_v31 }
0x21bc   :  { %v3728_v32 = vpop.f32.mrb[100].mxu0 }
0x21bd   :  { %v3729_v33 = vadd.f32 %v5634_v22, %v3728_v32  ;;  %v5309_v34 = vpop.f32.mrb[101].mxu0 }
0x21be   :  { %v3731_v35 = vpop.f32.mrb[102].mxu0 }
0x21bf   :  { %v3735_v36 = vmul.f32 1.442695, %v3729_v33  ;;  %v3732_v37 = vadd.f32 %v5635_v2, %v3731_v35  ;;  %v5310_v38 = vpop.f32.mrb[103].mxu0 }
0x21c1   :  { %5601 = vpow2.f32 %v3735_v36  ;;  %v3737_v39 = vmul.f32 1.442695, %v3732_v37 }
0x21c3   :  { %5603 = vpow2.f32 %v3737_v39 }
0x21c4   :  { %v3853_v18 = vpop.f32.mrb[104].mxu0 }
0x21c5   :  { %v3854_v40 = vadd.f32 %v5634_v22, %v3853_v18  ;;  %v5321_v41 = vpop.f32.mrb[105].mxu0 }
0x21c6   :  { %v3856_v42 = vpop.f32.mrb[106].mxu0 }
0x21c7   :  { %v3860_v43 = vmul.f32 1.442695, %v3854_v40  ;;  %v3857_v44 = vadd.f32 %v5635_v2, %v3856_v42  ;;  %v5322_v3 = vpop.f32.mrb[107].mxu0 }
0x21c9   :  { %5605 = vpow2.f32 %v3860_v43  ;;  %v3862_v45 = vmul.f32 1.442695, %v3857_v44 }
0x21cb   :  { %v5602_v46 = vpop.eup %5601  ;;  %5607 = vpow2.f32 %v3862_v45 }
0x21cc   :  { %v3978_v7 = vpop.f32.mrb[108].mxu0  ;;  %v3739_v8 = vsel %vm6623_vm3, %v5602_v46, 0.0 }
0x21cd   :  { %v5604_v49 = vpop.eup %5603  ;;  %v3979_v53 = vadd.f32 %v5634_v22, %v3978_v7  ;;  %3740 = vadd.xlane.f32.xlu0 %v3739_v8  ;;  %v5333_v54 = vpop.f32.mrb[109].mxu0 }
0x21ce   :  { %v3981_v55 = vpop.f32.mrb[110].mxu0  ;;  %v3742_v60 = vsel %vm6624_vm4, %v5604_v49, 0.0  ;;  %vm6629_vm4 = vcmask 1041408  }
0x21cf   :  { %v3985_v56 = vmul.f32 1.442695, %v3979_v53  ;;  %v3982_v57 = vadd.f32 %v5635_v2, %v3981_v55  ;;  %v5334_v59 = vpop.f32.mrb[111].mxu0  ;;  %v5485_v53 = vld [vmem:[#allocation8 + $0xbc] ss:$40 sps:$4 sm:$0xff]  }
0x21d0   :  { %5342 = vmatpush3.bf16.msra.mxu0 %v5485_v53  ;;  %v5486_v55 = vld [vmem:[#allocation8 + $0x10c] ss:$40 sps:$4 sm:$0xff]  }
0x21d1   :  { %5609 = vpow2.f32 %v3985_v56  ;;  %v3987_v61 = vmul.f32 1.442695, %v3982_v57  ;;  %3743 = vadd.xlane.f32.xlu0 %v3742_v60  ;;  %5343 = vmatprep.subr.bf16.mxu0 %v5729_v0 }
0x21d3   :  { %v5606_v62 = vpop.eup %5605  ;;  %5611 = vpow2.f32 %v3987_v61 }
0x21d4   :  { %v3864_v1 = vsel %vm6625_vm5, %v5606_v62, 0.0  ;;  %vm6630_vm5 = vmmov %vm6629_vm4  ;;  %5344 = vmatpush3.bf16.msra.mxu0 %v5486_v55 }
0x21d5   :  { %v5608_v4 = vpop.eup %5607  ;;  %3865 = vadd.xlane.f32.xlu1 %v3864_v1  ;;  %5357 = vmatprep.subr.bf16.mxu0 %v5729_v0 }
0x21d6   :  { %v3867_v6 = vsel %vm6626_vm15, %v5608_v4, 0.0  ;;  %vm6631_vm15 = vmmov %vm6623_vm3 }
0x21d7   :  { %3868 = vadd.xlane.f32.xlu0 %v3867_v6 }
0x21db   :  { %v5610_v9 = vpop.eup %5609 }
0x21dc   :  { %v3989_v10 = vsel %vm6623_vm3, %v5610_v9, 0.0 }
0x21dd   :  { %v5612_v11 = vpop.eup %5611  ;;  %3990 = vadd.xlane.f32.xlu1 %v3989_v10 }
0x21de   :  { %v3992_v12 = vsel %vm6627_vm14, %v5612_v11, 0.0  ;;  %vm6628_vm14 = vmmov %vm6623_vm3 }
0x21df   :  { %3993 = vadd.xlane.f32.xlu0 %v3992_v12  ;;  %vm6632_vm3 = vmmov %vm6629_vm4 }
0x21e7   :  { %v3623_v13 = vpop.xlane.xlu0 %3622 }
0x21e8   :  { %5613 = vrcp.f32 %v3623_v13 }
0x21e9   :  { %v3626_v14 = vpop.xlane.xlu1 %3625 }
0x21ea   :  { %5615 = vrcp.f32 %v3626_v14 }
0x21ee   :  { %3875 = vrot.lane.b32.xlu1 %v6430_v63, %s5734_s27 }
0x21f2   :  { %v5614_v58 = vpop.eup %5613  ;;  %4000 = vrot.lane.b32.xlu1 %v6430_v63, %s5736_s29 }
0x21f3   :  { %v3629_v17 = vmul.f32 %v5614_v58, %v5598_v29 }
0x21f4   :  { %v5616_v15 = vpop.eup %5615 }
0x21f5   :  { %v3630_v19 = vmul.f32 %v5616_v15, %v5600_v30  ;;  %3750 = vrot.lane.b32.xlu0 %v6430_v63, %s5733_s26  ;;  %v5487_v15 = vld [vmem:[#allocation8 + $0xc0] ss:$40 sps:$4 sm:$0xff]  }
0x21f7   :  { %v3631_v20 = vpack.c.bf16 %v3630_v19, %v3629_v17  ;;  %v5488_v17 = vld [vmem:[#allocation8 + $0x110] ss:$40 sps:$4 sm:$0xff]  }
0x21f8   :  { %v5489_v19 = vld [vmem:[#allocation9 + $0x98] ss:$12 sps:$4 sm:$0xff]  }
0x21f9   :  { %5302 = vmatmul.mubr.msk.bf16.vlgmr.msra.gmra.mrb[100].mxu1 %vm6628_vm14, %v3631_v20  ;;  %v5490_v20 = vld [vmem:[#allocation9 + $0xb0] ss:$12 sps:$4 sm:$0xff]  }
0x21fa   :  { %5313 = vmatprep.mubr.msk.bf16.mxu1 %vm5730_vm0, %v5729_v0 }
0x225a   :  { %v3741_v21 = vpop.xlane.xlu0 %3740 }
0x225e   :  { %v3744_v22 = vpop.xlane.xlu0 %3743 }
0x225f   :  { %5617 = vrcp.f32 %v3744_v22  ;;  %v5492_v22 = vld [vmem:[#allocation9 + $0xe0] ss:$12 sps:$4 sm:$0xff]  }
0x2260   :  { %5619 = vrcp.f32 %v3741_v21  ;;  %v5491_v21 = vld [vmem:[#allocation9 + $0xc8] ss:$12 sps:$4 sm:$0xff]  }
0x2262   :  { %v3866_v24 = vpop.xlane.xlu1 %3865 }
0x2264   :  { %v3869_v23 = vpop.xlane.xlu0 %3868 }
0x2265   :  { %5621 = vrcp.f32 %v3869_v23  ;;  %v4691_v23 = vld [vmem:[%s6600_s8 + $0x15] ss:$0 sm:$0xff] }
0x2266   :  { %5623 = vrcp.f32 %v3866_v24 }
0x2269   :  { %v5618_v25 = vpop.eup %5617 }
0x226a   :  { %v3991_v26 = vpop.xlane.xlu1 %3990  ;;  %v5620_v5 = vpop.eup %5619  ;;  %v3748_v27 = vmul.f32 %v5618_v25, %v5604_v49  ;;  %v4129_v25 = vstv %s4616_s4 }
0x226b   :  { %v3747_v28 = vmul.f32 %v5620_v5, %v5602_v46 }
0x226c   :  { %v3994_v2 = vpop.xlane.xlu0 %3993 }
0x226d   :  { %5625 = vrcp.f32 %v3994_v2  ;;  %v3749_v30 = vpack.c.bf16 %v3748_v27, %v3747_v28 }
0x226e   :  { %v3876_v16 = vpop.permute.xlu1 %3875  ;;  %5627 = vrcp.f32 %v3991_v26 }
0x226f   :  { %v5622_v31 = vpop.eup %5621  ;;  %v3881_v32 = vsel %vm6630_vm5, %v3876_v16, 0 }
0x2270   :  { %v3751_v63 = vpop.permute.xlu0 %3750  ;;  %v5624_v33 = vpop.eup %5623  ;;  %v3873_v34 = vmul.f32 %v5622_v31, %v5608_v4 }
0x2271   :  { %v3756_v29 = vsel %vm6629_vm4, %v3751_v63, 0  ;;  %v3872_v35 = vmul.f32 %v5624_v33, %v5606_v62  ;;  %vm6633_vm4 = vmmov %vm6628_vm14 }
0x2272   :  { %5312 = vmatpush3.bf16.msra.mxu1 %v3756_v29  ;;  %v4001_v36 = vpop.permute.xlu1 %4000 }
0x2273   :  { %5323 = vmatprep.subr.bf16.mxu1 %v5729_v0  ;;  %v3874_v37 = vpack.c.bf16 %v3873_v34, %v3872_v35  ;;  %v4006_v39 = vsel %vm6632_vm3, %v4001_v36, 0  ;;  %v5493_v36 = vld [vmem:[#allocation9 + $0xf8] ss:$12 sps:$4 sm:$0xff]  }
0x2275   :  { %5314 = vmatmul.mubr.msk.bf16.vlgmr.msra.gmra.mrb[104].mxu1 %vm6631_vm15, %v3749_v30 }
0x2276   :  { %5324 = vmatpush3.bf16.msra.mxu1 %v3881_v32  ;;  %5325 = vmatprep.mubr.msk.bf16.mxu1 %vm5730_vm0, %v5729_v0 }
0x2277   :  { %5335 = vmatprep.subr.bf16.mxu1 %v5729_v0  ;;  %v5626_v38 = vpop.eup %5625 }
0x2278   :  { %v5628_v18 = vpop.eup %5627  ;;  %v3998_v40 = vmul.f32 %v5626_v38, %v5612_v11  ;;  %v4696_v38 = vld [vmem:[%s6600_s8 + $0x16] ss:$0 sm:$0xff] }
0x2279   :  { %v3997_v41 = vmul.f32 %v5628_v18, %v5610_v9 }
0x227b   :  { %v3999_v42 = vpack.c.bf16 %v3998_v40, %v3997_v41 }
0x227d   :  { %5326 = vmatmul.mubr.msk.bf16.vlgmr.msra.gmra.mrb[108].mxu1 %vm6628_vm14, %v3874_v37  ;;  %v5494_v37 = vld [vmem:[#allocation9 + $0x110] ss:$12 sps:$4 sm:$0xff]  }
0x227e   :  { %5336 = vmatpush3.bf16.msra.mxu1 %v4006_v39  ;;  %5337 = vmatprep.mubr.msk.bf16.mxu1 %vm5730_vm0, %v5729_v0 }
0x227f   :  { %5349 = vmatprep.subr.bf16.mxu1 %v5729_v0 }
0x2285   :  { %5338 = vmatmul.mubr.msk.bf16.vlgmr.msra.gmra.mrb[112].mxu1 %vm6633_vm4, %v3999_v42 }
0x2286   :  { %5353 = vmatprep.mubr.msk.bf16.mxu1 %vm5730_vm0, %v5729_v0  ;;  %5350 = vmatpush3.bf16.msra.mxu1 %v5487_v15  ;;  %v4710_v15 = vld [vmem:[%s6600_s8 + $0x17] ss:$0 sm:$0xff] }
0x2287   :  { %5351 = vmatprep.subr.bf16.mxu1 %v5729_v0 }
0x228a   :  { %5352 = vmatpush3.bf16.msra.mxu1 %v5488_v17 }
0x228b   :  { %5373 = vmatprep.subr.bf16.mxu1 %v5729_v0 }
0x22cc   :  { %v3675_v43 = vpop.f32.mrb[100].mxu1 }
0x22cd   :  { %3682 = vst.msk [vmem:[#allocation2] sm:$0xff] %vm168_vm2, %v3675_v43  ;;  %v5303_v44 = vpop.f32.mrb[101].mxu1  ;;  %vm6634_vm2 = vcmask 785408  }
0x22ce   :  { %v3678_v3 = vpop.f32.mrb[102].mxu1 }
0x22cf   :  { %3683 = vst.msk [vmem:[#allocation2 + $0x8] sm:$0xf] %vm284_vm6, %v3678_v3  ;;  %v5304_v45 = vpop.f32.mrb[103].mxu1  ;;  %v5495_v3 = vld [vmem:[#allocation8 + $0xc4] ss:$40 sps:$4 sm:$0xff]   ;;  %vm6635_vm6 = vcmask 261124  }
0x22d0   :  { %v5496_v45 = vld [vmem:[#allocation8 + $0x114] ss:$40 sps:$4 sm:$0xff]  }
0x2348   :  { %v3792_v46 = vpop.f32.mrb[104].mxu1 }
0x2349   :  { %3801 = vrot.lane.b32.xlu0 %v3792_v46, %s5741_s15  ;;  %v5315_v7 = vpop.f32.mrb[105].mxu1  ;;  %v4701_v46 = vld [vmem:[%s6600_s8 + $0x1a] ss:$0 sm:$0xff] }
0x234a   :  { %v3795_v8 = vpop.f32.mrb[106].mxu1 }
0x234b   :  { %3803 = vrot.lane.b32.xlu1 %v3795_v8, %s5741_s15  ;;  %v5316_v49 = vpop.f32.mrb[107].mxu1 }
0x2350   :  { %v3917_v54 = vpop.f32.mrb[108].mxu1 }
0x2351   :  { %3926 = vrot.lane.b32.xlu0 %v3917_v54, %s5742_s17  ;;  %v5327_v56 = vpop.f32.mrb[109].mxu1 }
0x2352   :  { %v3920_v57 = vpop.f32.mrb[110].mxu1 }
0x2353   :  { %3928 = vrot.lane.b32.xlu1 %v3920_v57, %s5742_s17  ;;  %v5328_v59 = vpop.f32.mrb[111].mxu1 }
0x2358   :  { %v4042_v60 = vpop.f32.mrb[112].mxu1 }
0x2359   :  { %4051 = vrot.lane.b32.xlu0 %v4042_v60, %s5743_s18  ;;  %v5339_v61 = vpop.f32.mrb[113].mxu1 }
0x235a   :  { %v4045_v62 = vpop.f32.mrb[114].mxu1 }
0x235b   :  { %4053 = vrot.lane.b32.xlu1 %v4045_v62, %s5743_s18  ;;  %v5340_v1 = vpop.f32.mrb[115].mxu1  ;;  %s4617_s18 = sld [smem:[#allocation4 + $0x85]] }
0x2361   :  { %v4313_v8 = vstv %s4617_s18 }
0x23bb   :  { %v3802_v4 = vpop.permute.xlu0 %3801 }
0x23bc   :  { %3807 = vst.msk [vmem:[#allocation2] sm:$0xff] %vm410_vm7, %v3802_v4 }
0x23bd   :  { %v3804_v6 = vpop.permute.xlu1 %3803 }
0x23be   :  { %3808 = vst.msk [vmem:[#allocation2 + $0x8] sm:$0xf] %vm412_vm8, %v3804_v6 }
0x23c3   :  { %v3927_v9 = vpop.permute.xlu0 %3926 }
0x23c4   :  { %3932 = vst.msk [vmem:[#allocation2] sm:$0xff] %vm537_vm9, %v3927_v9 }
0x23c5   :  { %v3929_v10 = vpop.permute.xlu1 %3928 }
0x23c6   :  { %3933 = vst.msk [vmem:[#allocation2 + $0x8] sm:$0xf] %vm539_vm10, %v3929_v10 }
0x23cb   :  { %v4052_v11 = vpop.permute.xlu0 %4051 }
0x23cc   :  { %4057 = vst.msk [vmem:[#allocation2] sm:$0xff] %vm664_vm11, %v4052_v11 }
0x23cd   :  { %v4054_v12 = vpop.permute.xlu1 %4053 }
0x23ce   :  { %4058 = vst.msk [vmem:[#allocation2 + $0x8] sm:$0xf] %vm666_vm12, %v4054_v12 }
0x23d3   :  { %v4059_v13 = vld [vmem:[#allocation2] sm:$0xff] }
0x23d5   :  { %v4060_v14 = vld [vmem:[#allocation2 + $0x8] sm:$0xf] }
0x23d6   :  { %v4065_v58 = vpack.c.bf16 %v4060_v14, %v4059_v13  ;;  %v5497_v14 = vld [vmem:[%s6599_s7 + $0x20] sm:$0xff]  }
0x23d8   :  { %5346 = vmatmul.mubr.msk.bf16.vlgmr.msra.gmra.mrb[112].mxu0 %vm116_vm1, %v4065_v58 }
0x23d9   :  { %5369 = vmatprep.mubr.msk.bf16.mxu0 %vm5730_vm0, %v5729_v0  ;;  %5358 = vmatpush3.bf16.msra.mxu0 %v5489_v19 }
0x23da   :  { %5359 = vmatprep.subr.bf16.mxu0 %v5729_v0 }
0x23dd   :  { %5360 = vmatpush3.bf16.msra.mxu0 %v5490_v20 }
0x23de   :  { %5361 = vmatprep.subr.bf16.mxu0 %v5729_v0 }
0x23e1   :  { %5362 = vmatpush3.bf16.msra.mxu0 %v5491_v21 }
0x23e2   :  { %5363 = vmatprep.subr.bf16.mxu0 %v5729_v0 }
0x23e5   :  { %5364 = vmatpush3.bf16.msra.mxu0 %v5492_v22 }
0x23e6   :  { %5365 = vmatprep.subr.bf16.mxu0 %v5729_v0 }
0x23e9   :  { %5366 = vmatpush3.bf16.msra.mxu0 %v5493_v36 }
0x23ea   :  { %5367 = vmatprep.subr.bf16.mxu0 %v5729_v0 }
0x23ed   :  { %5368 = vmatpush3.bf16.msra.mxu0 %v5494_v37 }
0x24ab   :  { %v4122_v24 = vpop.f32.mrb[112].mxu0 }
0x24ac   :  { %v4123_v26 = vadd.f32 %v4691_v23, %v4122_v24  ;;  %v5347_v2 = vpop.f32.mrb[113].mxu0 }
0x24ad   :  { %v4125_v5 = vpop.f32.mrb[114].mxu0 }
0x24ae   :  { %v4130_v27 = vmul.f32 %v4129_v25, %v4123_v26  ;;  %v4126_v63 = vadd.f32 %v4691_v23, %v4125_v5  ;;  %v5348_v28 = vpop.f32.mrb[115].mxu0  ;;  %v4492_v5 = vstv %s4619_s24 }
0x24b0   :  { %v4131_v29 = vmul.f32 %v4129_v25, %v4126_v63  ;;  %v4134_v16 = vrot.slane %v4130_v27, 4 }
0x24b2   :  { %v4135_v30 = vrot.slane %v4131_v29, 4  ;;  %v4139_v32 = vadd.f32 %v4134_v16, %v6364_v51 }
0x24b4   :  { %v4136_v31 = vsel %vm743_vm13, %v4134_v16, %v4135_v30 }
0x24b5   :  { %v4140_v33 = vadd.f32 %v4136_v31, %v6366_v52 }
0x24b7   :  { %v4145_v34 = vpack.c.bf16 %v4140_v33, %v4139_v32 }
0x24b9   :  { %v4154_v35 = vrot.slane %v4145_v34, 2 }
0x24bb   :  { %5354 = vmatmul.mubr.msk.bf16.vlgmr.msra.gmra.mrb[116].mxu1 %vm116_vm1, %v4154_v35 }
0x24bc   :  { %5377 = vmatprep.mubr.msk.bf16.mxu1 %vm5730_vm0, %v5729_v0  ;;  %5374 = vmatpush3.bf16.msra.mxu1 %v5495_v3 }
0x24bd   :  { %5375 = vmatprep.subr.bf16.mxu1 %v5729_v0 }
0x24c0   :  { %5376 = vmatpush3.bf16.msra.mxu1 %v5496_v45 }
0x24c1   :  { %5381 = vmatprep.subr.bf16.mxu1 %v5729_v0 }
0x258e   :  { %v4204_v51 = vpop.f32.mrb[116].mxu1 }
0x258f   :  { %v4205_v39 = vadd.f32 %v4696_v38, %v4204_v51  ;;  %v5355_v52 = vpop.f32.mrb[117].mxu1 }
0x2590   :  { %v4207_v18 = vpop.f32.mrb[118].mxu1 }
0x2591   :  { %v4208_v40 = vadd.f32 %v4696_v38, %v4207_v18  ;;  %v5356_v41 = vpop.f32.mrb[119].mxu1  ;;  %v4211_v42 = vmax.f32 %v4205_v39, 0.0 }
0x2593   :  { %v4212_v43 = vmax.f32 %v4208_v40, 0.0 }
0x2595   :  { %v4225_v44 = vpack.c.bf16 %v4212_v43, %v4211_v42 }
0x2597   :  { %5370 = vmatmul.mubr.msk.bf16.vlgmr.msra.gmra.mrb[116].mxu0 %vm6634_vm2, %v4225_v44 }
0x266a   :  { %v4306_v7 = vpop.f32.mrb[116].mxu0 }
0x266b   :  { %v4307_v49 = vadd.f32 %v4701_v46, %v4306_v7  ;;  %v5371_v53 = vpop.f32.mrb[117].mxu0 }
0x266c   :  { %v4309_v54 = vpop.f32.mrb[118].mxu0 }
0x266d   :  { %v4314_v55 = vmul.f32 %v4313_v8, %v4307_v49  ;;  %v4310_v56 = vadd.f32 %v4701_v46, %v4309_v54  ;;  %v5372_v57 = vpop.f32.mrb[119].mxu0 }
0x266f   :  { %v4318_v59 = vrot.slane %v4314_v55, 4  ;;  %v4315_v60 = vmul.f32 %v4313_v8, %v4310_v56 }
0x2671   :  { %v4323_v61 = vadd.f32 %v4318_v59, %v4139_v32  ;;  %v4319_v62 = vrot.slane %v4315_v60, 4 }
0x2673   :  { %v4329_v1 = vmul.f32 %v6419_v50, %v4323_v61  ;;  %v4320_v4 = vsel %vm743_vm13, %v4318_v59, %v4319_v62 }
0x2674   :  { %v4324_v6 = vadd.f32 %v4320_v4, %v4140_v33 }
0x2675   :  { %v4331_v9 = vadd.f32 %v4329_v1, %v6221_v47  ;;  %v5498_v47 = vld [vmem:[%s6599_s7 + $0x28] sm:$0xff]  }
0x2676   :  { %v4330_v10 = vmul.f32 %v6419_v50, %v4324_v6  ;;  %v5500_v50 = vld [vmem:[%s6599_s7 + $0x38] sm:$0xff]  }
0x2677   :  { %4333 = vst.msk [vmem:[#allocation3] sm:$0xf0] %vm6635_vm6, %v4331_v9 }
0x2678   :  { %v4332_v11 = vadd.f32 %v4330_v10, %v6223_v48  ;;  %v5499_v48 = vld [vmem:[%s6599_s7 + $0x30] sm:$0xff]   ;;  %s5744_s7 = smov [#allocation11]  }
0x2679   :  { %s4504_s5 = sshll.u32 %s5744_s7, 4  ;;  %s4505_s5 = int_to_ptr.vmem [resolvable:$true] %s4504_s5 }
0x267a   :  { %4334 = vst.msk [vmem:[#allocation3 + $0x8] sm:$0xff] %vm116_vm1, %v4332_v11  ;;  %s5692_s10 = scalar_lea.vmem %s4505_s5, 256  ;;  %p5697_p8 = scmp.lt.s32.totalorder %s4505_s5, %s4505_s5 }
0x267b   :  { %p5693_p7 = scmp.ne.s32.totalorder %s4505_s5, %s5692_s10  ;;  %p5698_p9 = scmp.lt.s32.totalorder %s5692_s10, %s5692_s10 }
0x267d   :  { %p5699_p10 = por %p5698_p9, %p5697_p8 }
0x267e   :  { %v4335_v12 = vld [vmem:[#allocation3] sm:$0xff] }
0x267f   :  { %p5700_p11 = pnand %p5699_p10, %p5693_p7 }
0x2681   :  { %v4336_v13 = vld [vmem:[#allocation3 + $0x8] sm:$0xff] }
0x2682   :  { %v4341_v58 = vpack.c.bf16 %v4336_v13, %v4335_v12 }
0x2684   :  { %5378 = vmatmul.mubr.msk.bf16.vlgmr.msra.gmra.mrb[120].mxu1 %vm116_vm1, %v4341_v58 }
0x2685   :  { %5382 = vmatpush3.bf16.msra.mxu1 %v5497_v14  ;;  %5389 = vmatprep.mubr.msk.bf16.mxu1 %vm5730_vm0, %v5729_v0  ;;  %vm6636_vm0 = vcmask 523264  }
0x2686   :  { %5383 = vmatprep.subr.bf16.mxu1 %v5729_v0 }
0x2689   :  { %5384 = vmatpush3.bf16.msra.mxu1 %v5498_v47 }
0x268a   :  { %5385 = vmatprep.subr.bf16.mxu1 %v5729_v0 }
0x268d   :  { %5386 = vmatpush3.bf16.msra.mxu1 %v5499_v48 }
0x268e   :  { %5387 = vmatprep.subr.bf16.mxu1 %v5729_v0  ;;  %v4723_v0 = vld [vmem:[%s6600_s8 + $0x1b] ss:$0 sm:$0xff] }
0x2691   :  { %5388 = vmatpush3.bf16.msra.mxu1 %v5500_v50 }
0x2757   :  { %v4398_v17 = vpop.f32.mrb[120].mxu1 }
0x2758   :  { %v4399_v19 = vadd.f32 %v4710_v15, %v4398_v17  ;;  %v5379_v20 = vpop.f32.mrb[121].mxu1 }
0x2759   :  { %v4401_v21 = vpop.f32.mrb[122].mxu1 }
0x275a   :  { %v4402_v22 = vadd.f32 %v4710_v15, %v4401_v21  ;;  %v5380_v23 = vpop.f32.mrb[123].mxu1  ;;  %v4405_v24 = vmax.f32 %v4399_v19, 0.0 }
0x275c   :  { %v4406_v25 = vmax.f32 %v4402_v22, 0.0 }
0x275e   :  { %v4407_v26 = vpack.c.bf16 %v4406_v25, %v4405_v24 }
0x2760   :  { %5390 = vmatmul.mubr.msk.bf16.vlgmr.msra.gmra.mrb[124].mxu1 %vm6636_vm0, %v4407_v26 }
0x2833   :  { %v4485_v2 = vpop.f32.mrb[124].mxu1 }
0x2834   :  { %v4486_v27 = vadd.f32 %v4723_v0, %v4485_v2  ;;  %v5391_v63 = vpop.f32.mrb[125].mxu1 }
0x2835   :  { %v4488_v28 = vpop.f32.mrb[126].mxu1 }
0x2836   :  { %v4493_v29 = vmul.f32 %v4492_v5, %v4486_v27  ;;  %v4489_v16 = vadd.f32 %v4723_v0, %v4488_v28  ;;  %v5392_v30 = vpop.f32.mrb[127].mxu1 }
0x2838   :  { %v4495_v31 = vadd.f32 %v4493_v29, %v4335_v12  ;;  %v4494_v32 = vmul.f32 %v4492_v5, %v4489_v16 }
0x283a   :  { %4497 = vst.msk [vmem:[#allocation11] sm:$0xff] %vm116_vm1, %v4495_v31  ;;  %v4496_v33 = vadd.f32 %v4494_v32, %v4336_v13 }
0x283c   :  { %4498 = vst.msk [vmem:[#allocation11 + $0x8] sm:$0xff] %vm116_vm1, %v4496_v33 }
0x283d   :  { %5703 = shalt.err (!%p5700_p11)
}
0x283e   :  { %s5704_s25 = scalar_lea.hbm %s6601_s9, 256 }
0x283f   :  { %p5705_p12 = scmp.ne.s32.totalorder %s6601_s9, %s5704_s25  ;;  %p5708_p13 = scmp.lt.u32.totalorder %s5704_s25, %s6601_s9 }
0x2841   :  { %p5710_p0 = pnand %p5708_p13, %p5705_p12 }
0x2843   :  { %5713 = shalt.err (!%p5710_p0)
}
0x2844   :  { %s5745_s27 = smov 128  }
0x2845   :  { %4510 = dma.vmem_to_hbm [thread:$0]  %s4505_s5, 256, %s6601_s9, [#allocation6], %s5745_s27, %s5745_s27, %s5741_s15  }
0x2846   :  { %5720 = dma.done.wait [#allocation6], 256  }
0x2847   :  { %5721 = vsyncadd [#allocation6], 4294967040 }
0x2848   :  { %4514 = vsyncpa [#allocation5], 1 }
0x2849   :  { %4515 = vsyncpa [#allocation10], 1 }
0x284a   :  { %4516 = vsyncpa [#allocation6], 1 }
0x284b   :  { %4517 = vsyncpa [#allocation7], 1 }

</bundles_post_ra>
